<compile_context>
chip_gen: v7x
topology: tpu7x:2x2x1
jax: 0.10.0
libtpu: 0.0.40
codegen_flags: <defaults>
</compile_context>

<pallas_src>
import jax
import jax.numpy as jnp
from jax import lax
from jax.experimental import pallas as pl
from jax.experimental.pallas import tpu as pltpu


def make_kernel(spatial_shapes, n_heads, n_points, d_model, eps=1e-5):
    L = len(spatial_shapes)
    H = n_heads
    P = n_points
    D = d_model
    dh = d_model // H
    LP = L * P
    HLP = H * LP

    level_start = []
    s = 0
    for (Hl, Wl) in spatial_shapes:
        level_start.append(s)
        s += Hl * Wl

    N_FIXED = 19  # number of leading (non per-level-constant) input refs

    def kernel(*refs):
        (src_ref, srcpos_ref, mem_ref, mempos_ref, refxw_ref, refyh_ref,
         wv_ref, bv_ref, wq_ref, bq_ref, wo_ref, bo_ref,
         lnw_ref, lnb_ref, w1_ref, b1_ref, w2_ref, b2_ref,
         seg_ref) = refs[:N_FIXED]
        lvl_refs = refs[N_FIXED:N_FIXED + 4 * L]     # (wlane, hlane, Ex, Ey) per level
        out_ref = refs[N_FIXED + 4 * L]
        value_vmem = refs[N_FIXED + 4 * L + 1]

        qi = pl.program_id(1)

        # ---- value projection: computed once per batch element, cached in a
        # VMEM scratch and reused by every query tile (q axis is 'arbitrary',
        # i.e. sequential, so the cache is valid across q tiles). ----
        @pl.when(qi == 0)
        def _():
            v_in = mem_ref[0] + mempos_ref[0]                        # (Lin, D)
            value_vmem[...] = (jnp.dot(v_in, wv_ref[...],
                                       preferred_element_type=jnp.float32)
                               + bv_ref[...])

        src = src_ref[0]                                             # (TQ, D)
        q = src + srcpos_ref[0]
        TQ = src.shape[0]

        # ---- fused query-side projection: [off_x | off_y | attn_logits] ----
        qkt = jnp.dot(q, wq_ref[...], preferred_element_type=jnp.float32) + bq_ref[...]
        off_x = qkt[:, 0:HLP]
        off_y = qkt[:, HLP:2 * HLP]
        logits = qkt[:, 2 * HLP:3 * HLP]

        # Softmax numerator for all heads at once (a row-global max is a valid
        # shift inside every per-head block); per-head denominators via one
        # MXU matmul with the precomputed 0/1 head-segment matrix.
        m = jnp.max(logits, axis=-1, keepdims=True)
        e = jnp.exp(logits - m)                                      # (TQ, HLP)
        denom_h = jnp.dot(e, seg_ref[...],
                          preferred_element_type=jnp.float32)        # (TQ, H)

        # ---- sampling pixel coordinates for all (h, l, p) at once ----
        # loc = ref + off / (W_l, H_l); px = loc_x*W_l - 0.5 = refx*W_l + off_x - 0.5
        px_all = refxw_ref[0] + off_x - 0.5                          # (TQ, HLP)
        py_all = refyh_ref[0] + off_y - 0.5

        value_dtype = value_vmem.dtype
        del value_dtype  # (value already f32)

        # ---- MSDeformAttn sampling; head-merge folded into the out-proj ----
        y_attn = jnp.zeros((TQ, D), jnp.float32)
        # TODO(synk): for large H*L*P (e.g. 8*4*4) convert these unrolled
        # Python loops to lax.fori_loop to bound live ranges / compile time.
        for h in range(H):
            acc = jnp.zeros((TQ, dh), jnp.float32)
            for l in range(L):
                Hl, Wl = spatial_shapes[l]
                HWl = Hl * Wl
                start = level_start[l]
                wlane = lvl_refs[4 * l + 0][...]                     # (1, Wl)
                hlane = lvl_refs[4 * l + 1][...]                     # (1, Hl)
                Ex = lvl_refs[4 * l + 2][...]                        # (Wl, HWl)
                Ey = lvl_refs[4 * l + 3][...]                        # (Hl, HWl)
                A = jnp.zeros((TQ, HWl), jnp.float32)
                for p in range(P):
                    c = (h * L + l) * P + p
                    # separable 1-D tents on tiny (TQ, Wl)/(TQ, Hl) planes
                    wx = jnp.maximum(0.0, 1.0 - jnp.abs(px_all[:, c:c + 1] - wlane))
                    wy = jnp.maximum(0.0, 1.0 - jnp.abs(py_all[:, c:c + 1] - hlane))
                    wy = wy * e[:, c:c + 1]       # fold unnormalized attention
                    # expand onto (TQ, HWl) via MXU; only 2 VPU ops/element here
                    A = A + (jnp.dot(wy, Ey, preferred_element_type=jnp.float32)
                             * jnp.dot(wx, Ex, preferred_element_type=jnp.float32))
                # static ref slice: only the needed (HWl, dh) block is loaded
                vl = value_vmem[start:start + HWl, h * dh:(h + 1) * dh]
                acc = acc + jnp.dot(A, vl, preferred_element_type=jnp.float32)
            # softmax normalization + this head's rows of the output projection
            acc = acc * pl.reciprocal(denom_h[:, h:h + 1], approx=False)
            y_attn = y_attn + jnp.dot(acc, wo_ref[h * dh:(h + 1) * dh, :],
                                      preferred_element_type=jnp.float32)
        y_attn = y_attn + bo_ref[...]

        ln_w = lnw_ref[...]
        ln_b = lnb_ref[...]

        def layer_norm(x):
            mu = jnp.mean(x, axis=-1, keepdims=True)
            xc = x - mu
            var = jnp.mean(xc * xc, axis=-1, keepdims=True)
            return xc * lax.rsqrt(var + eps) * ln_w + ln_b

        # residual + norm2 (dropout = identity at inference)
        x = layer_norm(src + y_attn)
        # FFN: linear1 -> relu -> linear2, residual, norm2 again (the reference
        # module re-defines norm2, so the same LayerNorm is applied twice)
        h1 = jnp.maximum(jnp.dot(x, w1_ref[...], preferred_element_type=jnp.float32)
                         + b1_ref[...], 0.0)
        x2 = jnp.dot(h1, w2_ref[...], preferred_element_type=jnp.float32) + b2_ref[...]
        out_ref[0] = layer_norm(x + x2)

    return kernel


def deformable_cross_encoder_layer(params, src, memory, src_pos, memory_pos,
                                   reference_points, spatial_shapes,
                                   level_start_index, n_heads, n_points,
                                   tile_q=None):
    # level_start_index is redundant with (static) spatial_shapes; kept for
    # signature fidelity.
    del level_start_index
    N, Lq, D = src.shape
    Lin = memory.shape[1]
    L = len(spatial_shapes)
    LP = L * n_points
    HLP = n_heads * LP
    F_ffn = params['w1'].shape[1]

    if tile_q is None:
        tile_q = Lq
        for cand in (512, 256, 128, 64, 32, 16, 8):
            if Lq % cand == 0:
                tile_q = cand
                break
    assert Lq % tile_q == 0, "Lq must be divisible by tile_q"
    n_qtiles = Lq // tile_q

    # --- wrapper-side layout plumbing (free relative to in-kernel lane ops) ---
    # reference points pre-scaled by (W_l, H_l) and expanded to (N, Lq, H*L*P)
    refx = reference_points[..., 0]                       # (N, Lq, L)
    refy = reference_points[..., 1]
    w_sizes = jnp.array([float(w) for (_h, w) in spatial_shapes], jnp.float32)
    h_sizes = jnp.array([float(h) for (h, _w) in spatial_shapes], jnp.float32)
    refxw = jnp.tile(jnp.repeat(refx * w_sizes, n_points, axis=-1), (1, 1, n_heads))
    refyh = jnp.tile(jnp.repeat(refy * h_sizes, n_points, axis=-1), (1, 1, n_heads))
    # fused query-side projection [sampling_off_x | sampling_off_y | attn_logits]
    wq = jnp.concatenate([params['wox'], params['woy'], params['wa']], axis=1)
    bq = jnp.concatenate([params['box'], params['boy'], params['ba']], axis=1)

    # --- grid-invariant constants, precomputed once (resident in VMEM) ---
    cols_hlp = jnp.arange(HLP)
    seg = ((cols_hlp[:, None] // LP) ==
           jnp.arange(n_heads)[None, :]).astype(jnp.float32)          # (HLP, H)
    lvl_consts = []
    for (Hl, Wl) in spatial_shapes:
        HWl = Hl * Wl
        cols = jnp.arange(HWl)
        wlane = jnp.arange(Wl, dtype=jnp.float32)[None, :]            # (1, Wl)
        hlane = jnp.arange(Hl, dtype=jnp.float32)[None, :]            # (1, Hl)
        Ex = ((cols[None, :] % Wl) ==
              jnp.arange(Wl)[:, None]).astype(jnp.float32)            # (Wl, HWl)
        Ey = ((cols[None, :] // Wl) ==
              jnp.arange(Hl)[:, None]).astype(jnp.float32)            # (Hl, HWl)
        lvl_consts.extend([wlane, hlane, Ex, Ey])

    kernel = make_kernel(tuple(spatial_shapes), n_heads, n_points, D)

    def q_spec(last):
        return pl.BlockSpec((1, tile_q, last), lambda b, qi: (b, qi, 0))

    def m_spec(last):
        return pl.BlockSpec((1, Lin, last), lambda b, qi: (b, 0, 0))

    def w_spec(shape):
        return pl.BlockSpec(shape, lambda b, qi: (0, 0))

    in_specs = [
        q_spec(D), q_spec(D), m_spec(D), m_spec(D), q_spec(HLP), q_spec(HLP),
        w_spec((D, D)), w_spec((1, D)),
        w_spec((D, 3 * HLP)), w_spec((1, 3 * HLP)),
        w_spec((D, D)), w_spec((1, D)),
        w_spec((1, D)), w_spec((1, D)),
        w_spec((D, F_ffn)), w_spec((1, F_ffn)),
        w_spec((F_ffn, D)), w_spec((1, D)),
        w_spec((HLP, n_heads)),
    ] + [w_spec(tuple(c.shape)) for c in lvl_consts]
    out_spec = q_spec(D)

    operands = [src, src_pos, memory, memory_pos, refxw, refyh,
                params['wv'], params['bv'], wq, bq,
                params['wo'], params['bo'], params['ln_w'], params['ln_b'],
                params['w1'], params['b1'], params['w2'], params['b2'],
                seg] + lvl_consts

    return pl.pallas_call(
        kernel,
        out_shape=jax.ShapeDtypeStruct((N, Lq, D), jnp.float32),
        grid=(N, n_qtiles),
        in_specs=in_specs,
        out_specs=out_spec,
        scratch_shapes=[pltpu.VMEM((Lin, D), jnp.float32)],
        compiler_params=pltpu.CompilerParams(
            dimension_semantics=("parallel", "arbitrary"),
            vmem_limit_bytes=64 * 1024 * 1024),
    )(*operands)


def init_params(key, d_model, d_ffn, n_levels, n_heads, n_points):
    HLP = n_heads * n_levels * n_points
    HLP2 = HLP * 2
    ks = jax.random.split(key, 14)

    def w(k, shape, scale=0.1):
        return scale * jax.random.normal(k, shape, jnp.float32)

    woff = w(ks[0], (d_model, HLP2))        # sampling_offsets (in, out) layout
    boff = w(ks[1], (HLP2,), 0.05)
    params = dict(
        wv=w(ks[2], (d_model, d_model)), bv=w(ks[3], (1, d_model), 0.05),
        wa=w(ks[4], (d_model, HLP)), ba=w(ks[5], (1, HLP), 0.05),
        wo=w(ks[6], (d_model, d_model)), bo=w(ks[7], (1, d_model), 0.05),
        ln_w=1.0 + w(ks[8], (1, d_model), 0.1),
        ln_b=w(ks[9], (1, d_model), 0.1),
        w1=w(ks[10], (d_model, d_ffn)), b1=w(ks[11], (1, d_ffn), 0.05),
        w2=w(ks[12], (d_ffn, d_model)), b2=w(ks[13], (1, d_model), 0.05),
        # x / y column split of sampling_offsets (reshape(..., H, L, P, 2) layout)
        wox=woff[:, 0::2], box=boff[0::2][None, :],
        woy=woff[:, 1::2], boy=boff[1::2][None, :],
        woff=woff, boff=boff[None, :],      # full versions for the JAX reference
    )
    return params


def ref_forward(params, src, memory, src_pos, memory_pos, ref_points,
                spatial_shapes, n_heads, n_points):
    """Pure-JAX reference (same math as ms_deform_attn_core_pytorch + layer)."""
    N, Lq, D = src.shape
    Lin = memory.shape[1]
    L = len(spatial_shapes)
    H, P = n_heads, n_points
    dh = D // H
    hi = jax.lax.Precision.HIGHEST

    q = src + src_pos
    v_in = memory + memory_pos
    value = (jnp.dot(v_in, params['wv'], precision=hi) + params['bv']).reshape(N, Lin, H, dh)
    off = (jnp.dot(q, params['woff'], precision=hi) + params['boff']).reshape(N, Lq, H, L, P, 2)
    logits = (jnp.dot(q, params['wa'], precision=hi) + params['ba']).reshape(N, Lq, H, L * P)
    attn = jax.nn.softmax(logits, axis=-1).reshape(N, Lq, H, L, P)
    normalizer = jnp.array([[Wl, Hl] for (Hl, Wl) in spatial_shapes], jnp.float32)
    loc = ref_points[:, :, None, :, None, :] + off / normalizer[None, None, None, :, None, :]

    out = jnp.zeros((N, Lq, H, dh), jnp.float32)
    start = 0
    for l, (Hl, Wl) in enumerate(spatial_shapes):
        HWl = Hl * Wl
        vl = value[:, start:start + HWl]
        lx = loc[:, :, :, l, :, 0] * Wl - 0.5
        ly = loc[:, :, :, l, :, 1] * Hl - 0.5
        wc = (jnp.arange(HWl) % Wl).astype(jnp.float32)
        hc = (jnp.arange(HWl) // Wl).astype(jnp.float32)
        wx = jnp.maximum(0.0, 1.0 - jnp.abs(lx[..., None] - wc))
        wy = jnp.maximum(0.0, 1.0 - jnp.abs(ly[..., None] - hc))
        Aw = (attn[:, :, :, l, :, None] * wx * wy).sum(axis=3)       # (N,Lq,H,HWl)
        out = out + jnp.einsum('nqhs,nshd->nqhd', Aw, vl, precision=hi)
        start += HWl

    out = out.reshape(N, Lq, D)
    out = jnp.dot(out, params['wo'], precision=hi) + params['bo']

    def ln(x):
        mu = x.mean(-1, keepdims=True)
        var = ((x - mu) ** 2).mean(-1, keepdims=True)
        return (x - mu) / jnp.sqrt(var + 1e-5) * params['ln_w'] + params['ln_b']

    x = ln(src + out)
    h1 = jax.nn.relu(jnp.dot(x, params['w1'], precision=hi) + params['b1'])
    x2 = jnp.dot(h1, params['w2'], precision=hi) + params['b2']
    return ln(x + x2)


if __name__ == "__main__":
    d_model, d_ffn = 32, 64
    n_levels, n_heads, n_points = 2, 4, 2
    spatial_shapes = ((8, 8), (4, 4))
    N, Lq = 2, 16
    Lin = sum(h * w for h, w in spatial_shapes)

    key = jax.random.PRNGKey(0)
    k_param, k_src, k_mem, k_sp, k_mp, k_ref = jax.random.split(key, 6)
    params = init_params(k_param, d_model, d_ffn, n_levels, n_heads, n_points)

    src = jax.random.normal(k_src, (N, Lq, d_model), jnp.float32)
    memory = jax.random.normal(k_mem, (N, Lin, d_model), jnp.float32)
    src_pos = 0.1 * jax.random.normal(k_sp, (N, Lq, d_model), jnp.float32)
    memory_pos = 0.1 * jax.random.normal(k_mp, (N, Lin, d_model), jnp.float32)
    reference_points = jax.random.uniform(k_ref, (N, Lq, n_levels, 2), jnp.float32, 0.1, 0.9)
    level_start_index = jnp.array([0, spatial_shapes[0][0] * spatial_shapes[0][1]], jnp.int32)

    out = deformable_cross_encoder_layer(params, src, memory, src_pos, memory_pos,
                                         reference_points, spatial_shapes,
                                         level_start_index, n_heads, n_points,
                                         tile_q=8)
    out = jax.block_until_ready(out)

    ref = ref_forward(params, src, memory, src_pos, memory_pos, reference_points,
                      spatial_shapes, n_heads, n_points)
    err = float(jnp.max(jnp.abs(out - ref)))
    assert bool(jnp.isfinite(out).all()), "non-finite output"
    assert err < 3e-2, f"mismatch vs pure-JAX reference: {err}"
    print("KERNEL_OK")
</pallas_src>

<mosaic_0001>
module attributes {stable_mosaic.version = 11 : i64} {
  func.func @kernel(%arg0: i32, %arg1: i32, %arg2: memref<1x8x32xf32, #tpu.memory_space<vmem>>, %arg3: memref<1x8x32xf32, #tpu.memory_space<vmem>>, %arg4: memref<1x80x32xf32, #tpu.memory_space<vmem>>, %arg5: memref<1x80x32xf32, #tpu.memory_space<vmem>>, %arg6: memref<1x8x16xf32, #tpu.memory_space<vmem>>, %arg7: memref<1x8x16xf32, #tpu.memory_space<vmem>>, %arg8: memref<32x32xf32, #tpu.memory_space<vmem>>, %arg9: memref<1x32xf32, #tpu.memory_space<vmem>>, %arg10: memref<32x48xf32, #tpu.memory_space<vmem>>, %arg11: memref<1x48xf32, #tpu.memory_space<vmem>>, %arg12: memref<32x32xf32, #tpu.memory_space<vmem>>, %arg13: memref<1x32xf32, #tpu.memory_space<vmem>>, %arg14: memref<1x32xf32, #tpu.memory_space<vmem>>, %arg15: memref<1x32xf32, #tpu.memory_space<vmem>>, %arg16: memref<32x64xf32, #tpu.memory_space<vmem>>, %arg17: memref<1x64xf32, #tpu.memory_space<vmem>>, %arg18: memref<64x32xf32, #tpu.memory_space<vmem>>, %arg19: memref<1x32xf32, #tpu.memory_space<vmem>>, %arg20: memref<16x4xf32, #tpu.memory_space<vmem>>, %arg21: memref<1x8xf32, #tpu.memory_space<vmem>>, %arg22: memref<1x8xf32, #tpu.memory_space<vmem>>, %arg23: memref<8x64xf32, #tpu.memory_space<vmem>>, %arg24: memref<8x64xf32, #tpu.memory_space<vmem>>, %arg25: memref<1x4xf32, #tpu.memory_space<vmem>>, %arg26: memref<1x4xf32, #tpu.memory_space<vmem>>, %arg27: memref<4x16xf32, #tpu.memory_space<vmem>>, %arg28: memref<4x16xf32, #tpu.memory_space<vmem>>, %arg29: memref<1x8x32xf32, #tpu.memory_space<vmem>>, %arg30: memref<80x32xf32, #tpu.memory_space<vmem>>) attributes {dimension_semantics = [#tpu.dimension_semantics<parallel>, #tpu.dimension_semantics<arbitrary>], iteration_bounds = array<i64: 2, 2>, scalar_prefetch = 0 : i64, scratch_operands = 1 : i64, tpu.core_type = #tpu.core_type<tc>, window_params = [{transform_indices = @transform_0, window_bounds = array<i64: 1, 8, 32>}, {transform_indices = @transform_1, window_bounds = array<i64: 1, 8, 32>}, {transform_indices = @transform_2, window_bounds = array<i64: 1, 80, 32>}, {transform_indices = @transform_3, window_bounds = array<i64: 1, 80, 32>}, {transform_indices = @transform_4, window_bounds = array<i64: 1, 8, 16>}, {transform_indices = @transform_5, window_bounds = array<i64: 1, 8, 16>}, {pipeline_mode = #tpu.pipeline_mode<synchronous>, transform_indices = @transform_6, window_bounds = array<i64: 32, 32>}, {pipeline_mode = #tpu.pipeline_mode<synchronous>, transform_indices = @transform_7, window_bounds = array<i64: 1, 32>}, {pipeline_mode = #tpu.pipeline_mode<synchronous>, transform_indices = @transform_8, window_bounds = array<i64: 32, 48>}, {pipeline_mode = #tpu.pipeline_mode<synchronous>, transform_indices = @transform_9, window_bounds = array<i64: 1, 48>}, {pipeline_mode = #tpu.pipeline_mode<synchronous>, transform_indices = @transform_10, window_bounds = array<i64: 32, 32>}, {pipeline_mode = #tpu.pipeline_mode<synchronous>, transform_indices = @transform_11, window_bounds = array<i64: 1, 32>}, {pipeline_mode = #tpu.pipeline_mode<synchronous>, transform_indices = @transform_12, window_bounds = array<i64: 1, 32>}, {pipeline_mode = #tpu.pipeline_mode<synchronous>, transform_indices = @transform_13, window_bounds = array<i64: 1, 32>}, {pipeline_mode = #tpu.pipeline_mode<synchronous>, transform_indices = @transform_14, window_bounds = array<i64: 32, 64>}, {pipeline_mode = #tpu.pipeline_mode<synchronous>, transform_indices = @transform_15, window_bounds = array<i64: 1, 64>}, {pipeline_mode = #tpu.pipeline_mode<synchronous>, transform_indices = @transform_16, window_bounds = array<i64: 64, 32>}, {pipeline_mode = #tpu.pipeline_mode<synchronous>, transform_indices = @transform_17, window_bounds = array<i64: 1, 32>}, {pipeline_mode = #tpu.pipeline_mode<synchronous>, transform_indices = @transform_18, window_bounds = array<i64: 16, 4>}, {pipeline_mode = #tpu.pipeline_mode<synchronous>, transform_indices = @transform_19, window_bounds = array<i64: 1, 8>}, {pipeline_mode = #tpu.pipeline_mode<synchronous>, transform_indices = @transform_20, window_bounds = array<i64: 1, 8>}, {pipeline_mode = #tpu.pipeline_mode<synchronous>, transform_indices = @transform_21, window_bounds = array<i64: 8, 64>}, {pipeline_mode = #tpu.pipeline_mode<synchronous>, transform_indices = @transform_22, window_bounds = array<i64: 8, 64>}, {pipeline_mode = #tpu.pipeline_mode<synchronous>, transform_indices = @transform_23, window_bounds = array<i64: 1, 4>}, {pipeline_mode = #tpu.pipeline_mode<synchronous>, transform_indices = @transform_24, window_bounds = array<i64: 1, 4>}, {pipeline_mode = #tpu.pipeline_mode<synchronous>, transform_indices = @transform_25, window_bounds = array<i64: 4, 16>}, {pipeline_mode = #tpu.pipeline_mode<synchronous>, transform_indices = @transform_26, window_bounds = array<i64: 4, 16>}, {transform_indices = @transform_27, window_bounds = array<i64: 1, 8, 32>}]} {
    %c0_i32 = arith.constant 0 : i32
    %0 = arith.cmpi eq, %arg1, %c0_i32 : i32
    %1 = arith.extui %0 : i1 to i32
    %c0_i32_0 = arith.constant 0 : i32
    %2 = arith.cmpi ne, %1, %c0_i32_0 : i32
    scf.if %2 {
      %c0_257 = arith.constant 0 : index
      %c0_258 = arith.constant 0 : index
      %c0_259 = arith.constant 0 : index
      %592 = vector.load %arg4[%c0_257, %c0_258, %c0_259] : memref<1x80x32xf32, #tpu.memory_space<vmem>>, vector<1x80x32xf32>
      %593 = vector.shape_cast %592 : vector<1x80x32xf32> to vector<80x32xf32>
      %c0_260 = arith.constant 0 : index
      %c0_261 = arith.constant 0 : index
      %c0_262 = arith.constant 0 : index
      %594 = vector.load %arg5[%c0_260, %c0_261, %c0_262] : memref<1x80x32xf32, #tpu.memory_space<vmem>>, vector<1x80x32xf32>
      %595 = vector.shape_cast %594 : vector<1x80x32xf32> to vector<80x32xf32>
      %596 = arith.addf %593, %595 : vector<80x32xf32>
      %c0_263 = arith.constant 0 : index
      %c0_264 = arith.constant 0 : index
      %597 = vector.load %arg8[%c0_263, %c0_264] : memref<32x32xf32, #tpu.memory_space<vmem>>, vector<32x32xf32>
      %cst_265 = arith.constant dense<0.000000e+00> : vector<80x32xf32>
      %598 = tpu.matmul %596, %597, %cst_265 {dimension_numbers = #tpu.dot_dimension_numbers<[1], [0], [0], [1], [0, 0, 1, 1], [], []>} : vector<80x32xf32>, vector<32x32xf32>, vector<80x32xf32> -> vector<80x32xf32>
      %c0_266 = arith.constant 0 : index
      %c0_267 = arith.constant 0 : index
      %599 = vector.load %arg9[%c0_266, %c0_267] : memref<1x32xf32, #tpu.memory_space<vmem>>, vector<1x32xf32>
      %600 = vector.broadcast %599 : vector<1x32xf32> to vector<80x32xf32>
      %601 = arith.addf %598, %600 : vector<80x32xf32>
      %c0_268 = arith.constant 0 : index
      %c0_269 = arith.constant 0 : index
      %602 = vector.load %arg30[%c0_268, %c0_269] : memref<80x32xf32, #tpu.memory_space<vmem>>, vector<80x32xf32>
      tpu.vector_store %arg30[%c0_268, %c0_269], %601 {strides = array<i32>} : memref<80x32xf32, #tpu.memory_space<vmem>>, vector<80x32xf32>,
    } else {
    }
    %c0 = arith.constant 0 : index
    %c0_1 = arith.constant 0 : index
    %c0_2 = arith.constant 0 : index
    %3 = vector.load %arg2[%c0, %c0_1, %c0_2] : memref<1x8x32xf32, #tpu.memory_space<vmem>>, vector<1x8x32xf32>
    %4 = vector.shape_cast %3 : vector<1x8x32xf32> to vector<8x32xf32>
    %c0_3 = arith.constant 0 : index
    %c0_4 = arith.constant 0 : index
    %c0_5 = arith.constant 0 : index
    %5 = vector.load %arg3[%c0_3, %c0_4, %c0_5] : memref<1x8x32xf32, #tpu.memory_space<vmem>>, vector<1x8x32xf32>
    %6 = vector.shape_cast %5 : vector<1x8x32xf32> to vector<8x32xf32>
    %7 = arith.addf %4, %6 : vector<8x32xf32>
    %c0_6 = arith.constant 0 : index
    %c0_7 = arith.constant 0 : index
    %8 = vector.load %arg10[%c0_6, %c0_7] : memref<32x48xf32, #tpu.memory_space<vmem>>, vector<32x48xf32>
    %cst = arith.constant dense<0.000000e+00> : vector<8x48xf32>
    %9 = tpu.matmul %7, %8, %cst {dimension_numbers = #tpu.dot_dimension_numbers<[1], [0], [0], [1], [0, 0, 1, 1], [], []>} : vector<8x32xf32>, vector<32x48xf32>, vector<8x48xf32> -> vector<8x48xf32>
    %c0_8 = arith.constant 0 : index
    %c0_9 = arith.constant 0 : index
    %10 = vector.load %arg11[%c0_8, %c0_9] : memref<1x48xf32, #tpu.memory_space<vmem>>, vector<1x48xf32>
    %11 = vector.broadcast %10 : vector<1x48xf32> to vector<8x48xf32>
    %12 = arith.addf %9, %11 : vector<8x48xf32>
    %13 = vector.extract_strided_slice %12 {offsets = [0, 0], sizes = [8, 16], strides = [1, 1]} : vector<8x48xf32> to vector<8x16xf32>
    %14 = vector.extract_strided_slice %12 {offsets = [0, 16], sizes = [8, 16], strides = [1, 1]} : vector<8x48xf32> to vector<8x16xf32>
    %15 = vector.extract_strided_slice %12 {offsets = [0, 32], sizes = [8, 16], strides = [1, 1]} : vector<8x48xf32> to vector<8x16xf32>
    %cst_10 = arith.constant dense<0xFF800000> : vector<8xf32>
    %16 = vector.multi_reduction <maximumf>, %15, %cst_10 [1] : vector<8x16xf32> to vector<8xf32>
    %17 = vector.shape_cast %16 : vector<8xf32> to vector<8x1xf32>
    %18 = vector.broadcast %17 : vector<8x1xf32> to vector<8x16xf32>
    %19 = arith.subf %15, %18 : vector<8x16xf32>
    %20 = math.exp %19 : vector<8x16xf32>
    %c0_11 = arith.constant 0 : index
    %c0_12 = arith.constant 0 : index
    %21 = vector.load %arg20[%c0_11, %c0_12] : memref<16x4xf32, #tpu.memory_space<vmem>>, vector<16x4xf32>
    %cst_13 = arith.constant dense<0.000000e+00> : vector<8x4xf32>
    %22 = tpu.matmul %20, %21, %cst_13 {dimension_numbers = #tpu.dot_dimension_numbers<[1], [0], [0], [1], [0, 0, 1, 1], [], []>} : vector<8x16xf32>, vector<16x4xf32>, vector<8x4xf32> -> vector<8x4xf32>
    %c0_14 = arith.constant 0 : index
    %c0_15 = arith.constant 0 : index
    %c0_16 = arith.constant 0 : index
    %23 = vector.load %arg6[%c0_14, %c0_15, %c0_16] : memref<1x8x16xf32, #tpu.memory_space<vmem>>, vector<1x8x16xf32>
    %24 = vector.shape_cast %23 : vector<1x8x16xf32> to vector<8x16xf32>
    %25 = arith.addf %24, %13 : vector<8x16xf32>
    %cst_17 = arith.constant 5.000000e-01 : f32
    %26 = vector.broadcast %cst_17 : f32 to vector<8x16xf32>
    %27 = arith.subf %25, %26 : vector<8x16xf32>
    %c0_18 = arith.constant 0 : index
    %c0_19 = arith.constant 0 : index
    %c0_20 = arith.constant 0 : index
    %28 = vector.load %arg7[%c0_18, %c0_19, %c0_20] : memref<1x8x16xf32, #tpu.memory_space<vmem>>, vector<1x8x16xf32>
    %29 = vector.shape_cast %28 : vector<1x8x16xf32> to vector<8x16xf32>
    %30 = arith.addf %29, %14 : vector<8x16xf32>
    %cst_21 = arith.constant 5.000000e-01 : f32
    %31 = vector.broadcast %cst_21 : f32 to vector<8x16xf32>
    %32 = arith.subf %30, %31 : vector<8x16xf32>
    %cst_22 = arith.constant 0.000000e+00 : f32
    %33 = vector.broadcast %cst_22 : f32 to vector<8x32xf32>
    %cst_23 = arith.constant 0.000000e+00 : f32
    %34 = vector.broadcast %cst_23 : f32 to vector<8x8xf32>
    %c0_24 = arith.constant 0 : index
    %c0_25 = arith.constant 0 : index
    %35 = vector.load %arg21[%c0_24, %c0_25] : memref<1x8xf32, #tpu.memory_space<vmem>>, vector<1x8xf32>
    %c0_26 = arith.constant 0 : index
    %c0_27 = arith.constant 0 : index
    %36 = vector.load %arg22[%c0_26, %c0_27] : memref<1x8xf32, #tpu.memory_space<vmem>>, vector<1x8xf32>
    %c0_28 = arith.constant 0 : index
    %c0_29 = arith.constant 0 : index
    %37 = vector.load %arg23[%c0_28, %c0_29] : memref<8x64xf32, #tpu.memory_space<vmem>>, vector<8x64xf32>
    %c0_30 = arith.constant 0 : index
    %c0_31 = arith.constant 0 : index
    %38 = vector.load %arg24[%c0_30, %c0_31] : memref<8x64xf32, #tpu.memory_space<vmem>>, vector<8x64xf32>
    %cst_32 = arith.constant 0.000000e+00 : f32
    %39 = vector.broadcast %cst_32 : f32 to vector<8x64xf32>
    %40 = vector.extract_strided_slice %27 {offsets = [0, 0], sizes = [8, 1], strides = [1, 1]} : vector<8x16xf32> to vector<8x1xf32>
    %41 = vector.broadcast %40 : vector<8x1xf32> to vector<8x8xf32>
    %42 = vector.broadcast %35 : vector<1x8xf32> to vector<8x8xf32>
    %43 = arith.subf %41, %42 : vector<8x8xf32>
    %44 = math.absf %43 : vector<8x8xf32>
    %cst_33 = arith.constant 1.000000e+00 : f32
    %45 = vector.broadcast %cst_33 : f32 to vector<8x8xf32>
    %46 = arith.subf %45, %44 : vector<8x8xf32>
    %cst_34 = arith.constant 0.000000e+00 : f32
    %47 = vector.broadcast %cst_34 : f32 to vector<8x8xf32>
    %48 = arith.maximumf %47, %46 : vector<8x8xf32>
    %49 = vector.extract_strided_slice %32 {offsets = [0, 0], sizes = [8, 1], strides = [1, 1]} : vector<8x16xf32> to vector<8x1xf32>
    %50 = vector.broadcast %49 : vector<8x1xf32> to vector<8x8xf32>
    %51 = vector.broadcast %36 : vector<1x8xf32> to vector<8x8xf32>
    %52 = arith.subf %50, %51 : vector<8x8xf32>
    %53 = math.absf %52 : vector<8x8xf32>
    %cst_35 = arith.constant 1.000000e+00 : f32
    %54 = vector.broadcast %cst_35 : f32 to vector<8x8xf32>
    %55 = arith.subf %54, %53 : vector<8x8xf32>
    %cst_36 = arith.constant 0.000000e+00 : f32
    %56 = vector.broadcast %cst_36 : f32 to vector<8x8xf32>
    %57 = arith.maximumf %56, %55 : vector<8x8xf32>
    %58 = vector.extract_strided_slice %20 {offsets = [0, 0], sizes = [8, 1], strides = [1, 1]} : vector<8x16xf32> to vector<8x1xf32>
    %59 = vector.broadcast %58 : vector<8x1xf32> to vector<8x8xf32>
    %60 = arith.mulf %57, %59 : vector<8x8xf32>
    %cst_37 = arith.constant dense<0.000000e+00> : vector<8x64xf32>
    %61 = tpu.matmul %60, %38, %cst_37 {dimension_numbers = #tpu.dot_dimension_numbers<[1], [0], [0], [1], [0, 0, 1, 1], [], []>} : vector<8x8xf32>, vector<8x64xf32>, vector<8x64xf32> -> vector<8x64xf32>
    %cst_38 = arith.constant dense<0.000000e+00> : vector<8x64xf32>
    %62 = tpu.matmul %48, %37, %cst_38 {dimension_numbers = #tpu.dot_dimension_numbers<[1], [0], [0], [1], [0, 0, 1, 1], [], []>} : vector<8x8xf32>, vector<8x64xf32>, vector<8x64xf32> -> vector<8x64xf32>
    %63 = arith.mulf %61, %62 : vector<8x64xf32>
    %64 = arith.addf %39, %63 : vector<8x64xf32>
    %65 = vector.extract_strided_slice %27 {offsets = [0, 1], sizes = [8, 1], strides = [1, 1]} : vector<8x16xf32> to vector<8x1xf32>
    %66 = vector.broadcast %65 : vector<8x1xf32> to vector<8x8xf32>
    %67 = vector.broadcast %35 : vector<1x8xf32> to vector<8x8xf32>
    %68 = arith.subf %66, %67 : vector<8x8xf32>
    %69 = math.absf %68 : vector<8x8xf32>
    %cst_39 = arith.constant 1.000000e+00 : f32
    %70 = vector.broadcast %cst_39 : f32 to vector<8x8xf32>
    %71 = arith.subf %70, %69 : vector<8x8xf32>
    %cst_40 = arith.constant 0.000000e+00 : f32
    %72 = vector.broadcast %cst_40 : f32 to vector<8x8xf32>
    %73 = arith.maximumf %72, %71 : vector<8x8xf32>
    %74 = vector.extract_strided_slice %32 {offsets = [0, 1], sizes = [8, 1], strides = [1, 1]} : vector<8x16xf32> to vector<8x1xf32>
    %75 = vector.broadcast %74 : vector<8x1xf32> to vector<8x8xf32>
    %76 = vector.broadcast %36 : vector<1x8xf32> to vector<8x8xf32>
    %77 = arith.subf %75, %76 : vector<8x8xf32>
    %78 = math.absf %77 : vector<8x8xf32>
    %cst_41 = arith.constant 1.000000e+00 : f32
    %79 = vector.broadcast %cst_41 : f32 to vector<8x8xf32>
    %80 = arith.subf %79, %78 : vector<8x8xf32>
    %cst_42 = arith.constant 0.000000e+00 : f32
    %81 = vector.broadcast %cst_42 : f32 to vector<8x8xf32>
    %82 = arith.maximumf %81, %80 : vector<8x8xf32>
    %83 = vector.extract_strided_slice %20 {offsets = [0, 1], sizes = [8, 1], strides = [1, 1]} : vector<8x16xf32> to vector<8x1xf32>
    %84 = vector.broadcast %83 : vector<8x1xf32> to vector<8x8xf32>
    %85 = arith.mulf %82, %84 : vector<8x8xf32>
    %cst_43 = arith.constant dense<0.000000e+00> : vector<8x64xf32>
    %86 = tpu.matmul %85, %38, %cst_43 {dimension_numbers = #tpu.dot_dimension_numbers<[1], [0], [0], [1], [0, 0, 1, 1], [], []>} : vector<8x8xf32>, vector<8x64xf32>, vector<8x64xf32> -> vector<8x64xf32>
    %cst_44 = arith.constant dense<0.000000e+00> : vector<8x64xf32>
    %87 = tpu.matmul %73, %37, %cst_44 {dimension_numbers = #tpu.dot_dimension_numbers<[1], [0], [0], [1], [0, 0, 1, 1], [], []>} : vector<8x8xf32>, vector<8x64xf32>, vector<8x64xf32> -> vector<8x64xf32>
    %88 = arith.mulf %86, %87 : vector<8x64xf32>
    %89 = arith.addf %64, %88 : vector<8x64xf32>
    %c0_45 = arith.constant 0 : index
    %c0_46 = arith.constant 0 : index
    %90 = vector.load %arg30[%c0_45, %c0_46] : memref<80x32xf32, #tpu.memory_space<vmem>>, vector<64x8xf32>
    %cst_47 = arith.constant dense<0.000000e+00> : vector<8x8xf32>
    %91 = tpu.matmul %89, %90, %cst_47 {dimension_numbers = #tpu.dot_dimension_numbers<[1], [0], [0], [1], [0, 0, 1, 1], [], []>} : vector<8x64xf32>, vector<64x8xf32>, vector<8x8xf32> -> vector<8x8xf32>
    %92 = arith.addf %34, %91 : vector<8x8xf32>
    %c0_48 = arith.constant 0 : index
    %c0_49 = arith.constant 0 : index
    %93 = vector.load %arg25[%c0_48, %c0_49] : memref<1x4xf32, #tpu.memory_space<vmem>>, vector<1x4xf32>
    %c0_50 = arith.constant 0 : index
    %c0_51 = arith.constant 0 : index
    %94 = vector.load %arg26[%c0_50, %c0_51] : memref<1x4xf32, #tpu.memory_space<vmem>>, vector<1x4xf32>
    %c0_52 = arith.constant 0 : index
    %c0_53 = arith.constant 0 : index
    %95 = vector.load %arg27[%c0_52, %c0_53] : memref<4x16xf32, #tpu.memory_space<vmem>>, vector<4x16xf32>
    %c0_54 = arith.constant 0 : index
    %c0_55 = arith.constant 0 : index
    %96 = vector.load %arg28[%c0_54, %c0_55] : memref<4x16xf32, #tpu.memory_space<vmem>>, vector<4x16xf32>
    %cst_56 = arith.constant 0.000000e+00 : f32
    %97 = vector.broadcast %cst_56 : f32 to vector<8x16xf32>
    %98 = vector.extract_strided_slice %27 {offsets = [0, 2], sizes = [8, 1], strides = [1, 1]} : vector<8x16xf32> to vector<8x1xf32>
    %99 = vector.broadcast %98 : vector<8x1xf32> to vector<8x4xf32>
    %100 = vector.broadcast %93 : vector<1x4xf32> to vector<8x4xf32>
    %101 = arith.subf %99, %100 : vector<8x4xf32>
    %102 = math.absf %101 : vector<8x4xf32>
    %cst_57 = arith.constant 1.000000e+00 : f32
    %103 = vector.broadcast %cst_57 : f32 to vector<8x4xf32>
    %104 = arith.subf %103, %102 : vector<8x4xf32>
    %cst_58 = arith.constant 0.000000e+00 : f32
    %105 = vector.broadcast %cst_58 : f32 to vector<8x4xf32>
    %106 = arith.maximumf %105, %104 : vector<8x4xf32>
    %107 = vector.extract_strided_slice %32 {offsets = [0, 2], sizes = [8, 1], strides = [1, 1]} : vector<8x16xf32> to vector<8x1xf32>
    %108 = vector.broadcast %107 : vector<8x1xf32> to vector<8x4xf32>
    %109 = vector.broadcast %94 : vector<1x4xf32> to vector<8x4xf32>
    %110 = arith.subf %108, %109 : vector<8x4xf32>
    %111 = math.absf %110 : vector<8x4xf32>
    %cst_59 = arith.constant 1.000000e+00 : f32
    %112 = vector.broadcast %cst_59 : f32 to vector<8x4xf32>
    %113 = arith.subf %112, %111 : vector<8x4xf32>
    %cst_60 = arith.constant 0.000000e+00 : f32
    %114 = vector.broadcast %cst_60 : f32 to vector<8x4xf32>
    %115 = arith.maximumf %114, %113 : vector<8x4xf32>
    %116 = vector.extract_strided_slice %20 {offsets = [0, 2], sizes = [8, 1], strides = [1, 1]} : vector<8x16xf32> to vector<8x1xf32>
    %117 = vector.broadcast %116 : vector<8x1xf32> to vector<8x4xf32>
    %118 = arith.mulf %115, %117 : vector<8x4xf32>
    %cst_61 = arith.constant dense<0.000000e+00> : vector<8x16xf32>
    %119 = tpu.matmul %118, %96, %cst_61 {dimension_numbers = #tpu.dot_dimension_numbers<[1], [0], [0], [1], [0, 0, 1, 1], [], []>} : vector<8x4xf32>, vector<4x16xf32>, vector<8x16xf32> -> vector<8x16xf32>
    %cst_62 = arith.constant dense<0.000000e+00> : vector<8x16xf32>
    %120 = tpu.matmul %106, %95, %cst_62 {dimension_numbers = #tpu.dot_dimension_numbers<[1], [0], [0], [1], [0, 0, 1, 1], [], []>} : vector<8x4xf32>, vector<4x16xf32>, vector<8x16xf32> -> vector<8x16xf32>
    %121 = arith.mulf %119, %120 : vector<8x16xf32>
    %122 = arith.addf %97, %121 : vector<8x16xf32>
    %123 = vector.extract_strided_slice %27 {offsets = [0, 3], sizes = [8, 1], strides = [1, 1]} : vector<8x16xf32> to vector<8x1xf32>
    %124 = vector.broadcast %123 : vector<8x1xf32> to vector<8x4xf32>
    %125 = vector.broadcast %93 : vector<1x4xf32> to vector<8x4xf32>
    %126 = arith.subf %124, %125 : vector<8x4xf32>
    %127 = math.absf %126 : vector<8x4xf32>
    %cst_63 = arith.constant 1.000000e+00 : f32
    %128 = vector.broadcast %cst_63 : f32 to vector<8x4xf32>
    %129 = arith.subf %128, %127 : vector<8x4xf32>
    %cst_64 = arith.constant 0.000000e+00 : f32
    %130 = vector.broadcast %cst_64 : f32 to vector<8x4xf32>
    %131 = arith.maximumf %130, %129 : vector<8x4xf32>
    %132 = vector.extract_strided_slice %32 {offsets = [0, 3], sizes = [8, 1], strides = [1, 1]} : vector<8x16xf32> to vector<8x1xf32>
    %133 = vector.broadcast %132 : vector<8x1xf32> to vector<8x4xf32>
    %134 = vector.broadcast %94 : vector<1x4xf32> to vector<8x4xf32>
    %135 = arith.subf %133, %134 : vector<8x4xf32>
    %136 = math.absf %135 : vector<8x4xf32>
    %cst_65 = arith.constant 1.000000e+00 : f32
    %137 = vector.broadcast %cst_65 : f32 to vector<8x4xf32>
    %138 = arith.subf %137, %136 : vector<8x4xf32>
    %cst_66 = arith.constant 0.000000e+00 : f32
    %139 = vector.broadcast %cst_66 : f32 to vector<8x4xf32>
    %140 = arith.maximumf %139, %138 : vector<8x4xf32>
    %141 = vector.extract_strided_slice %20 {offsets = [0, 3], sizes = [8, 1], strides = [1, 1]} : vector<8x16xf32> to vector<8x1xf32>
    %142 = vector.broadcast %141 : vector<8x1xf32> to vector<8x4xf32>
    %143 = arith.mulf %140, %142 : vector<8x4xf32>
    %cst_67 = arith.constant dense<0.000000e+00> : vector<8x16xf32>
    %144 = tpu.matmul %143, %96, %cst_67 {dimension_numbers = #tpu.dot_dimension_numbers<[1], [0], [0], [1], [0, 0, 1, 1], [], []>} : vector<8x4xf32>, vector<4x16xf32>, vector<8x16xf32> -> vector<8x16xf32>
    %cst_68 = arith.constant dense<0.000000e+00> : vector<8x16xf32>
    %145 = tpu.matmul %131, %95, %cst_68 {dimension_numbers = #tpu.dot_dimension_numbers<[1], [0], [0], [1], [0, 0, 1, 1], [], []>} : vector<8x4xf32>, vector<4x16xf32>, vector<8x16xf32> -> vector<8x16xf32>
    %146 = arith.mulf %144, %145 : vector<8x16xf32>
    %147 = arith.addf %122, %146 : vector<8x16xf32>
    %c64 = arith.constant 64 : index
    %c0_69 = arith.constant 0 : index
    %148 = vector.load %arg30[%c64, %c0_69] : memref<80x32xf32, #tpu.memory_space<vmem>>, vector<16x8xf32>
    %cst_70 = arith.constant dense<0.000000e+00> : vector<8x8xf32>
    %149 = tpu.matmul %147, %148, %cst_70 {dimension_numbers = #tpu.dot_dimension_numbers<[1], [0], [0], [1], [0, 0, 1, 1], [], []>} : vector<8x16xf32>, vector<16x8xf32>, vector<8x8xf32> -> vector<8x8xf32>
    %150 = arith.addf %92, %149 : vector<8x8xf32>
    %151 = vector.extract_strided_slice %22 {offsets = [0, 0], sizes = [8, 1], strides = [1, 1]} : vector<8x4xf32> to vector<8x1xf32>
    %152 = tpu.reciprocal %151 : vector<8x1xf32> -> vector<8x1xf32>
    %153 = vector.broadcast %152 : vector<8x1xf32> to vector<8x8xf32>
    %154 = arith.mulf %150, %153 : vector<8x8xf32>
    %c0_71 = arith.constant 0 : index
    %c0_72 = arith.constant 0 : index
    %155 = vector.load %arg12[%c0_71, %c0_72] : memref<32x32xf32, #tpu.memory_space<vmem>>, vector<8x32xf32>
    %cst_73 = arith.constant dense<0.000000e+00> : vector<8x32xf32>
    %156 = tpu.matmul %154, %155, %cst_73 {dimension_numbers = #tpu.dot_dimension_numbers<[1], [0], [0], [1], [0, 0, 1, 1], [], []>} : vector<8x8xf32>, vector<8x32xf32>, vector<8x32xf32> -> vector<8x32xf32>
    %157 = arith.addf %33, %156 : vector<8x32xf32>
    %cst_74 = arith.constant 0.000000e+00 : f32
    %158 = vector.broadcast %cst_74 : f32 to vector<8x8xf32>
    %c0_75 = arith.constant 0 : index
    %c0_76 = arith.constant 0 : index
    %159 = vector.load %arg21[%c0_75, %c0_76] : memref<1x8xf32, #tpu.memory_space<vmem>>, vector<1x8xf32>
    %c0_77 = arith.constant 0 : index
    %c0_78 = arith.constant 0 : index
    %160 = vector.load %arg22[%c0_77, %c0_78] : memref<1x8xf32, #tpu.memory_space<vmem>>, vector<1x8xf32>
    %c0_79 = arith.constant 0 : index
    %c0_80 = arith.constant 0 : index
    %161 = vector.load %arg23[%c0_79, %c0_80] : memref<8x64xf32, #tpu.memory_space<vmem>>, vector<8x64xf32>
    %c0_81 = arith.constant 0 : index
    %c0_82 = arith.constant 0 : index
    %162 = vector.load %arg24[%c0_81, %c0_82] : memref<8x64xf32, #tpu.memory_space<vmem>>, vector<8x64xf32>
    %cst_83 = arith.constant 0.000000e+00 : f32
    %163 = vector.broadcast %cst_83 : f32 to vector<8x64xf32>
    %164 = vector.extract_strided_slice %27 {offsets = [0, 4], sizes = [8, 1], strides = [1, 1]} : vector<8x16xf32> to vector<8x1xf32>
    %165 = vector.broadcast %164 : vector<8x1xf32> to vector<8x8xf32>
    %166 = vector.broadcast %159 : vector<1x8xf32> to vector<8x8xf32>
    %167 = arith.subf %165, %166 : vector<8x8xf32>
    %168 = math.absf %167 : vector<8x8xf32>
    %cst_84 = arith.constant 1.000000e+00 : f32
    %169 = vector.broadcast %cst_84 : f32 to vector<8x8xf32>
    %170 = arith.subf %169, %168 : vector<8x8xf32>
    %cst_85 = arith.constant 0.000000e+00 : f32
    %171 = vector.broadcast %cst_85 : f32 to vector<8x8xf32>
    %172 = arith.maximumf %171, %170 : vector<8x8xf32>
    %173 = vector.extract_strided_slice %32 {offsets = [0, 4], sizes = [8, 1], strides = [1, 1]} : vector<8x16xf32> to vector<8x1xf32>
    %174 = vector.broadcast %173 : vector<8x1xf32> to vector<8x8xf32>
    %175 = vector.broadcast %160 : vector<1x8xf32> to vector<8x8xf32>
    %176 = arith.subf %174, %175 : vector<8x8xf32>
    %177 = math.absf %176 : vector<8x8xf32>
    %cst_86 = arith.constant 1.000000e+00 : f32
    %178 = vector.broadcast %cst_86 : f32 to vector<8x8xf32>
    %179 = arith.subf %178, %177 : vector<8x8xf32>
    %cst_87 = arith.constant 0.000000e+00 : f32
    %180 = vector.broadcast %cst_87 : f32 to vector<8x8xf32>
    %181 = arith.maximumf %180, %179 : vector<8x8xf32>
    %182 = vector.extract_strided_slice %20 {offsets = [0, 4], sizes = [8, 1], strides = [1, 1]} : vector<8x16xf32> to vector<8x1xf32>
    %183 = vector.broadcast %182 : vector<8x1xf32> to vector<8x8xf32>
    %184 = arith.mulf %181, %183 : vector<8x8xf32>
    %cst_88 = arith.constant dense<0.000000e+00> : vector<8x64xf32>
    %185 = tpu.matmul %184, %162, %cst_88 {dimension_numbers = #tpu.dot_dimension_numbers<[1], [0], [0], [1], [0, 0, 1, 1], [], []>} : vector<8x8xf32>, vector<8x64xf32>, vector<8x64xf32> -> vector<8x64xf32>
    %cst_89 = arith.constant dense<0.000000e+00> : vector<8x64xf32>
    %186 = tpu.matmul %172, %161, %cst_89 {dimension_numbers = #tpu.dot_dimension_numbers<[1], [0], [0], [1], [0, 0, 1, 1], [], []>} : vector<8x8xf32>, vector<8x64xf32>, vector<8x64xf32> -> vector<8x64xf32>
    %187 = arith.mulf %185, %186 : vector<8x64xf32>
    %188 = arith.addf %163, %187 : vector<8x64xf32>
    %189 = vector.extract_strided_slice %27 {offsets = [0, 5], sizes = [8, 1], strides = [1, 1]} : vector<8x16xf32> to vector<8x1xf32>
    %190 = vector.broadcast %189 : vector<8x1xf32> to vector<8x8xf32>
    %191 = vector.broadcast %159 : vector<1x8xf32> to vector<8x8xf32>
    %192 = arith.subf %190, %191 : vector<8x8xf32>
    %193 = math.absf %192 : vector<8x8xf32>
    %cst_90 = arith.constant 1.000000e+00 : f32
    %194 = vector.broadcast %cst_90 : f32 to vector<8x8xf32>
    %195 = arith.subf %194, %193 : vector<8x8xf32>
    %cst_91 = arith.constant 0.000000e+00 : f32
    %196 = vector.broadcast %cst_91 : f32 to vector<8x8xf32>
    %197 = arith.maximumf %196, %195 : vector<8x8xf32>
    %198 = vector.extract_strided_slice %32 {offsets = [0, 5], sizes = [8, 1], strides = [1, 1]} : vector<8x16xf32> to vector<8x1xf32>
    %199 = vector.broadcast %198 : vector<8x1xf32> to vector<8x8xf32>
    %200 = vector.broadcast %160 : vector<1x8xf32> to vector<8x8xf32>
    %201 = arith.subf %199, %200 : vector<8x8xf32>
    %202 = math.absf %201 : vector<8x8xf32>
    %cst_92 = arith.constant 1.000000e+00 : f32
    %203 = vector.broadcast %cst_92 : f32 to vector<8x8xf32>
    %204 = arith.subf %203, %202 : vector<8x8xf32>
    %cst_93 = arith.constant 0.000000e+00 : f32
    %205 = vector.broadcast %cst_93 : f32 to vector<8x8xf32>
    %206 = arith.maximumf %205, %204 : vector<8x8xf32>
    %207 = vector.extract_strided_slice %20 {offsets = [0, 5], sizes = [8, 1], strides = [1, 1]} : vector<8x16xf32> to vector<8x1xf32>
    %208 = vector.broadcast %207 : vector<8x1xf32> to vector<8x8xf32>
    %209 = arith.mulf %206, %208 : vector<8x8xf32>
    %cst_94 = arith.constant dense<0.000000e+00> : vector<8x64xf32>
    %210 = tpu.matmul %209, %162, %cst_94 {dimension_numbers = #tpu.dot_dimension_numbers<[1], [0], [0], [1], [0, 0, 1, 1], [], []>} : vector<8x8xf32>, vector<8x64xf32>, vector<8x64xf32> -> vector<8x64xf32>
    %cst_95 = arith.constant dense<0.000000e+00> : vector<8x64xf32>
    %211 = tpu.matmul %197, %161, %cst_95 {dimension_numbers = #tpu.dot_dimension_numbers<[1], [0], [0], [1], [0, 0, 1, 1], [], []>} : vector<8x8xf32>, vector<8x64xf32>, vector<8x64xf32> -> vector<8x64xf32>
    %212 = arith.mulf %210, %211 : vector<8x64xf32>
    %213 = arith.addf %188, %212 : vector<8x64xf32>
    %c0_96 = arith.constant 0 : index
    %c8 = arith.constant 8 : index
    %214 = vector.load %arg30[%c0_96, %c8] : memref<80x32xf32, #tpu.memory_space<vmem>>, vector<64x8xf32>
    %cst_97 = arith.constant dense<0.000000e+00> : vector<8x8xf32>
    %215 = tpu.matmul %213, %214, %cst_97 {dimension_numbers = #tpu.dot_dimension_numbers<[1], [0], [0], [1], [0, 0, 1, 1], [], []>} : vector<8x64xf32>, vector<64x8xf32>, vector<8x8xf32> -> vector<8x8xf32>
    %216 = arith.addf %158, %215 : vector<8x8xf32>
    %c0_98 = arith.constant 0 : index
    %c0_99 = arith.constant 0 : index
    %217 = vector.load %arg25[%c0_98, %c0_99] : memref<1x4xf32, #tpu.memory_space<vmem>>, vector<1x4xf32>
    %c0_100 = arith.constant 0 : index
    %c0_101 = arith.constant 0 : index
    %218 = vector.load %arg26[%c0_100, %c0_101] : memref<1x4xf32, #tpu.memory_space<vmem>>, vector<1x4xf32>
    %c0_102 = arith.constant 0 : index
    %c0_103 = arith.constant 0 : index
    %219 = vector.load %arg27[%c0_102, %c0_103] : memref<4x16xf32, #tpu.memory_space<vmem>>, vector<4x16xf32>
    %c0_104 = arith.constant 0 : index
    %c0_105 = arith.constant 0 : index
    %220 = vector.load %arg28[%c0_104, %c0_105] : memref<4x16xf32, #tpu.memory_space<vmem>>, vector<4x16xf32>
    %cst_106 = arith.constant 0.000000e+00 : f32
    %221 = vector.broadcast %cst_106 : f32 to vector<8x16xf32>
    %222 = vector.extract_strided_slice %27 {offsets = [0, 6], sizes = [8, 1], strides = [1, 1]} : vector<8x16xf32> to vector<8x1xf32>
    %223 = vector.broadcast %222 : vector<8x1xf32> to vector<8x4xf32>
    %224 = vector.broadcast %217 : vector<1x4xf32> to vector<8x4xf32>
    %225 = arith.subf %223, %224 : vector<8x4xf32>
    %226 = math.absf %225 : vector<8x4xf32>
    %cst_107 = arith.constant 1.000000e+00 : f32
    %227 = vector.broadcast %cst_107 : f32 to vector<8x4xf32>
    %228 = arith.subf %227, %226 : vector<8x4xf32>
    %cst_108 = arith.constant 0.000000e+00 : f32
    %229 = vector.broadcast %cst_108 : f32 to vector<8x4xf32>
    %230 = arith.maximumf %229, %228 : vector<8x4xf32>
    %231 = vector.extract_strided_slice %32 {offsets = [0, 6], sizes = [8, 1], strides = [1, 1]} : vector<8x16xf32> to vector<8x1xf32>
    %232 = vector.broadcast %231 : vector<8x1xf32> to vector<8x4xf32>
    %233 = vector.broadcast %218 : vector<1x4xf32> to vector<8x4xf32>
    %234 = arith.subf %232, %233 : vector<8x4xf32>
    %235 = math.absf %234 : vector<8x4xf32>
    %cst_109 = arith.constant 1.000000e+00 : f32
    %236 = vector.broadcast %cst_109 : f32 to vector<8x4xf32>
    %237 = arith.subf %236, %235 : vector<8x4xf32>
    %cst_110 = arith.constant 0.000000e+00 : f32
    %238 = vector.broadcast %cst_110 : f32 to vector<8x4xf32>
    %239 = arith.maximumf %238, %237 : vector<8x4xf32>
    %240 = vector.extract_strided_slice %20 {offsets = [0, 6], sizes = [8, 1], strides = [1, 1]} : vector<8x16xf32> to vector<8x1xf32>
    %241 = vector.broadcast %240 : vector<8x1xf32> to vector<8x4xf32>
    %242 = arith.mulf %239, %241 : vector<8x4xf32>
    %cst_111 = arith.constant dense<0.000000e+00> : vector<8x16xf32>
    %243 = tpu.matmul %242, %220, %cst_111 {dimension_numbers = #tpu.dot_dimension_numbers<[1], [0], [0], [1], [0, 0, 1, 1], [], []>} : vector<8x4xf32>, vector<4x16xf32>, vector<8x16xf32> -> vector<8x16xf32>
    %cst_112 = arith.constant dense<0.000000e+00> : vector<8x16xf32>
    %244 = tpu.matmul %230, %219, %cst_112 {dimension_numbers = #tpu.dot_dimension_numbers<[1], [0], [0], [1], [0, 0, 1, 1], [], []>} : vector<8x4xf32>, vector<4x16xf32>, vector<8x16xf32> -> vector<8x16xf32>
    %245 = arith.mulf %243, %244 : vector<8x16xf32>
    %246 = arith.addf %221, %245 : vector<8x16xf32>
    %247 = vector.extract_strided_slice %27 {offsets = [0, 7], sizes = [8, 1], strides = [1, 1]} : vector<8x16xf32> to vector<8x1xf32>
    %248 = vector.broadcast %247 : vector<8x1xf32> to vector<8x4xf32>
    %249 = vector.broadcast %217 : vector<1x4xf32> to vector<8x4xf32>
    %250 = arith.subf %248, %249 : vector<8x4xf32>
    %251 = math.absf %250 : vector<8x4xf32>
    %cst_113 = arith.constant 1.000000e+00 : f32
    %252 = vector.broadcast %cst_113 : f32 to vector<8x4xf32>
    %253 = arith.subf %252, %251 : vector<8x4xf32>
    %cst_114 = arith.constant 0.000000e+00 : f32
    %254 = vector.broadcast %cst_114 : f32 to vector<8x4xf32>
    %255 = arith.maximumf %254, %253 : vector<8x4xf32>
    %256 = vector.extract_strided_slice %32 {offsets = [0, 7], sizes = [8, 1], strides = [1, 1]} : vector<8x16xf32> to vector<8x1xf32>
    %257 = vector.broadcast %256 : vector<8x1xf32> to vector<8x4xf32>
    %258 = vector.broadcast %218 : vector<1x4xf32> to vector<8x4xf32>
    %259 = arith.subf %257, %258 : vector<8x4xf32>
    %260 = math.absf %259 : vector<8x4xf32>
    %cst_115 = arith.constant 1.000000e+00 : f32
    %261 = vector.broadcast %cst_115 : f32 to vector<8x4xf32>
    %262 = arith.subf %261, %260 : vector<8x4xf32>
    %cst_116 = arith.constant 0.000000e+00 : f32
    %263 = vector.broadcast %cst_116 : f32 to vector<8x4xf32>
    %264 = arith.maximumf %263, %262 : vector<8x4xf32>
    %265 = vector.extract_strided_slice %20 {offsets = [0, 7], sizes = [8, 1], strides = [1, 1]} : vector<8x16xf32> to vector<8x1xf32>
    %266 = vector.broadcast %265 : vector<8x1xf32> to vector<8x4xf32>
    %267 = arith.mulf %264, %266 : vector<8x4xf32>
    %cst_117 = arith.constant dense<0.000000e+00> : vector<8x16xf32>
    %268 = tpu.matmul %267, %220, %cst_117 {dimension_numbers = #tpu.dot_dimension_numbers<[1], [0], [0], [1], [0, 0, 1, 1], [], []>} : vector<8x4xf32>, vector<4x16xf32>, vector<8x16xf32> -> vector<8x16xf32>
    %cst_118 = arith.constant dense<0.000000e+00> : vector<8x16xf32>
    %269 = tpu.matmul %255, %219, %cst_118 {dimension_numbers = #tpu.dot_dimension_numbers<[1], [0], [0], [1], [0, 0, 1, 1], [], []>} : vector<8x4xf32>, vector<4x16xf32>, vector<8x16xf32> -> vector<8x16xf32>
    %270 = arith.mulf %268, %269 : vector<8x16xf32>
    %271 = arith.addf %246, %270 : vector<8x16xf32>
    %c64_119 = arith.constant 64 : index
    %c8_120 = arith.constant 8 : index
    %272 = vector.load %arg30[%c64_119, %c8_120] : memref<80x32xf32, #tpu.memory_space<vmem>>, vector<16x8xf32>
    %cst_121 = arith.constant dense<0.000000e+00> : vector<8x8xf32>
    %273 = tpu.matmul %271, %272, %cst_121 {dimension_numbers = #tpu.dot_dimension_numbers<[1], [0], [0], [1], [0, 0, 1, 1], [], []>} : vector<8x16xf32>, vector<16x8xf32>, vector<8x8xf32> -> vector<8x8xf32>
    %274 = arith.addf %216, %273 : vector<8x8xf32>
    %275 = vector.extract_strided_slice %22 {offsets = [0, 1], sizes = [8, 1], strides = [1, 1]} : vector<8x4xf32> to vector<8x1xf32>
    %276 = tpu.reciprocal %275 : vector<8x1xf32> -> vector<8x1xf32>
    %277 = vector.broadcast %276 : vector<8x1xf32> to vector<8x8xf32>
    %278 = arith.mulf %274, %277 : vector<8x8xf32>
    %c8_122 = arith.constant 8 : index
    %c0_123 = arith.constant 0 : index
    %279 = vector.load %arg12[%c8_122, %c0_123] : memref<32x32xf32, #tpu.memory_space<vmem>>, vector<8x32xf32>
    %cst_124 = arith.constant dense<0.000000e+00> : vector<8x32xf32>
    %280 = tpu.matmul %278, %279, %cst_124 {dimension_numbers = #tpu.dot_dimension_numbers<[1], [0], [0], [1], [0, 0, 1, 1], [], []>} : vector<8x8xf32>, vector<8x32xf32>, vector<8x32xf32> -> vector<8x32xf32>
    %281 = arith.addf %157, %280 : vector<8x32xf32>
    %cst_125 = arith.constant 0.000000e+00 : f32
    %282 = vector.broadcast %cst_125 : f32 to vector<8x8xf32>
    %c0_126 = arith.constant 0 : index
    %c0_127 = arith.constant 0 : index
    %283 = vector.load %arg21[%c0_126, %c0_127] : memref<1x8xf32, #tpu.memory_space<vmem>>, vector<1x8xf32>
    %c0_128 = arith.constant 0 : index
    %c0_129 = arith.constant 0 : index
    %284 = vector.load %arg22[%c0_128, %c0_129] : memref<1x8xf32, #tpu.memory_space<vmem>>, vector<1x8xf32>
    %c0_130 = arith.constant 0 : index
    %c0_131 = arith.constant 0 : index
    %285 = vector.load %arg23[%c0_130, %c0_131] : memref<8x64xf32, #tpu.memory_space<vmem>>, vector<8x64xf32>
    %c0_132 = arith.constant 0 : index
    %c0_133 = arith.constant 0 : index
    %286 = vector.load %arg24[%c0_132, %c0_133] : memref<8x64xf32, #tpu.memory_space<vmem>>, vector<8x64xf32>
    %cst_134 = arith.constant 0.000000e+00 : f32
    %287 = vector.broadcast %cst_134 : f32 to vector<8x64xf32>
    %288 = vector.extract_strided_slice %27 {offsets = [0, 8], sizes = [8, 1], strides = [1, 1]} : vector<8x16xf32> to vector<8x1xf32>
    %289 = vector.broadcast %288 : vector<8x1xf32> to vector<8x8xf32>
    %290 = vector.broadcast %283 : vector<1x8xf32> to vector<8x8xf32>
    %291 = arith.subf %289, %290 : vector<8x8xf32>
    %292 = math.absf %291 : vector<8x8xf32>
    %cst_135 = arith.constant 1.000000e+00 : f32
    %293 = vector.broadcast %cst_135 : f32 to vector<8x8xf32>
    %294 = arith.subf %293, %292 : vector<8x8xf32>
    %cst_136 = arith.constant 0.000000e+00 : f32
    %295 = vector.broadcast %cst_136 : f32 to vector<8x8xf32>
    %296 = arith.maximumf %295, %294 : vector<8x8xf32>
    %297 = vector.extract_strided_slice %32 {offsets = [0, 8], sizes = [8, 1], strides = [1, 1]} : vector<8x16xf32> to vector<8x1xf32>
    %298 = vector.broadcast %297 : vector<8x1xf32> to vector<8x8xf32>
    %299 = vector.broadcast %284 : vector<1x8xf32> to vector<8x8xf32>
    %300 = arith.subf %298, %299 : vector<8x8xf32>
    %301 = math.absf %300 : vector<8x8xf32>
    %cst_137 = arith.constant 1.000000e+00 : f32
    %302 = vector.broadcast %cst_137 : f32 to vector<8x8xf32>
    %303 = arith.subf %302, %301 : vector<8x8xf32>
    %cst_138 = arith.constant 0.000000e+00 : f32
    %304 = vector.broadcast %cst_138 : f32 to vector<8x8xf32>
    %305 = arith.maximumf %304, %303 : vector<8x8xf32>
    %306 = vector.extract_strided_slice %20 {offsets = [0, 8], sizes = [8, 1], strides = [1, 1]} : vector<8x16xf32> to vector<8x1xf32>
    %307 = vector.broadcast %306 : vector<8x1xf32> to vector<8x8xf32>
    %308 = arith.mulf %305, %307 : vector<8x8xf32>
    %cst_139 = arith.constant dense<0.000000e+00> : vector<8x64xf32>
    %309 = tpu.matmul %308, %286, %cst_139 {dimension_numbers = #tpu.dot_dimension_numbers<[1], [0], [0], [1], [0, 0, 1, 1], [], []>} : vector<8x8xf32>, vector<8x64xf32>, vector<8x64xf32> -> vector<8x64xf32>
    %cst_140 = arith.constant dense<0.000000e+00> : vector<8x64xf32>
    %310 = tpu.matmul %296, %285, %cst_140 {dimension_numbers = #tpu.dot_dimension_numbers<[1], [0], [0], [1], [0, 0, 1, 1], [], []>} : vector<8x8xf32>, vector<8x64xf32>, vector<8x64xf32> -> vector<8x64xf32>
    %311 = arith.mulf %309, %310 : vector<8x64xf32>
    %312 = arith.addf %287, %311 : vector<8x64xf32>
    %313 = vector.extract_strided_slice %27 {offsets = [0, 9], sizes = [8, 1], strides = [1, 1]} : vector<8x16xf32> to vector<8x1xf32>
    %314 = vector.broadcast %313 : vector<8x1xf32> to vector<8x8xf32>
    %315 = vector.broadcast %283 : vector<1x8xf32> to vector<8x8xf32>
    %316 = arith.subf %314, %315 : vector<8x8xf32>
    %317 = math.absf %316 : vector<8x8xf32>
    %cst_141 = arith.constant 1.000000e+00 : f32
    %318 = vector.broadcast %cst_141 : f32 to vector<8x8xf32>
    %319 = arith.subf %318, %317 : vector<8x8xf32>
    %cst_142 = arith.constant 0.000000e+00 : f32
    %320 = vector.broadcast %cst_142 : f32 to vector<8x8xf32>
    %321 = arith.maximumf %320, %319 : vector<8x8xf32>
    %322 = vector.extract_strided_slice %32 {offsets = [0, 9], sizes = [8, 1], strides = [1, 1]} : vector<8x16xf32> to vector<8x1xf32>
    %323 = vector.broadcast %322 : vector<8x1xf32> to vector<8x8xf32>
    %324 = vector.broadcast %284 : vector<1x8xf32> to vector<8x8xf32>
    %325 = arith.subf %323, %324 : vector<8x8xf32>
    %326 = math.absf %325 : vector<8x8xf32>
    %cst_143 = arith.constant 1.000000e+00 : f32
    %327 = vector.broadcast %cst_143 : f32 to vector<8x8xf32>
    %328 = arith.subf %327, %326 : vector<8x8xf32>
    %cst_144 = arith.constant 0.000000e+00 : f32
    %329 = vector.broadcast %cst_144 : f32 to vector<8x8xf32>
    %330 = arith.maximumf %329, %328 : vector<8x8xf32>
    %331 = vector.extract_strided_slice %20 {offsets = [0, 9], sizes = [8, 1], strides = [1, 1]} : vector<8x16xf32> to vector<8x1xf32>
    %332 = vector.broadcast %331 : vector<8x1xf32> to vector<8x8xf32>
    %333 = arith.mulf %330, %332 : vector<8x8xf32>
    %cst_145 = arith.constant dense<0.000000e+00> : vector<8x64xf32>
    %334 = tpu.matmul %333, %286, %cst_145 {dimension_numbers = #tpu.dot_dimension_numbers<[1], [0], [0], [1], [0, 0, 1, 1], [], []>} : vector<8x8xf32>, vector<8x64xf32>, vector<8x64xf32> -> vector<8x64xf32>
    %cst_146 = arith.constant dense<0.000000e+00> : vector<8x64xf32>
    %335 = tpu.matmul %321, %285, %cst_146 {dimension_numbers = #tpu.dot_dimension_numbers<[1], [0], [0], [1], [0, 0, 1, 1], [], []>} : vector<8x8xf32>, vector<8x64xf32>, vector<8x64xf32> -> vector<8x64xf32>
    %336 = arith.mulf %334, %335 : vector<8x64xf32>
    %337 = arith.addf %312, %336 : vector<8x64xf32>
    %c0_147 = arith.constant 0 : index
    %c16 = arith.constant 16 : index
    %338 = vector.load %arg30[%c0_147, %c16] : memref<80x32xf32, #tpu.memory_space<vmem>>, vector<64x8xf32>
    %cst_148 = arith.constant dense<0.000000e+00> : vector<8x8xf32>
    %339 = tpu.matmul %337, %338, %cst_148 {dimension_numbers = #tpu.dot_dimension_numbers<[1], [0], [0], [1], [0, 0, 1, 1], [], []>} : vector<8x64xf32>, vector<64x8xf32>, vector<8x8xf32> -> vector<8x8xf32>
    %340 = arith.addf %282, %339 : vector<8x8xf32>
    %c0_149 = arith.constant 0 : index
    %c0_150 = arith.constant 0 : index
    %341 = vector.load %arg25[%c0_149, %c0_150] : memref<1x4xf32, #tpu.memory_space<vmem>>, vector<1x4xf32>
    %c0_151 = arith.constant 0 : index
    %c0_152 = arith.constant 0 : index
    %342 = vector.load %arg26[%c0_151, %c0_152] : memref<1x4xf32, #tpu.memory_space<vmem>>, vector<1x4xf32>
    %c0_153 = arith.constant 0 : index
    %c0_154 = arith.constant 0 : index
    %343 = vector.load %arg27[%c0_153, %c0_154] : memref<4x16xf32, #tpu.memory_space<vmem>>, vector<4x16xf32>
    %c0_155 = arith.constant 0 : index
    %c0_156 = arith.constant 0 : index
    %344 = vector.load %arg28[%c0_155, %c0_156] : memref<4x16xf32, #tpu.memory_space<vmem>>, vector<4x16xf32>
    %cst_157 = arith.constant 0.000000e+00 : f32
    %345 = vector.broadcast %cst_157 : f32 to vector<8x16xf32>
    %346 = vector.extract_strided_slice %27 {offsets = [0, 10], sizes = [8, 1], strides = [1, 1]} : vector<8x16xf32> to vector<8x1xf32>
    %347 = vector.broadcast %346 : vector<8x1xf32> to vector<8x4xf32>
    %348 = vector.broadcast %341 : vector<1x4xf32> to vector<8x4xf32>
    %349 = arith.subf %347, %348 : vector<8x4xf32>
    %350 = math.absf %349 : vector<8x4xf32>
    %cst_158 = arith.constant 1.000000e+00 : f32
    %351 = vector.broadcast %cst_158 : f32 to vector<8x4xf32>
    %352 = arith.subf %351, %350 : vector<8x4xf32>
    %cst_159 = arith.constant 0.000000e+00 : f32
    %353 = vector.broadcast %cst_159 : f32 to vector<8x4xf32>
    %354 = arith.maximumf %353, %352 : vector<8x4xf32>
    %355 = vector.extract_strided_slice %32 {offsets = [0, 10], sizes = [8, 1], strides = [1, 1]} : vector<8x16xf32> to vector<8x1xf32>
    %356 = vector.broadcast %355 : vector<8x1xf32> to vector<8x4xf32>
    %357 = vector.broadcast %342 : vector<1x4xf32> to vector<8x4xf32>
    %358 = arith.subf %356, %357 : vector<8x4xf32>
    %359 = math.absf %358 : vector<8x4xf32>
    %cst_160 = arith.constant 1.000000e+00 : f32
    %360 = vector.broadcast %cst_160 : f32 to vector<8x4xf32>
    %361 = arith.subf %360, %359 : vector<8x4xf32>
    %cst_161 = arith.constant 0.000000e+00 : f32
    %362 = vector.broadcast %cst_161 : f32 to vector<8x4xf32>
    %363 = arith.maximumf %362, %361 : vector<8x4xf32>
    %364 = vector.extract_strided_slice %20 {offsets = [0, 10], sizes = [8, 1], strides = [1, 1]} : vector<8x16xf32> to vector<8x1xf32>
    %365 = vector.broadcast %364 : vector<8x1xf32> to vector<8x4xf32>
    %366 = arith.mulf %363, %365 : vector<8x4xf32>
    %cst_162 = arith.constant dense<0.000000e+00> : vector<8x16xf32>
    %367 = tpu.matmul %366, %344, %cst_162 {dimension_numbers = #tpu.dot_dimension_numbers<[1], [0], [0], [1], [0, 0, 1, 1], [], []>} : vector<8x4xf32>, vector<4x16xf32>, vector<8x16xf32> -> vector<8x16xf32>
    %cst_163 = arith.constant dense<0.000000e+00> : vector<8x16xf32>
    %368 = tpu.matmul %354, %343, %cst_163 {dimension_numbers = #tpu.dot_dimension_numbers<[1], [0], [0], [1], [0, 0, 1, 1], [], []>} : vector<8x4xf32>, vector<4x16xf32>, vector<8x16xf32> -> vector<8x16xf32>
    %369 = arith.mulf %367, %368 : vector<8x16xf32>
    %370 = arith.addf %345, %369 : vector<8x16xf32>
    %371 = vector.extract_strided_slice %27 {offsets = [0, 11], sizes = [8, 1], strides = [1, 1]} : vector<8x16xf32> to vector<8x1xf32>
    %372 = vector.broadcast %371 : vector<8x1xf32> to vector<8x4xf32>
    %373 = vector.broadcast %341 : vector<1x4xf32> to vector<8x4xf32>
    %374 = arith.subf %372, %373 : vector<8x4xf32>
    %375 = math.absf %374 : vector<8x4xf32>
    %cst_164 = arith.constant 1.000000e+00 : f32
    %376 = vector.broadcast %cst_164 : f32 to vector<8x4xf32>
    %377 = arith.subf %376, %375 : vector<8x4xf32>
    %cst_165 = arith.constant 0.000000e+00 : f32
    %378 = vector.broadcast %cst_165 : f32 to vector<8x4xf32>
    %379 = arith.maximumf %378, %377 : vector<8x4xf32>
    %380 = vector.extract_strided_slice %32 {offsets = [0, 11], sizes = [8, 1], strides = [1, 1]} : vector<8x16xf32> to vector<8x1xf32>
    %381 = vector.broadcast %380 : vector<8x1xf32> to vector<8x4xf32>
    %382 = vector.broadcast %342 : vector<1x4xf32> to vector<8x4xf32>
    %383 = arith.subf %381, %382 : vector<8x4xf32>
    %384 = math.absf %383 : vector<8x4xf32>
    %cst_166 = arith.constant 1.000000e+00 : f32
    %385 = vector.broadcast %cst_166 : f32 to vector<8x4xf32>
    %386 = arith.subf %385, %384 : vector<8x4xf32>
    %cst_167 = arith.constant 0.000000e+00 : f32
    %387 = vector.broadcast %cst_167 : f32 to vector<8x4xf32>
    %388 = arith.maximumf %387, %386 : vector<8x4xf32>
    %389 = vector.extract_strided_slice %20 {offsets = [0, 11], sizes = [8, 1], strides = [1, 1]} : vector<8x16xf32> to vector<8x1xf32>
    %390 = vector.broadcast %389 : vector<8x1xf32> to vector<8x4xf32>
    %391 = arith.mulf %388, %390 : vector<8x4xf32>
    %cst_168 = arith.constant dense<0.000000e+00> : vector<8x16xf32>
    %392 = tpu.matmul %391, %344, %cst_168 {dimension_numbers = #tpu.dot_dimension_numbers<[1], [0], [0], [1], [0, 0, 1, 1], [], []>} : vector<8x4xf32>, vector<4x16xf32>, vector<8x16xf32> -> vector<8x16xf32>
    %cst_169 = arith.constant dense<0.000000e+00> : vector<8x16xf32>
    %393 = tpu.matmul %379, %343, %cst_169 {dimension_numbers = #tpu.dot_dimension_numbers<[1], [0], [0], [1], [0, 0, 1, 1], [], []>} : vector<8x4xf32>, vector<4x16xf32>, vector<8x16xf32> -> vector<8x16xf32>
    %394 = arith.mulf %392, %393 : vector<8x16xf32>
    %395 = arith.addf %370, %394 : vector<8x16xf32>
    %c64_170 = arith.constant 64 : index
    %c16_171 = arith.constant 16 : index
    %396 = vector.load %arg30[%c64_170, %c16_171] : memref<80x32xf32, #tpu.memory_space<vmem>>, vector<16x8xf32>
    %cst_172 = arith.constant dense<0.000000e+00> : vector<8x8xf32>
    %397 = tpu.matmul %395, %396, %cst_172 {dimension_numbers = #tpu.dot_dimension_numbers<[1], [0], [0], [1], [0, 0, 1, 1], [], []>} : vector<8x16xf32>, vector<16x8xf32>, vector<8x8xf32> -> vector<8x8xf32>
    %398 = arith.addf %340, %397 : vector<8x8xf32>
    %399 = vector.extract_strided_slice %22 {offsets = [0, 2], sizes = [8, 1], strides = [1, 1]} : vector<8x4xf32> to vector<8x1xf32>
    %400 = tpu.reciprocal %399 : vector<8x1xf32> -> vector<8x1xf32>
    %401 = vector.broadcast %400 : vector<8x1xf32> to vector<8x8xf32>
    %402 = arith.mulf %398, %401 : vector<8x8xf32>
    %c16_173 = arith.constant 16 : index
    %c0_174 = arith.constant 0 : index
    %403 = vector.load %arg12[%c16_173, %c0_174] : memref<32x32xf32, #tpu.memory_space<vmem>>, vector<8x32xf32>
    %cst_175 = arith.constant dense<0.000000e+00> : vector<8x32xf32>
    %404 = tpu.matmul %402, %403, %cst_175 {dimension_numbers = #tpu.dot_dimension_numbers<[1], [0], [0], [1], [0, 0, 1, 1], [], []>} : vector<8x8xf32>, vector<8x32xf32>, vector<8x32xf32> -> vector<8x32xf32>
    %405 = arith.addf %281, %404 : vector<8x32xf32>
    %cst_176 = arith.constant 0.000000e+00 : f32
    %406 = vector.broadcast %cst_176 : f32 to vector<8x8xf32>
    %c0_177 = arith.constant 0 : index
    %c0_178 = arith.constant 0 : index
    %407 = vector.load %arg21[%c0_177, %c0_178] : memref<1x8xf32, #tpu.memory_space<vmem>>, vector<1x8xf32>
    %c0_179 = arith.constant 0 : index
    %c0_180 = arith.constant 0 : index
    %408 = vector.load %arg22[%c0_179, %c0_180] : memref<1x8xf32, #tpu.memory_space<vmem>>, vector<1x8xf32>
    %c0_181 = arith.constant 0 : index
    %c0_182 = arith.constant 0 : index
    %409 = vector.load %arg23[%c0_181, %c0_182] : memref<8x64xf32, #tpu.memory_space<vmem>>, vector<8x64xf32>
    %c0_183 = arith.constant 0 : index
    %c0_184 = arith.constant 0 : index
    %410 = vector.load %arg24[%c0_183, %c0_184] : memref<8x64xf32, #tpu.memory_space<vmem>>, vector<8x64xf32>
    %cst_185 = arith.constant 0.000000e+00 : f32
    %411 = vector.broadcast %cst_185 : f32 to vector<8x64xf32>
    %412 = vector.extract_strided_slice %27 {offsets = [0, 12], sizes = [8, 1], strides = [1, 1]} : vector<8x16xf32> to vector<8x1xf32>
    %413 = vector.broadcast %412 : vector<8x1xf32> to vector<8x8xf32>
    %414 = vector.broadcast %407 : vector<1x8xf32> to vector<8x8xf32>
    %415 = arith.subf %413, %414 : vector<8x8xf32>
    %416 = math.absf %415 : vector<8x8xf32>
    %cst_186 = arith.constant 1.000000e+00 : f32
    %417 = vector.broadcast %cst_186 : f32 to vector<8x8xf32>
    %418 = arith.subf %417, %416 : vector<8x8xf32>
    %cst_187 = arith.constant 0.000000e+00 : f32
    %419 = vector.broadcast %cst_187 : f32 to vector<8x8xf32>
    %420 = arith.maximumf %419, %418 : vector<8x8xf32>
    %421 = vector.extract_strided_slice %32 {offsets = [0, 12], sizes = [8, 1], strides = [1, 1]} : vector<8x16xf32> to vector<8x1xf32>
    %422 = vector.broadcast %421 : vector<8x1xf32> to vector<8x8xf32>
    %423 = vector.broadcast %408 : vector<1x8xf32> to vector<8x8xf32>
    %424 = arith.subf %422, %423 : vector<8x8xf32>
    %425 = math.absf %424 : vector<8x8xf32>
    %cst_188 = arith.constant 1.000000e+00 : f32
    %426 = vector.broadcast %cst_188 : f32 to vector<8x8xf32>
    %427 = arith.subf %426, %425 : vector<8x8xf32>
    %cst_189 = arith.constant 0.000000e+00 : f32
    %428 = vector.broadcast %cst_189 : f32 to vector<8x8xf32>
    %429 = arith.maximumf %428, %427 : vector<8x8xf32>
    %430 = vector.extract_strided_slice %20 {offsets = [0, 12], sizes = [8, 1], strides = [1, 1]} : vector<8x16xf32> to vector<8x1xf32>
    %431 = vector.broadcast %430 : vector<8x1xf32> to vector<8x8xf32>
    %432 = arith.mulf %429, %431 : vector<8x8xf32>
    %cst_190 = arith.constant dense<0.000000e+00> : vector<8x64xf32>
    %433 = tpu.matmul %432, %410, %cst_190 {dimension_numbers = #tpu.dot_dimension_numbers<[1], [0], [0], [1], [0, 0, 1, 1], [], []>} : vector<8x8xf32>, vector<8x64xf32>, vector<8x64xf32> -> vector<8x64xf32>
    %cst_191 = arith.constant dense<0.000000e+00> : vector<8x64xf32>
    %434 = tpu.matmul %420, %409, %cst_191 {dimension_numbers = #tpu.dot_dimension_numbers<[1], [0], [0], [1], [0, 0, 1, 1], [], []>} : vector<8x8xf32>, vector<8x64xf32>, vector<8x64xf32> -> vector<8x64xf32>
    %435 = arith.mulf %433, %434 : vector<8x64xf32>
    %436 = arith.addf %411, %435 : vector<8x64xf32>
    %437 = vector.extract_strided_slice %27 {offsets = [0, 13], sizes = [8, 1], strides = [1, 1]} : vector<8x16xf32> to vector<8x1xf32>
    %438 = vector.broadcast %437 : vector<8x1xf32> to vector<8x8xf32>
    %439 = vector.broadcast %407 : vector<1x8xf32> to vector<8x8xf32>
    %440 = arith.subf %438, %439 : vector<8x8xf32>
    %441 = math.absf %440 : vector<8x8xf32>
    %cst_192 = arith.constant 1.000000e+00 : f32
    %442 = vector.broadcast %cst_192 : f32 to vector<8x8xf32>
    %443 = arith.subf %442, %441 : vector<8x8xf32>
    %cst_193 = arith.constant 0.000000e+00 : f32
    %444 = vector.broadcast %cst_193 : f32 to vector<8x8xf32>
    %445 = arith.maximumf %444, %443 : vector<8x8xf32>
    %446 = vector.extract_strided_slice %32 {offsets = [0, 13], sizes = [8, 1], strides = [1, 1]} : vector<8x16xf32> to vector<8x1xf32>
    %447 = vector.broadcast %446 : vector<8x1xf32> to vector<8x8xf32>
    %448 = vector.broadcast %408 : vector<1x8xf32> to vector<8x8xf32>
    %449 = arith.subf %447, %448 : vector<8x8xf32>
    %450 = math.absf %449 : vector<8x8xf32>
    %cst_194 = arith.constant 1.000000e+00 : f32
    %451 = vector.broadcast %cst_194 : f32 to vector<8x8xf32>
    %452 = arith.subf %451, %450 : vector<8x8xf32>
    %cst_195 = arith.constant 0.000000e+00 : f32
    %453 = vector.broadcast %cst_195 : f32 to vector<8x8xf32>
    %454 = arith.maximumf %453, %452 : vector<8x8xf32>
    %455 = vector.extract_strided_slice %20 {offsets = [0, 13], sizes = [8, 1], strides = [1, 1]} : vector<8x16xf32> to vector<8x1xf32>
    %456 = vector.broadcast %455 : vector<8x1xf32> to vector<8x8xf32>
    %457 = arith.mulf %454, %456 : vector<8x8xf32>
    %cst_196 = arith.constant dense<0.000000e+00> : vector<8x64xf32>
    %458 = tpu.matmul %457, %410, %cst_196 {dimension_numbers = #tpu.dot_dimension_numbers<[1], [0], [0], [1], [0, 0, 1, 1], [], []>} : vector<8x8xf32>, vector<8x64xf32>, vector<8x64xf32> -> vector<8x64xf32>
    %cst_197 = arith.constant dense<0.000000e+00> : vector<8x64xf32>
    %459 = tpu.matmul %445, %409, %cst_197 {dimension_numbers = #tpu.dot_dimension_numbers<[1], [0], [0], [1], [0, 0, 1, 1], [], []>} : vector<8x8xf32>, vector<8x64xf32>, vector<8x64xf32> -> vector<8x64xf32>
    %460 = arith.mulf %458, %459 : vector<8x64xf32>
    %461 = arith.addf %436, %460 : vector<8x64xf32>
    %c0_198 = arith.constant 0 : index
    %c24 = arith.constant 24 : index
    %462 = vector.load %arg30[%c0_198, %c24] : memref<80x32xf32, #tpu.memory_space<vmem>>, vector<64x8xf32>
    %cst_199 = arith.constant dense<0.000000e+00> : vector<8x8xf32>
    %463 = tpu.matmul %461, %462, %cst_199 {dimension_numbers = #tpu.dot_dimension_numbers<[1], [0], [0], [1], [0, 0, 1, 1], [], []>} : vector<8x64xf32>, vector<64x8xf32>, vector<8x8xf32> -> vector<8x8xf32>
    %464 = arith.addf %406, %463 : vector<8x8xf32>
    %c0_200 = arith.constant 0 : index
    %c0_201 = arith.constant 0 : index
    %465 = vector.load %arg25[%c0_200, %c0_201] : memref<1x4xf32, #tpu.memory_space<vmem>>, vector<1x4xf32>
    %c0_202 = arith.constant 0 : index
    %c0_203 = arith.constant 0 : index
    %466 = vector.load %arg26[%c0_202, %c0_203] : memref<1x4xf32, #tpu.memory_space<vmem>>, vector<1x4xf32>
    %c0_204 = arith.constant 0 : index
    %c0_205 = arith.constant 0 : index
    %467 = vector.load %arg27[%c0_204, %c0_205] : memref<4x16xf32, #tpu.memory_space<vmem>>, vector<4x16xf32>
    %c0_206 = arith.constant 0 : index
    %c0_207 = arith.constant 0 : index
    %468 = vector.load %arg28[%c0_206, %c0_207] : memref<4x16xf32, #tpu.memory_space<vmem>>, vector<4x16xf32>
    %cst_208 = arith.constant 0.000000e+00 : f32
    %469 = vector.broadcast %cst_208 : f32 to vector<8x16xf32>
    %470 = vector.extract_strided_slice %27 {offsets = [0, 14], sizes = [8, 1], strides = [1, 1]} : vector<8x16xf32> to vector<8x1xf32>
    %471 = vector.broadcast %470 : vector<8x1xf32> to vector<8x4xf32>
    %472 = vector.broadcast %465 : vector<1x4xf32> to vector<8x4xf32>
    %473 = arith.subf %471, %472 : vector<8x4xf32>
    %474 = math.absf %473 : vector<8x4xf32>
    %cst_209 = arith.constant 1.000000e+00 : f32
    %475 = vector.broadcast %cst_209 : f32 to vector<8x4xf32>
    %476 = arith.subf %475, %474 : vector<8x4xf32>
    %cst_210 = arith.constant 0.000000e+00 : f32
    %477 = vector.broadcast %cst_210 : f32 to vector<8x4xf32>
    %478 = arith.maximumf %477, %476 : vector<8x4xf32>
    %479 = vector.extract_strided_slice %32 {offsets = [0, 14], sizes = [8, 1], strides = [1, 1]} : vector<8x16xf32> to vector<8x1xf32>
    %480 = vector.broadcast %479 : vector<8x1xf32> to vector<8x4xf32>
    %481 = vector.broadcast %466 : vector<1x4xf32> to vector<8x4xf32>
    %482 = arith.subf %480, %481 : vector<8x4xf32>
    %483 = math.absf %482 : vector<8x4xf32>
    %cst_211 = arith.constant 1.000000e+00 : f32
    %484 = vector.broadcast %cst_211 : f32 to vector<8x4xf32>
    %485 = arith.subf %484, %483 : vector<8x4xf32>
    %cst_212 = arith.constant 0.000000e+00 : f32
    %486 = vector.broadcast %cst_212 : f32 to vector<8x4xf32>
    %487 = arith.maximumf %486, %485 : vector<8x4xf32>
    %488 = vector.extract_strided_slice %20 {offsets = [0, 14], sizes = [8, 1], strides = [1, 1]} : vector<8x16xf32> to vector<8x1xf32>
    %489 = vector.broadcast %488 : vector<8x1xf32> to vector<8x4xf32>
    %490 = arith.mulf %487, %489 : vector<8x4xf32>
    %cst_213 = arith.constant dense<0.000000e+00> : vector<8x16xf32>
    %491 = tpu.matmul %490, %468, %cst_213 {dimension_numbers = #tpu.dot_dimension_numbers<[1], [0], [0], [1], [0, 0, 1, 1], [], []>} : vector<8x4xf32>, vector<4x16xf32>, vector<8x16xf32> -> vector<8x16xf32>
    %cst_214 = arith.constant dense<0.000000e+00> : vector<8x16xf32>
    %492 = tpu.matmul %478, %467, %cst_214 {dimension_numbers = #tpu.dot_dimension_numbers<[1], [0], [0], [1], [0, 0, 1, 1], [], []>} : vector<8x4xf32>, vector<4x16xf32>, vector<8x16xf32> -> vector<8x16xf32>
    %493 = arith.mulf %491, %492 : vector<8x16xf32>
    %494 = arith.addf %469, %493 : vector<8x16xf32>
    %495 = vector.extract_strided_slice %27 {offsets = [0, 15], sizes = [8, 1], strides = [1, 1]} : vector<8x16xf32> to vector<8x1xf32>
    %496 = vector.broadcast %495 : vector<8x1xf32> to vector<8x4xf32>
    %497 = vector.broadcast %465 : vector<1x4xf32> to vector<8x4xf32>
    %498 = arith.subf %496, %497 : vector<8x4xf32>
    %499 = math.absf %498 : vector<8x4xf32>
    %cst_215 = arith.constant 1.000000e+00 : f32
    %500 = vector.broadcast %cst_215 : f32 to vector<8x4xf32>
    %501 = arith.subf %500, %499 : vector<8x4xf32>
    %cst_216 = arith.constant 0.000000e+00 : f32
    %502 = vector.broadcast %cst_216 : f32 to vector<8x4xf32>
    %503 = arith.maximumf %502, %501 : vector<8x4xf32>
    %504 = vector.extract_strided_slice %32 {offsets = [0, 15], sizes = [8, 1], strides = [1, 1]} : vector<8x16xf32> to vector<8x1xf32>
    %505 = vector.broadcast %504 : vector<8x1xf32> to vector<8x4xf32>
    %506 = vector.broadcast %466 : vector<1x4xf32> to vector<8x4xf32>
    %507 = arith.subf %505, %506 : vector<8x4xf32>
    %508 = math.absf %507 : vector<8x4xf32>
    %cst_217 = arith.constant 1.000000e+00 : f32
    %509 = vector.broadcast %cst_217 : f32 to vector<8x4xf32>
    %510 = arith.subf %509, %508 : vector<8x4xf32>
    %cst_218 = arith.constant 0.000000e+00 : f32
    %511 = vector.broadcast %cst_218 : f32 to vector<8x4xf32>
    %512 = arith.maximumf %511, %510 : vector<8x4xf32>
    %513 = vector.extract_strided_slice %20 {offsets = [0, 15], sizes = [8, 1], strides = [1, 1]} : vector<8x16xf32> to vector<8x1xf32>
    %514 = vector.broadcast %513 : vector<8x1xf32> to vector<8x4xf32>
    %515 = arith.mulf %512, %514 : vector<8x4xf32>
    %cst_219 = arith.constant dense<0.000000e+00> : vector<8x16xf32>
    %516 = tpu.matmul %515, %468, %cst_219 {dimension_numbers = #tpu.dot_dimension_numbers<[1], [0], [0], [1], [0, 0, 1, 1], [], []>} : vector<8x4xf32>, vector<4x16xf32>, vector<8x16xf32> -> vector<8x16xf32>
    %cst_220 = arith.constant dense<0.000000e+00> : vector<8x16xf32>
    %517 = tpu.matmul %503, %467, %cst_220 {dimension_numbers = #tpu.dot_dimension_numbers<[1], [0], [0], [1], [0, 0, 1, 1], [], []>} : vector<8x4xf32>, vector<4x16xf32>, vector<8x16xf32> -> vector<8x16xf32>
    %518 = arith.mulf %516, %517 : vector<8x16xf32>
    %519 = arith.addf %494, %518 : vector<8x16xf32>
    %c64_221 = arith.constant 64 : index
    %c24_222 = arith.constant 24 : index
    %520 = vector.load %arg30[%c64_221, %c24_222] : memref<80x32xf32, #tpu.memory_space<vmem>>, vector<16x8xf32>
    %cst_223 = arith.constant dense<0.000000e+00> : vector<8x8xf32>
    %521 = tpu.matmul %519, %520, %cst_223 {dimension_numbers = #tpu.dot_dimension_numbers<[1], [0], [0], [1], [0, 0, 1, 1], [], []>} : vector<8x16xf32>, vector<16x8xf32>, vector<8x8xf32> -> vector<8x8xf32>
    %522 = arith.addf %464, %521 : vector<8x8xf32>
    %523 = vector.extract_strided_slice %22 {offsets = [0, 3], sizes = [8, 1], strides = [1, 1]} : vector<8x4xf32> to vector<8x1xf32>
    %524 = tpu.reciprocal %523 : vector<8x1xf32> -> vector<8x1xf32>
    %525 = vector.broadcast %524 : vector<8x1xf32> to vector<8x8xf32>
    %526 = arith.mulf %522, %525 : vector<8x8xf32>
    %c24_224 = arith.constant 24 : index
    %c0_225 = arith.constant 0 : index
    %527 = vector.load %arg12[%c24_224, %c0_225] : memref<32x32xf32, #tpu.memory_space<vmem>>, vector<8x32xf32>
    %cst_226 = arith.constant dense<0.000000e+00> : vector<8x32xf32>
    %528 = tpu.matmul %526, %527, %cst_226 {dimension_numbers = #tpu.dot_dimension_numbers<[1], [0], [0], [1], [0, 0, 1, 1], [], []>} : vector<8x8xf32>, vector<8x32xf32>, vector<8x32xf32> -> vector<8x32xf32>
    %529 = arith.addf %405, %528 : vector<8x32xf32>
    %c0_227 = arith.constant 0 : index
    %c0_228 = arith.constant 0 : index
    %530 = vector.load %arg13[%c0_227, %c0_228] : memref<1x32xf32, #tpu.memory_space<vmem>>, vector<1x32xf32>
    %531 = vector.broadcast %530 : vector<1x32xf32> to vector<8x32xf32>
    %532 = arith.addf %529, %531 : vector<8x32xf32>
    %c0_229 = arith.constant 0 : index
    %c0_230 = arith.constant 0 : index
    %533 = vector.load %arg14[%c0_229, %c0_230] : memref<1x32xf32, #tpu.memory_space<vmem>>, vector<1x32xf32>
    %c0_231 = arith.constant 0 : index
    %c0_232 = arith.constant 0 : index
    %534 = vector.load %arg15[%c0_231, %c0_232] : memref<1x32xf32, #tpu.memory_space<vmem>>, vector<1x32xf32>
    %535 = arith.addf %4, %532 : vector<8x32xf32>
    %cst_233 = arith.constant dense<0.000000e+00> : vector<8xf32>
    %536 = vector.multi_reduction <add>, %535, %cst_233 [1] : vector<8x32xf32> to vector<8xf32>
    %537 = vector.shape_cast %536 : vector<8xf32> to vector<8x1xf32>
    %cst_234 = arith.constant 3.200000e+01 : f32
    %538 = vector.broadcast %cst_234 : f32 to vector<8x1xf32>
    %539 = arith.divf %537, %538 : vector<8x1xf32>
    %540 = vector.broadcast %539 : vector<8x1xf32> to vector<8x32xf32>
    %541 = arith.subf %535, %540 : vector<8x32xf32>
    %542 = arith.mulf %541, %541 : vector<8x32xf32>
    %cst_235 = arith.constant dense<0.000000e+00> : vector<8xf32>
    %543 = vector.multi_reduction <add>, %542, %cst_235 [1] : vector<8x32xf32> to vector<8xf32>
    %544 = vector.shape_cast %543 : vector<8xf32> to vector<8x1xf32>
    %cst_236 = arith.constant 3.200000e+01 : f32
    %545 = vector.broadcast %cst_236 : f32 to vector<8x1xf32>
    %546 = arith.divf %544, %545 : vector<8x1xf32>
    %cst_237 = arith.constant 9.99999974E-6 : f32
    %547 = vector.broadcast %cst_237 : f32 to vector<8x1xf32>
    %548 = arith.addf %546, %547 : vector<8x1xf32>
    %549 = math.rsqrt %548 : vector<8x1xf32>
    %550 = vector.broadcast %549 : vector<8x1xf32> to vector<8x32xf32>
    %551 = arith.mulf %541, %550 : vector<8x32xf32>
    %552 = vector.broadcast %533 : vector<1x32xf32> to vector<8x32xf32>
    %553 = arith.mulf %551, %552 : vector<8x32xf32>
    %554 = vector.broadcast %534 : vector<1x32xf32> to vector<8x32xf32>
    %555 = arith.addf %553, %554 : vector<8x32xf32>
    %c0_238 = arith.constant 0 : index
    %c0_239 = arith.constant 0 : index
    %556 = vector.load %arg16[%c0_238, %c0_239] : memref<32x64xf32, #tpu.memory_space<vmem>>, vector<32x64xf32>
    %cst_240 = arith.constant dense<0.000000e+00> : vector<8x64xf32>
    %557 = tpu.matmul %555, %556, %cst_240 {dimension_numbers = #tpu.dot_dimension_numbers<[1], [0], [0], [1], [0, 0, 1, 1], [], []>} : vector<8x32xf32>, vector<32x64xf32>, vector<8x64xf32> -> vector<8x64xf32>
    %c0_241 = arith.constant 0 : index
    %c0_242 = arith.constant 0 : index
    %558 = vector.load %arg17[%c0_241, %c0_242] : memref<1x64xf32, #tpu.memory_space<vmem>>, vector<1x64xf32>
    %559 = vector.broadcast %558 : vector<1x64xf32> to vector<8x64xf32>
    %560 = arith.addf %557, %559 : vector<8x64xf32>
    %cst_243 = arith.constant 0.000000e+00 : f32
    %561 = vector.broadcast %cst_243 : f32 to vector<8x64xf32>
    %562 = arith.maximumf %560, %561 : vector<8x64xf32>
    %c0_244 = arith.constant 0 : index
    %c0_245 = arith.constant 0 : index
    %563 = vector.load %arg18[%c0_244, %c0_245] : memref<64x32xf32, #tpu.memory_space<vmem>>, vector<64x32xf32>
    %cst_246 = arith.constant dense<0.000000e+00> : vector<8x32xf32>
    %564 = tpu.matmul %562, %563, %cst_246 {dimension_numbers = #tpu.dot_dimension_numbers<[1], [0], [0], [1], [0, 0, 1, 1], [], []>} : vector<8x64xf32>, vector<64x32xf32>, vector<8x32xf32> -> vector<8x32xf32>
    %c0_247 = arith.constant 0 : index
    %c0_248 = arith.constant 0 : index
    %565 = vector.load %arg19[%c0_247, %c0_248] : memref<1x32xf32, #tpu.memory_space<vmem>>, vector<1x32xf32>
    %566 = vector.broadcast %565 : vector<1x32xf32> to vector<8x32xf32>
    %567 = arith.addf %564, %566 : vector<8x32xf32>
    %568 = arith.addf %555, %567 : vector<8x32xf32>
    %cst_249 = arith.constant dense<0.000000e+00> : vector<8xf32>
    %569 = vector.multi_reduction <add>, %568, %cst_249 [1] : vector<8x32xf32> to vector<8xf32>
    %570 = vector.shape_cast %569 : vector<8xf32> to vector<8x1xf32>
    %cst_250 = arith.constant 3.200000e+01 : f32
    %571 = vector.broadcast %cst_250 : f32 to vector<8x1xf32>
    %572 = arith.divf %570, %571 : vector<8x1xf32>
    %573 = vector.broadcast %572 : vector<8x1xf32> to vector<8x32xf32>
    %574 = arith.subf %568, %573 : vector<8x32xf32>
    %575 = arith.mulf %574, %574 : vector<8x32xf32>
    %cst_251 = arith.constant dense<0.000000e+00> : vector<8xf32>
    %576 = vector.multi_reduction <add>, %575, %cst_251 [1] : vector<8x32xf32> to vector<8xf32>
    %577 = vector.shape_cast %576 : vector<8xf32> to vector<8x1xf32>
    %cst_252 = arith.constant 3.200000e+01 : f32
    %578 = vector.broadcast %cst_252 : f32 to vector<8x1xf32>
    %579 = arith.divf %577, %578 : vector<8x1xf32>
    %cst_253 = arith.constant 9.99999974E-6 : f32
    %580 = vector.broadcast %cst_253 : f32 to vector<8x1xf32>
    %581 = arith.addf %579, %580 : vector<8x1xf32>
    %582 = math.rsqrt %581 : vector<8x1xf32>
    %583 = vector.broadcast %582 : vector<8x1xf32> to vector<8x32xf32>
    %584 = arith.mulf %574, %583 : vector<8x32xf32>
    %585 = vector.broadcast %533 : vector<1x32xf32> to vector<8x32xf32>
    %586 = arith.mulf %584, %585 : vector<8x32xf32>
    %587 = vector.broadcast %534 : vector<1x32xf32> to vector<8x32xf32>
    %588 = arith.addf %586, %587 : vector<8x32xf32>
    %c0_254 = arith.constant 0 : index
    %c0_255 = arith.constant 0 : index
    %c0_256 = arith.constant 0 : index
    %589 = vector.load %arg29[%c0_254, %c0_255, %c0_256] : memref<1x8x32xf32, #tpu.memory_space<vmem>>, vector<1x8x32xf32>
    %590 = vector.shape_cast %589 : vector<1x8x32xf32> to vector<8x32xf32>
    %591 = vector.shape_cast %588 : vector<8x32xf32> to vector<1x8x32xf32>
    tpu.vector_store %arg29[%c0_254, %c0_255, %c0_256], %591 {strides = array<i32>} : memref<1x8x32xf32, #tpu.memory_space<vmem>>, vector<1x8x32xf32>,
    return
  }
  func.func @transform_0(%arg0: i32, %arg1: i32) -> (i32, i32, i32) {
    %c0_i32 = arith.constant 0 : i32
    %c0_i32_0 = arith.constant 0 : i32
    return %arg0, %arg1, %c0_i32 : i32, i32, i32
  }
  func.func @transform_1(%arg0: i32, %arg1: i32) -> (i32, i32, i32) {
    %c0_i32 = arith.constant 0 : i32
    %c0_i32_0 = arith.constant 0 : i32
    return %arg0, %arg1, %c0_i32 : i32, i32, i32
  }
  func.func @transform_2(%arg0: i32, %arg1: i32) -> (i32, i32, i32) {
    %c0_i32 = arith.constant 0 : i32
    %c0_i32_0 = arith.constant 0 : i32
    %c0_i32_1 = arith.constant 0 : i32
    return %arg0, %c0_i32, %c0_i32_0 : i32, i32, i32
  }
  func.func @transform_3(%arg0: i32, %arg1: i32) -> (i32, i32, i32) {
    %c0_i32 = arith.constant 0 : i32
    %c0_i32_0 = arith.constant 0 : i32
    %c0_i32_1 = arith.constant 0 : i32
    return %arg0, %c0_i32, %c0_i32_0 : i32, i32, i32
  }
  func.func @transform_4(%arg0: i32, %arg1: i32) -> (i32, i32, i32) {
    %c0_i32 = arith.constant 0 : i32
    %c0_i32_0 = arith.constant 0 : i32
    return %arg0, %arg1, %c0_i32 : i32, i32, i32
  }
  func.func @transform_5(%arg0: i32, %arg1: i32) -> (i32, i32, i32) {
    %c0_i32 = arith.constant 0 : i32
    %c0_i32_0 = arith.constant 0 : i32
    return %arg0, %arg1, %c0_i32 : i32, i32, i32
  }
  func.func @transform_6(%arg0: i32, %arg1: i32) -> (i32, i32) {
    %c0_i32 = arith.constant 0 : i32
    %c0_i32_0 = arith.constant 0 : i32
    %c0_i32_1 = arith.constant 0 : i32
    return %c0_i32, %c0_i32_0 : i32, i32
  }
  func.func @transform_7(%arg0: i32, %arg1: i32) -> (i32, i32) {
    %c0_i32 = arith.constant 0 : i32
    %c0_i32_0 = arith.constant 0 : i32
    %c0_i32_1 = arith.constant 0 : i32
    return %c0_i32, %c0_i32_0 : i32, i32
  }
  func.func @transform_8(%arg0: i32, %arg1: i32) -> (i32, i32) {
    %c0_i32 = arith.constant 0 : i32
    %c0_i32_0 = arith.constant 0 : i32
    %c0_i32_1 = arith.constant 0 : i32
    return %c0_i32, %c0_i32_0 : i32, i32
  }
  func.func @transform_9(%arg0: i32, %arg1: i32) -> (i32, i32) {
    %c0_i32 = arith.constant 0 : i32
    %c0_i32_0 = arith.constant 0 : i32
    %c0_i32_1 = arith.constant 0 : i32
    return %c0_i32, %c0_i32_0 : i32, i32
  }
  func.func @transform_10(%arg0: i32, %arg1: i32) -> (i32, i32) {
    %c0_i32 = arith.constant 0 : i32
    %c0_i32_0 = arith.constant 0 : i32
    %c0_i32_1 = arith.constant 0 : i32
    return %c0_i32, %c0_i32_0 : i32, i32
  }
  func.func @transform_11(%arg0: i32, %arg1: i32) -> (i32, i32) {
    %c0_i32 = arith.constant 0 : i32
    %c0_i32_0 = arith.constant 0 : i32
    %c0_i32_1 = arith.constant 0 : i32
    return %c0_i32, %c0_i32_0 : i32, i32
  }
  func.func @transform_12(%arg0: i32, %arg1: i32) -> (i32, i32) {
    %c0_i32 = arith.constant 0 : i32
    %c0_i32_0 = arith.constant 0 : i32
    %c0_i32_1 = arith.constant 0 : i32
    return %c0_i32, %c0_i32_0 : i32, i32
  }
  func.func @transform_13(%arg0: i32, %arg1: i32) -> (i32, i32) {
    %c0_i32 = arith.constant 0 : i32
    %c0_i32_0 = arith.constant 0 : i32
    %c0_i32_1 = arith.constant 0 : i32
    return %c0_i32, %c0_i32_0 : i32, i32
  }
  func.func @transform_14(%arg0: i32, %arg1: i32) -> (i32, i32) {
    %c0_i32 = arith.constant 0 : i32
    %c0_i32_0 = arith.constant 0 : i32
    %c0_i32_1 = arith.constant 0 : i32
    return %c0_i32, %c0_i32_0 : i32, i32
  }
  func.func @transform_15(%arg0: i32, %arg1: i32) -> (i32, i32) {
    %c0_i32 = arith.constant 0 : i32
    %c0_i32_0 = arith.constant 0 : i32
    %c0_i32_1 = arith.constant 0 : i32
    return %c0_i32, %c0_i32_0 : i32, i32
  }
  func.func @transform_16(%arg0: i32, %arg1: i32) -> (i32, i32) {
    %c0_i32 = arith.constant 0 : i32
    %c0_i32_0 = arith.constant 0 : i32
    %c0_i32_1 = arith.constant 0 : i32
    return %c0_i32, %c0_i32_0 : i32, i32
  }
  func.func @transform_17(%arg0: i32, %arg1: i32) -> (i32, i32) {
    %c0_i32 = arith.constant 0 : i32
    %c0_i32_0 = arith.constant 0 : i32
    %c0_i32_1 = arith.constant 0 : i32
    return %c0_i32, %c0_i32_0 : i32, i32
  }
  func.func @transform_18(%arg0: i32, %arg1: i32) -> (i32, i32) {
    %c0_i32 = arith.constant 0 : i32
    %c0_i32_0 = arith.constant 0 : i32
    %c0_i32_1 = arith.constant 0 : i32
    return %c0_i32, %c0_i32_0 : i32, i32
  }
  func.func @transform_19(%arg0: i32, %arg1: i32) -> (i32, i32) {
    %c0_i32 = arith.constant 0 : i32
    %c0_i32_0 = arith.constant 0 : i32
    %c0_i32_1 = arith.constant 0 : i32
    return %c0_i32, %c0_i32_0 : i32, i32
  }
  func.func @transform_20(%arg0: i32, %arg1: i32) -> (i32, i32) {
    %c0_i32 = arith.constant 0 : i32
    %c0_i32_0 = arith.constant 0 : i32
    %c0_i32_1 = arith.constant 0 : i32
    return %c0_i32, %c0_i32_0 : i32, i32
  }
  func.func @transform_21(%arg0: i32, %arg1: i32) -> (i32, i32) {
    %c0_i32 = arith.constant 0 : i32
    %c0_i32_0 = arith.constant 0 : i32
    %c0_i32_1 = arith.constant 0 : i32
    return %c0_i32, %c0_i32_0 : i32, i32
  }
  func.func @transform_22(%arg0: i32, %arg1: i32) -> (i32, i32) {
    %c0_i32 = arith.constant 0 : i32
    %c0_i32_0 = arith.constant 0 : i32
    %c0_i32_1 = arith.constant 0 : i32
    return %c0_i32, %c0_i32_0 : i32, i32
  }
  func.func @transform_23(%arg0: i32, %arg1: i32) -> (i32, i32) {
    %c0_i32 = arith.constant 0 : i32
    %c0_i32_0 = arith.constant 0 : i32
    %c0_i32_1 = arith.constant 0 : i32
    return %c0_i32, %c0_i32_0 : i32, i32
  }
  func.func @transform_24(%arg0: i32, %arg1: i32) -> (i32, i32) {
    %c0_i32 = arith.constant 0 : i32
    %c0_i32_0 = arith.constant 0 : i32
    %c0_i32_1 = arith.constant 0 : i32
    return %c0_i32, %c0_i32_0 : i32, i32
  }
  func.func @transform_25(%arg0: i32, %arg1: i32) -> (i32, i32) {
    %c0_i32 = arith.constant 0 : i32
    %c0_i32_0 = arith.constant 0 : i32
    %c0_i32_1 = arith.constant 0 : i32
    return %c0_i32, %c0_i32_0 : i32, i32
  }
  func.func @transform_26(%arg0: i32, %arg1: i32) -> (i32, i32) {
    %c0_i32 = arith.constant 0 : i32
    %c0_i32_0 = arith.constant 0 : i32
    %c0_i32_1 = arith.constant 0 : i32
    return %c0_i32, %c0_i32_0 : i32, i32
  }
  func.func @transform_27(%arg0: i32, %arg1: i32) -> (i32, i32, i32) {
    %c0_i32 = arith.constant 0 : i32
    %c0_i32_0 = arith.constant 0 : i32
    return %arg0, %arg1, %c0_i32 : i32, i32, i32
  }
}

</mosaic_0001>

<bundles_post_ra>
// kernel: tpu_custom_call.1
= control target key start
LH: loop header
LB: loop body
LE: loop exit
PB: predicated region body
PF: predicated region fallthrough
CT: control target
= control target key end

     0   :  { %s10159_s0 = inlined_call_operand.hbm [shape: f32[2,16,32], index: 0, kind: input, shape index: {}]   ;;  %s10160_s1 = inlined_call_operand.hbm [shape: f32[2,16,32], index: 1, kind: input, shape index: {}]   ;;  %s10161_s2 = inlined_call_operand.hbm [shape: f32[2,80,32], index: 2, kind: input, shape index: {}]   ;;  %s10162_s3 = inlined_call_operand.hbm [shape: f32[2,80,32], index: 3, kind: input, shape index: {}]   ;;  %s10163_s4 = inlined_call_operand.hbm [shape: f32[2,16,16], index: 4, kind: input, shape index: {}]   ;;  %s10164_s5 = inlined_call_operand.hbm [shape: f32[2,16,16], index: 5, kind: input, shape index: {}]   ;;  %s10165_s6 = inlined_call_operand.hbm [shape: f32[32,32], index: 6, kind: input, shape index: {}]   ;;  %s10166_s7 = inlined_call_operand.hbm [shape: f32[1,32], index: 7, kind: input, shape index: {}]   ;;  %s10167_s8 = inlined_call_operand.hbm [shape: f32[32,48], index: 8, kind: input, shape index: {}]   ;;  %s10168_s9 = inlined_call_operand.hbm [shape: f32[1,48], index: 9, kind: input, shape index: {}]   ;;  %s10169_s10 = inlined_call_operand.hbm [shape: f32[32,32], index: 10, kind: input, shape index: {}]   ;;  %s10170_s11 = inlined_call_operand.hbm [shape: f32[1,32], index: 11, kind: input, shape index: {}]   ;;  %s10171_s12 = inlined_call_operand.hbm [shape: f32[1,32], index: 12, kind: input, shape index: {}]   ;;  %s10172_s13 = inlined_call_operand.hbm [shape: f32[1,32], index: 13, kind: input, shape index: {}]   ;;  %s10173_s14 = inlined_call_operand.hbm [shape: f32[32,64], index: 14, kind: input, shape index: {}]   ;;  %s10174_s15 = inlined_call_operand.hbm [shape: f32[1,64], index: 15, kind: input, shape index: {}]   ;;  %s10175_s16 = inlined_call_operand.hbm [shape: f32[64,32], index: 16, kind: input, shape index: {}]   ;;  %s10176_s17 = inlined_call_operand.hbm [shape: f32[1,32], index: 17, kind: input, shape index: {}]   ;;  %s10177_s18 = inlined_call_operand.hbm [shape: f32[16,4], index: 18, kind: input, shape index: {}]   ;;  %s10178_s19 = inlined_call_operand.hbm [shape: f32[1,8], index: 19, kind: input, shape index: {}]   ;;  %s10179_s20 = inlined_call_operand.hbm [shape: f32[1,8], index: 20, kind: input, shape index: {}]   ;;  %s10180_s21 = inlined_call_operand.hbm [shape: f32[8,64], index: 21, kind: input, shape index: {}]   ;;  %s10181_s22 = inlined_call_operand.hbm [shape: f32[8,64], index: 22, kind: input, shape index: {}]   ;;  %s10182_s23 = inlined_call_operand.hbm [shape: f32[1,4], index: 23, kind: input, shape index: {}]   ;;  %s10183_s24 = inlined_call_operand.hbm [shape: f32[1,4], index: 24, kind: input, shape index: {}]   ;;  %s10184_s25 = inlined_call_operand.hbm [shape: f32[4,16], index: 25, kind: input, shape index: {}]   ;;  %s10185_s26 = inlined_call_operand.hbm [shape: f32[4,16], index: 26, kind: input, shape index: {}]   ;;  %s10186_s27 = inlined_call_operand.hbm [shape: f32[2,16,32], index: 27, kind: output, shape index: {}]  }
   0x1   :  { %10263 = sst [smem:[#allocation80_spill]] %s10159_s0 }
   0x2   :  { %10264 = sst [smem:[#allocation81_spill]] %s10160_s1 }
   0x3   :  { %10265 = sst [smem:[#allocation82_spill]] %s10161_s2 }
   0x4   :  { %10266 = sst [smem:[#allocation83_spill]] %s10162_s3 }
   0x5   :  { %10267 = sst [smem:[#allocation84_spill]] %s10163_s4 }
   0x6   :  { %10268 = sst [smem:[#allocation85_spill]] %s10164_s5 }
   0x7   :  { %10269 = sst [smem:[#allocation86_spill]] %s10165_s6 }
   0x8   :  { %10270 = sst [smem:[#allocation87_spill]] %s10166_s7 }
   0x9   :  { %10271 = sst [smem:[#allocation88_spill]] %s10167_s8 }
   0xa   :  { %10272 = sst [smem:[#allocation89_spill]] %s10168_s9 }
   0xb   :  { %10273 = sst [smem:[#allocation90_spill]] %s10169_s10 }
   0xc   :  { %10274 = sst [smem:[#allocation91_spill]] %s10170_s11 }
   0xd   :  { %10275 = sst [smem:[#allocation92_spill]] %s10171_s12 }
   0xe   :  { %10276 = sst [smem:[#allocation93_spill]] %s10172_s13 }
   0xf   :  { %10277 = sst [smem:[#allocation94_spill]] %s10173_s14 }
  0x10   :  { %10278 = sst [smem:[#allocation95_spill]] %s10174_s15 }
  0x11   :  { %10279 = sst [smem:[#allocation96_spill]] %s10175_s16 }
  0x12   :  { %10280 = sst [smem:[#allocation97_spill]] %s10176_s17 }
  0x13   :  { %10281 = sst [smem:[#allocation98_spill]] %s10177_s18 }
  0x14   :  { %10282 = sst [smem:[#allocation99_spill]] %s10178_s19 }
  0x15   :  { %10283 = sst [smem:[#allocation100_spill]] %s10179_s20 }
  0x16   :  { %10284 = sst [smem:[#allocation101_spill]] %s10180_s21 }
  0x17   :  { %10285 = sst [smem:[#allocation102_spill]] %s10181_s22 }
  0x18   :  { %10286 = sst [smem:[#allocation103_spill]] %s10182_s23 }
  0x19   :  { %10287 = sst [smem:[#allocation104_spill]] %s10183_s24 }
  0x1a   :  { %10288 = sst [smem:[#allocation105_spill]] %s10184_s25 }
  0x1b   :  { %10289 = sst [smem:[#allocation106_spill]] %s10185_s26 }
  0x1c   :  { %10290 = sst [smem:[#allocation107_spill]] %s10186_s27 }
  0x1d   :  { %32 = vsyncpa [#allocation4], 0 }
  0x1e   :  { %34 = vsyncpa [#allocation4 + $0x1], 0 }
  0x1f   :  { %35 = vsyncpa [#allocation7], 0 }
  0x20   :  { %37 = vsyncpa [#allocation7 + $0x1], 0 }
  0x21   :  { %38 = vsyncpa [#allocation10], 0 }
  0x22   :  { %40 = vsyncpa [#allocation10 + $0x1], 0 }
  0x23   :  { %41 = vsyncpa [#allocation13], 0 }
  0x24   :  { %43 = vsyncpa [#allocation13 + $0x1], 0 }
  0x25   :  { %44 = vsyncpa [#allocation16], 0 }
  0x26   :  { %45 = vsyncpa [#allocation19], 0 }
  0x27   :  { %46 = vsyncpa [#allocation22], 0 }
  0x28   :  { %47 = vsyncpa [#allocation25], 0 }
  0x29   :  { %48 = vsyncpa [#allocation28], 0 }
  0x2a   :  { %49 = vsyncpa [#allocation31], 0 }
  0x2b   :  { %50 = vsyncpa [#allocation34], 0 }
  0x2c   :  { %51 = vsyncpa [#allocation37], 0 }
  0x2d   :  { %52 = vsyncpa [#allocation40], 0 }
  0x2e   :  { %53 = vsyncpa [#allocation43], 0 }
  0x2f   :  { %54 = vsyncpa [#allocation5], 0 }
  0x30   :  { %56 = vsyncpa [#allocation5 + $0x1], 0  ;;  %s8584_s7 = smov 0   ;;  %s8586_s4 = smov 0  }
  0x31   :  { %s8588_s8 = smov 0   ;;  %s8590_s30 = smov 0  }
  0x32   :  { %s8592_s9 = smov 0   ;;  %s8594_s5 = smov 0  }
  0x33   :  { %s8596_s28 = smov 0   ;;  %s8598_s0 = smov 0  }
  0x34   :  { %s8600_s10 = smov 0   ;;  %s8602_s29 = smov 0  }
  0x35   :  { %s8604_s1 = smov 0  }
  0x36 LB: > { %10291 = sst [smem:[#allocation64_spill]] %s8333_s7  ;;  %s8640_s6 = sadd.s32 4294967295, %s8373_s1   ;;  %s8373_s1 = sphi %s8604_s1, %s62_s1   ;;  %s8369_s29 = sphi %s8602_s29, %s10429_s29   ;;  %s8365_s10 = sphi %s8600_s10, %s10422_s10   ;;  %s8361_s0 = sphi %s8598_s0, %s10428_s0   ;;  %s8357_s28 = sphi %s8596_s28, %s10427_s28   ;;  %s8353_s5 = sphi %s8594_s5, %s10426_s5   ;;  %s8349_s9 = sphi %s8592_s9, %s10425_s9   ;;  %s8345_s30 = sphi %s8590_s30, %s10424_s30   ;;  %s8341_s8 = sphi %s8588_s8, %s10419_s8   ;;  %s8337_s4 = sphi %s8586_s4, %s10418_s4   ;;  %s8333_s7 = sphi %s8584_s7, %s10417_s7  }
  0x37   : > { %10292 = sst [smem:[#allocation65_spill]] %s8337_s4  ;;  %p6115_p0 = scmp.ge.s32.totalorder %s8373_s1, 1 }
  0x38   : > { %10293 = sst [smem:[#allocation66_spill]] %s8341_s8  ;;  %p10214_p1 = scmp.eq.s32.totalorder %s8640_s6, 0 }
  0x39   : > { %10294 = sst [smem:[#allocation67_spill]] %s8345_s30  ;;  %p712_p2 = scmp.lt.s32.totalorder %s8373_s1, 5 }
  0x3a   : > { %10295 = sst [smem:[#allocation68_spill]] %s8357_s28  ;;  %s8375_s2 = smov [#allocation14]  }
  0x3b   : > { %10296 = sst [smem:[#allocation69_spill]] %s8361_s0  ;;  %p8645_p3 = pnand %p6115_p0, %p712_p2 }
  0x3c   : > { %10297 = sst [smem:[#allocation70_spill]] %s8365_s10  ;;  %s724_s3 = sshll.u32 %s8375_s2, 4  ;;  %s8649_s3 = int_to_ptr.vmem [resolvable:$true] %s724_s3 }
  0x3d   : > { %10298 = sst [smem:[#allocation71_spill]] %s8373_s1  ;;  %p6993_p4 = pneg %p8645_p3 }
  0x3e   : > { %10299 = sst [smem:[#allocation72_spill]] %s8640_s6  ;;  %s8376_s0 = smov [#allocation15]  }
  0x3f   : > { %s10300_s11 = scalar_select %p8645_p3, 1, 0 }
  0x40   : > { %p8655_p5 = pnand %p6993_p4, %p10214_p1  ;;  %s738_s28 = sshll.u32 %s8376_s0, 4  ;;  %s8659_s28 = int_to_ptr.vmem [resolvable:$true] %s738_s28 }
  0x41   : > { %10301 = sst [smem:[#allocation73_spill]] %s10300_s11  ;;  %s8377_s26 = smov [#allocation18]  }
  0x42   : > { %s10302_s27 = scalar_select %p8655_p5, 1, 0 }
  0x43   : > { %s8661_s24 = sshll.u32 %s8377_s26, 4  ;;  %s10303_s2 = sld [smem:[#allocation86_spill]]  ;;  %s763_s24 = int_to_ptr.vmem [resolvable:$true] %s8661_s24 }
  0x44   : > { %p8671_p7 = pneg %p8655_p5 }
  0x46   : > { %s10304_s14 = scalar_select %p8671_p7, 1, 0 }
  0x49   : > { %s7419_s18 = scalar_lea.hbm %s10303_s2, 512 }
  0x4a   : > { %p7420_p6 = scmp.ne.s32.totalorder %s10303_s2, %s7419_s18  ;;  %p7426_p10 = scmp.lt.u32.totalorder %s7419_s18, %s10303_s2 }
  0x4c   : > { %p7422_p8 = pnand %p8671_p7, %p7420_p6 }
  0x4e   : > { %p7423_p9 = pneg %p7422_p8 }
  0x50   : > { %p7428_p11 = pnand %p7426_p10, %p7423_p9 }
  0x52   : > { %7431 = shalt.err (!%p7428_p11)
}
  0x53   : > { %s7432_s16 = scalar_lea.vmem %s8649_s3, 512  ;;  %p7440_p2 = scmp.lt.s32.totalorder %s8649_s3, %s8649_s3 }
  0x54   : > { %p7433_p12 = scmp.ne.s32.totalorder %s8649_s3, %s7432_s16  ;;  %p7441_p4 = scmp.lt.s32.totalorder %s7432_s16, %s7432_s16 }
  0x56   : > { %p7435_p13 = pnand %p7433_p12, %p8671_p7  ;;  %p7442_p6 = por %p7441_p4, %p7440_p2 }
  0x58   : > { %p7436_p0 = pneg %p7435_p13 }
  0x5a   : > { %p7443_p8 = pnand %p7442_p6, %p7436_p0 }
  0x5c   : > { %7446 = shalt.err (!%p7443_p8)
}
  0x5d   : > { %s10216_s20 = smov 128   ;;  %s10218_s18 = smov 8  }
  0x5e   : > { %6996 = dma.hbm_to_vmem [thread:$0]  (!%p8655_p5), %s10303_s2, 512, %s8649_s3, [#allocation13], %s10216_s20, %s10216_s20, %s10218_s18  }
  0x5f   : > { %s10305_s12 = sld [smem:[#allocation87_spill]] }
  0x65   : > { %s7447_s16 = scalar_lea.hbm %s10305_s12, 16 }
  0x66   : > { %p7448_p9 = scmp.ne.s32.totalorder %s10305_s12, %s7447_s16  ;;  %p7454_p12 = scmp.lt.u32.totalorder %s7447_s16, %s10305_s12 }
  0x68   : > { %p7450_p10 = pnand %p7448_p9, %p8671_p7 }
  0x6a   : > { %p7451_p11 = pneg %p7450_p10 }
  0x6c   : > { %p7456_p13 = pnand %p7454_p12, %p7451_p11 }
  0x6e   : > { %7459 = shalt.err (!%p7456_p13)
}
  0x6f   : > { %s7460_s3 = scalar_lea.vmem %s8659_s28, 16  ;;  %s7467_s7 = scalar_lea.vmem %s8659_s28, 32 }
  0x70   : > { %p7461_p0 = scmp.ne.s32.totalorder %s8659_s28, %s7460_s3  ;;  %p7468_p6 = scmp.lt.s32.totalorder %s8659_s28, %s8659_s28 }
  0x71   : > { %p7469_p8 = scmp.lt.s32.totalorder %s7467_s7, %s7460_s3 }
  0x72   : > { %p7463_p2 = pnand %p7461_p0, %p8671_p7 }
  0x73   : > { %p7470_p9 = por %p7469_p8, %p7468_p6 }
  0x74   : > { %p7464_p4 = pneg %p7463_p2 }
  0x76   : > { %p7471_p10 = pnand %p7470_p9, %p7464_p4 }
  0x78   : > { %7474 = shalt.err (!%p7471_p10)
}
  0x79   : > { %6999 = dma.hbm_to_vmem [thread:$0]  (!%p8655_p5), %s10305_s12, 16, %s8659_s28, [#allocation16]  }
  0x7a   : > { %s10306_s11 = sld [smem:[#allocation89_spill]] }
  0x80   : > { %s7475_s0 = scalar_lea.hbm %s10306_s11, 16 }
  0x81   : > { %p7476_p11 = scmp.ne.s32.totalorder %s10306_s11, %s7475_s0  ;;  %p7482_p0 = scmp.lt.u32.totalorder %s7475_s0, %s10306_s11 }
  0x83   : > { %p7478_p12 = pnand %p7476_p11, %p8671_p7 }
  0x85   : > { %p7479_p13 = pneg %p7478_p12 }
  0x87   : > { %p7484_p2 = pnand %p7482_p0, %p7479_p13 }
  0x89   : > { %7487 = shalt.err (!%p7484_p2)
}
  0x8a   : > { %s7488_s4 = scalar_lea.vmem %s763_s24, 16  ;;  %s7495_s28 = scalar_lea.vmem %s763_s24, 32 }
  0x8b   : > { %p7489_p4 = scmp.ne.s32.totalorder %s763_s24, %s7488_s4  ;;  %p7496_p9 = scmp.lt.s32.totalorder %s763_s24, %s763_s24 }
  0x8c   : > { %p7497_p10 = scmp.lt.s32.totalorder %s7495_s28, %s7488_s4 }
  0x8d   : > { %p7491_p6 = pnand %p7489_p4, %p8671_p7 }
  0x8e   : > { %p7498_p1 = por %p7497_p10, %p7496_p9 }
  0x8f   : > { %p7492_p8 = pneg %p7491_p6 }
  0x91   : > { %p7499_p3 = pnand %p7498_p1, %p7492_p8 }
  0x93   : > { %7502 = shalt.err (!%p7499_p3)
}
  0x94   : > { %7005 = dma.hbm_to_vmem [thread:$0]  (!%p8655_p5), %s10306_s11, 16, %s763_s24, [#allocation19]  }
  0x95   : > { %s8380_s22 = smov [#allocation21]   ;;  %s8381_s26 = smov [#allocation24]  }
  0x96   : > { %s786_s0 = sshll.u32 %s8380_s22, 4  ;;  %s808_s16 = sshll.u32 %s8381_s26, 4  ;;  %s787_s0 = int_to_ptr.vmem [resolvable:$true] %s786_s0  ;;  %s809_s16 = int_to_ptr.vmem [resolvable:$true] %s808_s16 }
  0x97   : > { %s10307_s20 = sld [smem:[#allocation91_spill]] }
  0x9d   : > { %s7503_s18 = scalar_lea.hbm %s10307_s20, 16 }
  0x9e   : > { %p7504_p1 = scmp.ne.s32.totalorder %s10307_s20, %s7503_s18  ;;  %p7510_p12 = scmp.lt.u32.totalorder %s7503_s18, %s10307_s20 }
  0xa0   : > { %p7506_p3 = pnand %p7504_p1, %p8671_p7 }
  0xa2   : > { %p7507_p11 = pneg %p7506_p3 }
  0xa4   : > { %p7512_p13 = pnand %p7510_p12, %p7507_p11 }
  0xa6   : > { %7515 = shalt.err (!%p7512_p13)
}
  0xa7   : > { %s7516_s24 = scalar_lea.vmem %s787_s0, 16  ;;  %s7523_s6 = scalar_lea.vmem %s787_s0, 32 }
  0xa8   : > { %p7517_p0 = scmp.ne.s32.totalorder %s787_s0, %s7516_s24  ;;  %p7524_p6 = scmp.lt.s32.totalorder %s787_s0, %s787_s0 }
  0xa9   : > { %p7525_p8 = scmp.lt.s32.totalorder %s7523_s6, %s7516_s24 }
  0xaa   : > { %p7519_p2 = pnand %p7517_p0, %p8671_p7 }
  0xab   : > { %p7526_p9 = por %p7525_p8, %p7524_p6 }
  0xac   : > { %p7520_p4 = pneg %p7519_p2 }
  0xae   : > { %p7527_p10 = pnand %p7526_p9, %p7520_p4 }
  0xb0   : > { %7530 = shalt.err (!%p7527_p10)
}
  0xb1   : > { %7011 = dma.hbm_to_vmem [thread:$0]  (!%p8655_p5), %s10307_s20, 16, %s787_s0, [#allocation22]  }
  0xb2   : > { %s10308_s13 = sld [smem:[#allocation93_spill]] }
  0xb8   : > { %s7531_s3 = scalar_lea.hbm %s10308_s13, 16 }
  0xb9   : > { %p7532_p1 = scmp.ne.s32.totalorder %s10308_s13, %s7531_s3  ;;  %p7538_p12 = scmp.lt.u32.totalorder %s7531_s3, %s10308_s13 }
  0xbb   : > { %p7534_p3 = pnand %p7532_p1, %p8671_p7 }
  0xbd   : > { %p7535_p11 = pneg %p7534_p3 }
  0xbf   : > { %p7540_p13 = pnand %p7538_p12, %p7535_p11 }
  0xc1   : > { %7543 = shalt.err (!%p7540_p13)
}
  0xc2   : > { %s7544_s24 = scalar_lea.vmem %s809_s16, 16  ;;  %s7551_s0 = scalar_lea.vmem %s809_s16, 32 }
  0xc3   : > { %p7545_p0 = scmp.ne.s32.totalorder %s809_s16, %s7544_s24  ;;  %p7552_p6 = scmp.lt.s32.totalorder %s809_s16, %s809_s16 }
  0xc4   : > { %p7553_p8 = scmp.lt.s32.totalorder %s7551_s0, %s7544_s24 }
  0xc5   : > { %p7547_p2 = pnand %p7545_p0, %p8671_p7 }
  0xc6   : > { %p7554_p9 = por %p7553_p8, %p7552_p6 }
  0xc7   : > { %p7548_p4 = pneg %p7547_p2 }
  0xc9   : > { %p7555_p10 = pnand %p7554_p9, %p7548_p4 }
  0xcb   : > { %7558 = shalt.err (!%p7555_p10)
}
  0xcc   : > { %7017 = dma.hbm_to_vmem [thread:$0]  (!%p8655_p5), %s10308_s13, 16, %s809_s16, [#allocation25]  }
  0xcd   : > { %s8382_s26 = smov [#allocation27]   ;;  %s8383_s18 = smov [#allocation30]  }
  0xce   : > { %s832_s2 = sshll.u32 %s8382_s26, 4  ;;  %s856_s3 = sshll.u32 %s8383_s18, 4  ;;  %s833_s2 = int_to_ptr.vmem [resolvable:$true] %s832_s2  ;;  %s857_s3 = int_to_ptr.vmem [resolvable:$true] %s856_s3 }
  0xcf   : > { %s10309_s15 = sld [smem:[#allocation95_spill]] }
  0xd5   : > { %s7559_s28 = scalar_lea.hbm %s10309_s15, 16 }
  0xd6   : > { %p7560_p1 = scmp.ne.s32.totalorder %s10309_s15, %s7559_s28  ;;  %p7566_p12 = scmp.lt.u32.totalorder %s7559_s28, %s10309_s15 }
  0xd8   : > { %p7562_p3 = pnand %p7560_p1, %p8671_p7 }
  0xda   : > { %p7563_p11 = pneg %p7562_p3 }
  0xdc   : > { %p7568_p13 = pnand %p7566_p12, %p7563_p11 }
  0xde   : > { %7571 = shalt.err (!%p7568_p13)
}
  0xdf   : > { %s7572_s16 = scalar_lea.vmem %s833_s2, 16  ;;  %s7579_s22 = scalar_lea.vmem %s833_s2, 32 }
  0xe0   : > { %p7573_p0 = scmp.ne.s32.totalorder %s833_s2, %s7572_s16  ;;  %p7580_p6 = scmp.lt.s32.totalorder %s833_s2, %s833_s2 }
  0xe1   : > { %p7581_p8 = scmp.lt.s32.totalorder %s7579_s22, %s7572_s16 }
  0xe2   : > { %p7575_p2 = pnand %p7573_p0, %p8671_p7 }
  0xe3   : > { %p7582_p9 = por %p7581_p8, %p7580_p6 }
  0xe4   : > { %p7576_p4 = pneg %p7575_p2 }
  0xe6   : > { %p7583_p10 = pnand %p7582_p9, %p7576_p4 }
  0xe8   : > { %7586 = shalt.err (!%p7583_p10)
}
  0xe9   : > { %7023 = dma.hbm_to_vmem [thread:$0]  (!%p8655_p5), %s10309_s15, 16, %s833_s2, [#allocation28]  }
  0xea   : > { %s10310_s17 = sld [smem:[#allocation97_spill]] }
  0xf0   : > { %s7587_s28 = scalar_lea.hbm %s10310_s17, 16 }
  0xf1   : > { %p7588_p1 = scmp.ne.s32.totalorder %s10310_s17, %s7587_s28  ;;  %p7594_p12 = scmp.lt.u32.totalorder %s7587_s28, %s10310_s17 }
  0xf3   : > { %p7590_p3 = pnand %p7588_p1, %p8671_p7 }
  0xf5   : > { %p7591_p11 = pneg %p7590_p3 }
  0xf7   : > { %p7596_p13 = pnand %p7594_p12, %p7591_p11 }
  0xf9   : > { %7599 = shalt.err (!%p7596_p13)
}
  0xfa   : > { %s7600_s16 = scalar_lea.vmem %s857_s3, 16  ;;  %s7607_s2 = scalar_lea.vmem %s857_s3, 32 }
  0xfb   : > { %p7601_p0 = scmp.ne.s32.totalorder %s857_s3, %s7600_s16  ;;  %p7608_p6 = scmp.lt.s32.totalorder %s857_s3, %s857_s3 }
  0xfc   : > { %p7609_p8 = scmp.lt.s32.totalorder %s7607_s2, %s7600_s16 }
  0xfd   : > { %p7603_p2 = pnand %p7601_p0, %p8671_p7 }
  0xfe   : > { %p7610_p9 = por %p7609_p8, %p7608_p6 }
  0xff   : > { %p7604_p4 = pneg %p7603_p2 }
 0x101   : > { %p7611_p10 = pnand %p7610_p9, %p7604_p4 }
 0x103   : > { %7614 = shalt.err (!%p7611_p10)
}
 0x104   : > { %7029 = dma.hbm_to_vmem [thread:$0]  (!%p8655_p5), %s10310_s17, 16, %s857_s3, [#allocation31]  }
 0x105   : > { %s8384_s18 = smov [#allocation33]   ;;  %s8385_s4 = smov [#allocation36]  }
 0x106   : > { %s880_s7 = sshll.u32 %s8384_s18, 4  ;;  %s902_s28 = sshll.u32 %s8385_s4, 4  ;;  %s881_s7 = int_to_ptr.vmem [resolvable:$true] %s880_s7  ;;  %s903_s28 = int_to_ptr.vmem [resolvable:$true] %s902_s28 }
 0x107   : > { %s10311_s19 = sld [smem:[#allocation99_spill]] }
 0x10d   : > { %s7615_s0 = scalar_lea.hbm %s10311_s19, 16 }
 0x10e   : > { %p7616_p1 = scmp.ne.s32.totalorder %s10311_s19, %s7615_s0  ;;  %p7622_p12 = scmp.lt.u32.totalorder %s7615_s0, %s10311_s19 }
 0x110   : > { %p7618_p3 = pnand %p7616_p1, %p8671_p7 }
 0x112   : > { %p7619_p11 = pneg %p7618_p3 }
 0x114   : > { %p7624_p13 = pnand %p7622_p12, %p7619_p11 }
 0x116   : > { %7627 = shalt.err (!%p7624_p13)
}
 0x117   : > { %s7628_s3 = scalar_lea.vmem %s881_s7, 16  ;;  %s7635_s26 = scalar_lea.vmem %s881_s7, 32 }
 0x118   : > { %p7629_p0 = scmp.ne.s32.totalorder %s881_s7, %s7628_s3  ;;  %p7636_p6 = scmp.lt.s32.totalorder %s881_s7, %s881_s7 }
 0x119   : > { %p7637_p8 = scmp.lt.s32.totalorder %s7635_s26, %s7628_s3 }
 0x11a   : > { %p7631_p2 = pnand %p7629_p0, %p8671_p7 }
 0x11b   : > { %p7638_p9 = por %p7637_p8, %p7636_p6 }
 0x11c   : > { %p7632_p4 = pneg %p7631_p2 }
 0x11e   : > { %p7639_p10 = pnand %p7638_p9, %p7632_p4 }
 0x120   : > { %7642 = shalt.err (!%p7639_p10)
}
 0x121   : > { %7035 = dma.hbm_to_vmem [thread:$0]  (!%p8655_p5), %s10311_s19, 16, %s881_s7, [#allocation34]  }
 0x122   : > { %s10312_s21 = sld [smem:[#allocation101_spill]] }
 0x128   : > { %s7643_s0 = scalar_lea.hbm %s10312_s21, 128 }
 0x129   : > { %p7644_p1 = scmp.ne.s32.totalorder %s10312_s21, %s7643_s0  ;;  %p7650_p12 = scmp.lt.u32.totalorder %s7643_s0, %s10312_s21 }
 0x12b   : > { %p7646_p3 = pnand %p7644_p1, %p8671_p7 }
 0x12d   : > { %p7647_p11 = pneg %p7646_p3 }
 0x12f   : > { %p7652_p13 = pnand %p7650_p12, %p7647_p11 }
 0x131   : > { %7655 = shalt.err (!%p7652_p13)
}
 0x132   : > { %s7656_s3 = scalar_lea.vmem %s903_s28, 128  ;;  %p7664_p6 = scmp.lt.s32.totalorder %s903_s28, %s903_s28 }
 0x133   : > { %p7657_p0 = scmp.ne.s32.totalorder %s903_s28, %s7656_s3  ;;  %p7665_p8 = scmp.lt.s32.totalorder %s7656_s3, %s7656_s3 }
 0x135   : > { %p7659_p2 = pnand %p7657_p0, %p8671_p7  ;;  %p7666_p9 = por %p7665_p8, %p7664_p6 }
 0x137   : > { %p7660_p4 = pneg %p7659_p2 }
 0x139   : > { %p7667_p10 = pnand %p7666_p9, %p7660_p4 }
 0x13b   : > { %7670 = shalt.err (!%p7667_p10)
}
 0x13c   : > { %7041 = dma.hbm_to_vmem [thread:$0]  (!%p8655_p5), %s10312_s21, 128, %s903_s28, [#allocation37]  }
 0x13d   : > { %s8386_s18 = smov [#allocation39]   ;;  %s8387_s8 = smov [#allocation42]  }
 0x13e   : > { %s924_s4 = sshll.u32 %s8386_s18, 4  ;;  %s946_s24 = sshll.u32 %s8387_s8, 4  ;;  %s925_s4 = int_to_ptr.vmem [resolvable:$true] %s924_s4  ;;  %s947_s24 = int_to_ptr.vmem [resolvable:$true] %s946_s24 }
 0x13f   : > { %s10313_s23 = sld [smem:[#allocation103_spill]] }
 0x145   : > { %s7671_s16 = scalar_lea.hbm %s10313_s23, 16 }
 0x146   : > { %p7672_p1 = scmp.ne.s32.totalorder %s10313_s23, %s7671_s16  ;;  %p7678_p12 = scmp.lt.u32.totalorder %s7671_s16, %s10313_s23 }
 0x148   : > { %p7674_p3 = pnand %p7672_p1, %p8671_p7 }
 0x14a   : > { %p7675_p11 = pneg %p7674_p3 }
 0x14c   : > { %p7680_p13 = pnand %p7678_p12, %p7675_p11 }
 0x14e   : > { %7683 = shalt.err (!%p7680_p13)
}
 0x14f   : > { %s7684_s28 = scalar_lea.vmem %s925_s4, 16  ;;  %s7691_s26 = scalar_lea.vmem %s925_s4, 32 }
 0x150   : > { %p7685_p0 = scmp.ne.s32.totalorder %s925_s4, %s7684_s28  ;;  %p7692_p6 = scmp.lt.s32.totalorder %s925_s4, %s925_s4 }
 0x151   : > { %p7693_p8 = scmp.lt.s32.totalorder %s7691_s26, %s7684_s28 }
 0x152   : > { %p7687_p2 = pnand %p7685_p0, %p8671_p7 }
 0x153   : > { %p7694_p9 = por %p7693_p8, %p7692_p6 }
 0x154   : > { %p7688_p4 = pneg %p7687_p2 }
 0x156   : > { %p7695_p10 = pnand %p7694_p9, %p7688_p4 }
 0x158   : > { %7698 = shalt.err (!%p7695_p10)
}
 0x159   : > { %7047 = dma.hbm_to_vmem [thread:$0]  (!%p8655_p5), %s10313_s23, 16, %s925_s4, [#allocation40]  }
 0x15a   : > { %s10314_s25 = sld [smem:[#allocation105_spill]] }
 0x160   : > { %s7699_s16 = scalar_lea.hbm %s10314_s25, 64 }
 0x161   : > { %p7700_p1 = scmp.ne.s32.totalorder %s10314_s25, %s7699_s16  ;;  %p7706_p12 = scmp.lt.u32.totalorder %s7699_s16, %s10314_s25 }
 0x163   : > { %p7702_p3 = pnand %p7700_p1, %p8671_p7 }
 0x165   : > { %p7703_p11 = pneg %p7702_p3 }
 0x167   : > { %p7708_p13 = pnand %p7706_p12, %p7703_p11 }
 0x169   : > { %7711 = shalt.err (!%p7708_p13)
}
 0x16a   : > { %s7712_s28 = scalar_lea.vmem %s947_s24, 64  ;;  %p7720_p6 = scmp.lt.s32.totalorder %s947_s24, %s947_s24 }
 0x16b   : > { %p7713_p0 = scmp.ne.s32.totalorder %s947_s24, %s7712_s28  ;;  %p7721_p8 = scmp.lt.s32.totalorder %s7712_s28, %s7712_s28 }
 0x16d   : > { %p7715_p2 = pnand %p7713_p0, %p8671_p7  ;;  %p7722_p9 = por %p7721_p8, %p7720_p6 }
 0x16f   : > { %p7716_p4 = pneg %p7715_p2 }
 0x171   : > { %p7723_p10 = pnand %p7722_p9, %p7716_p4 }
 0x173   : > { %7726 = shalt.err (!%p7723_p10)
}
 0x174   : > { %s10315_s18 = sld [smem:[#allocation72_spill]]  ;;  %s6114_s8 = sadd.s32 4294967294, %s8373_s1  }
 0x175   : > { %7053 = dma.hbm_to_vmem [thread:$0]  (!%p8655_p5), %s10314_s25, 64, %s947_s24, [#allocation43]  }
 0x176   : > { %s71_s0 = sadd.s32 1, %s8365_s10  ;;  %s74_s6 = sadd.s32 1, %s8369_s29 }
 0x177   : > { %p72_p1 = scmp.ge.s32.totalorder %s71_s0, 2  ;;  %s83_s16 = sadd.s32 1, %s8353_s5 }
 0x178   : > { %p90_p3 = scmp.ne.s32.totalorder %s8353_s5, %s8349_s9  ;;  %p10221_p11 = scmp.eq.s32.totalorder %s8373_s1, 0 }
 0x179   : > { %s10431_s0 = smov (%p72_p1, %s71_s0), 0  ;;  %s10433_s6 = smov (!%p72_p1, %s74_s6), %s8369_s29 }
 0x17a   : > { %10316 = sst [smem:[#allocation74_spill]] %s10431_s0  ;;  %s79_s2 = ssub.s32 %s8365_s10, %s10431_s0 }
 0x17b   : > { %p8896_p12 = por %p10221_p11, %p90_p3  ;;  %p76_p13 = scmp.ge.s32.totalorder %s10433_s6, 2 }
 0x17c   : > { %p96_p0 = scmp.ne.s32.totalorder %s8349_s9, %s8345_s30  ;;  %p699_p2 = scmp.eq.s32.totalorder %s10315_s18, 3 }
 0x17d   : > { %p705_p4 = scmp.eq.s32.totalorder %s6114_s8, 3  ;;  %s10435_s6 = smov (%p76_p13, %s10433_s6), 0 }
 0x17e   : > { %10318 = sst [smem:[#allocation75_spill]] %s10435_s6  ;;  %p10319_p6 = scmp.eq.s32.totalorder %s10315_s18, 0 }
 0x17f   : > { %p8911_p9 = por %p699_p2, %p90_p3  ;;  %s8917_s7 = ssub.s32 %s8369_s29, %s10435_s6 }
 0x180   : > { %p8907_p8 = por %p10319_p6, %p96_p0  ;;  %p8919_p10 = por %p705_p4, %p96_p0 }
 0x181   : > { %s10321_s3 = scalar_select %p8911_p9, 1, 0 }
 0x182   : > { %s10320_s22 = scalar_select %p8907_p8, 1, 0 }
 0x183   : > { %10322 = sst [smem:[#allocation76_spill]] %s10321_s3  ;;  %s80_s4 = sor.u32 %s79_s2, %s8917_s7 }
 0x184   : > { %s10323_s28 = scalar_select %p8919_p10, 1, 0 }
 0x185   : > { %p81_p13 = scmp.eq.s32.totalorder %s80_s4, 0  ;;  %p10226_p11 = scmp.lt.s32.totalorder %s8373_s1, 4 }
 0x186   : > { %10324 = sst [smem:[#allocation77_spill]] %s10323_s28  ;;  %s10224_s26 = sand.u32 1, %s8353_s5  }
 0x187   : > { %s6139_s8 = sshll.u32 %s8369_s29, 1  ;;  %s8933_s12 = sshll.u32 %s10224_s26, 3 }
 0x188   : > { %s8929_s11 = scalar_select %p81_p13, %s8353_s5, %s83_s16  }
 0x189   : > { %s977_s13 = sadd.s32 %s8365_s10, %s6139_s8  ;;  %p8942_p3 = pnand %p10226_p11, %p8896_p12 }
 0x18a   : > { %10325 = sst [smem:[#allocation78_spill]] %s8929_s11  ;;  %s8936_s15 = sshll.u32 %s977_s13, 7 }
 0x18b   : > { %s10326_s17 = scalar_select %p8942_p3, 1, 0 }
 0x18c   : > { %s8947_s2 = sand.u32 1, %s8373_s1   ;;  %s10327_s19 = sld [smem:[#allocation81_spill]] }
 0x18d   : > { %s992_s13 = scalar_lea.vmem [#allocation6], %s8933_s12  ;;  %p8963_p0 = pneg %p8942_p3 }
 0x18e   : > { %s1001_s24 = sshll.u32 %s992_s13, 4  ;;  %s8956_s24 = int_to_ptr.vmem [resolvable:$true] %s1001_s24 }
 0x18f   : > { %s10328_s21 = scalar_select %p8963_p0, 1, 0 }
 0x192   : > { %s8953_s26 = scalar_lea.hbm %s10327_s19, %s8936_s15  ;;  %s7732_s23 = scalar_lea.hbm %s10327_s19, 512 }
 0x193   : > { %s7727_s20 = scalar_lea.hbm %s8953_s26, 128  ;;  %p7733_p6 = scmp.lt.u32.totalorder %s8953_s26, %s10327_s19 }
 0x194   : > { %p7728_p12 = scmp.ne.s32.totalorder %s8953_s26, %s7727_s20  ;;  %p7734_p13 = scmp.lt.u32.totalorder %s7732_s23, %s7727_s20 }
 0x195   : > { %p7736_p1 = scmp.lt.u32.totalorder %s7727_s20, %s8953_s26 }
 0x196   : > { %p7730_p2 = pnand %p8963_p0, %p7728_p12  ;;  %p7735_p11 = por %p7734_p13, %p7733_p6 }
 0x198   : > { %p7731_p4 = pneg %p7730_p2  ;;  %p7737_p10 = por %p7736_p1, %p7735_p11 }
 0x19a   : > { %p7738_p9 = pnand %p7737_p10, %p7731_p4 }
 0x19c   : > { %7741 = shalt.err (!%p7738_p9)
}
 0x19d   : > { %s7742_s8 = scalar_lea.vmem %s8956_s24, 128  ;;  %s8388_s4 = smov [#allocation6]  }
 0x19e   : > { %p7743_p12 = scmp.ne.s32.totalorder %s8956_s24, %s7742_s8  ;;  %s7747_s16 = sshll.u32 %s8388_s4, 4  ;;  %s7748_s16 = int_to_ptr.vmem [resolvable:$false] %s7747_s16 }
 0x19f   : > { %s7749_s25 = scalar_lea.vmem %s7748_s16, 256  ;;  %p7750_p5 = scmp.lt.s32.totalorder %s8956_s24, %s7748_s16 }
 0x1a0   : > { %p7745_p2 = pnand %p7743_p12, %p8963_p0  ;;  %p7751_p7 = scmp.lt.s32.totalorder %s7749_s25, %s7742_s8 }
 0x1a2   : > { %p7746_p8 = pneg %p7745_p2  ;;  %p7752_p6 = por %p7751_p7, %p7750_p5 }
 0x1a4   : > { %p7753_p13 = pnand %p7752_p6, %p7746_p8 }
 0x1a6   : > { %7756 = shalt.err (!%p7753_p13)
}
 0x1a7   : > { %s10329_s23 = scalar_lea.sflag [#allocation7], %s8947_s2  ;;  %s10330_s20 = sld [smem:[#allocation66_spill]] }
 0x1a8   : > { %s10331_s13 = sld [smem:[#allocation65_spill]]  ;;  %s10332_s4 = sld [smem:[#allocation64_spill]] }
 0x1a9   : > { %7063 = dma.hbm_to_vmem [thread:$0]  (!%p8942_p3), %s8953_s26, 128, %s8956_s24, %s10329_s23  }
 0x1aa   : > { %p10333_p7 = scmp.eq.s32.totalorder %s8917_s7, 0  ;;  %p10335_p11 = scmp.eq.s32.totalorder %s8373_s1, 0 }
 0x1ab   : > { %s10237_s19 = smul.u32 1280, %s8369_s29  ;;  %p10336_p10 = scmp.eq.s32.totalorder %s10315_s18, 0 }
 0x1ac   : > { %p10339_p4 = scmp.lt.s32.totalorder %s8373_s1, 4  ;;  %s10341_s23 = sld [smem:[#allocation83_spill]] }
 0x1ad   : > { %s137_s8 = sadd.s32 1, %s10330_s20  ;;  %s1010_s25 = sand.u32 1, %s10330_s20  }
 0x1ae   : > { %p144_p5 = scmp.ne.s32.totalorder %s10330_s20, %s10331_s13  ;;  %p150_p9 = scmp.ne.s32.totalorder %s10331_s13, %s10332_s4 }
 0x1af   : > { %s8994_s16 = scalar_select %p10333_p7, %s10330_s20, %s137_s8  }
 0x1b0   : > { %p146_p8 = por %p144_p5, %p10335_p11  ;;  %p9004_p1 = por %p150_p9, %p10336_p10 }
 0x1b1   : > { %10334 = sst [smem:[#allocation79_spill]] %s8994_s16  ;;  %s9008_s0 = smul.u32 80, %s1010_s25 }
 0x1b2   : > { %s10337_s6 = scalar_select %p9004_p1, 1, 0 }
 0x1b3   : > { %p9012_p12 = pnand %p10339_p4, %p146_p8  ;;  %s9021_s20 = scalar_lea.hbm %s10341_s23, %s10237_s19 }
 0x1b4   : > { %10338 = sst [smem:[#allocation64_spill]] %s10337_s6  ;;  %s1033_s18 = scalar_lea.vmem [#allocation9], %s9008_s0 }
 0x1b5   : > { %s10340_s26 = scalar_select %p9012_p12, 1, 0 }
 0x1b6   : > { %s1040_s13 = sshll.u32 %s1033_s18, 4  ;;  %s8389_s4 = smov [#allocation17]   ;;  %s9024_s13 = int_to_ptr.vmem [resolvable:$true] %s1040_s13 }
 0x1b7   : > { %s9026_s8 = sshll.u32 %s8389_s4, 4  ;;  %s10247_s25 = scalar_lea.sflag [#allocation10], %s8947_s2  ;;  %s749_s8 = int_to_ptr.vmem [resolvable:$true] %s9026_s8 }
 0x1b8   : > { %s7757_s10 = scalar_lea.hbm %s9021_s20, 1280  ;;  %p10244_p6 = pneg %p9012_p12 }
 0x1b9   : > { %p7758_p2 = scmp.ne.s32.totalorder %s9021_s20, %s7757_s10  ;;  %s7762_s19 = scalar_lea.hbm %s10341_s23, 2560 }
 0x1ba   : > { %p7763_p7 = scmp.lt.u32.totalorder %s9021_s20, %s10341_s23  ;;  %p7764_p11 = scmp.lt.u32.totalorder %s7762_s19, %s7757_s10 }
 0x1bb   : > { %p7760_p13 = pnand %p10244_p6, %p7758_p2  ;;  %p7766_p9 = scmp.lt.u32.totalorder %s7757_s10, %s9021_s20 }
 0x1bc   : > { %p7765_p8 = por %p7764_p11, %p7763_p7 }
 0x1bd   : > { %p7761_p5 = pneg %p7760_p13 }
 0x1be   : > { %p7767_p10 = por %p7766_p9, %p7765_p8 }
 0x1c0   : > { %p7768_p4 = pnand %p7767_p10, %p7761_p5 }
 0x1c2   : > { %7771 = shalt.err (!%p7768_p4)
}
 0x1c3   : > { %s7772_s4 = scalar_lea.vmem %s9024_s13, 1280  ;;  %s8390_s7 = smov [#allocation9]  }
 0x1c4   : > { %p7773_p2 = scmp.ne.s32.totalorder %s9024_s13, %s7772_s4  ;;  %s7777_s24 = sshll.u32 %s8390_s7, 4  ;;  %s7778_s24 = int_to_ptr.vmem [resolvable:$false] %s7777_s24 }
 0x1c5   : > { %s7779_s11 = scalar_lea.vmem %s7778_s24, 2560  ;;  %p7780_p3 = scmp.lt.s32.totalorder %s9024_s13, %s7778_s24 }
 0x1c6   : > { %p7775_p13 = pnand %p7773_p2, %p10244_p6  ;;  %p7781_p7 = scmp.lt.s32.totalorder %s7779_s11, %s7772_s4 }
 0x1c8   : > { %p7776_p1 = pneg %p7775_p13  ;;  %p7782_p11 = por %p7781_p7, %p7780_p3 }
 0x1ca   : > { %p7783_p8 = pnand %p7782_p11, %p7776_p1 }
 0x1cc   : > { %7786 = shalt.err (!%p7783_p8)
}
 0x1cd   : > { %s10342_s19 = smov 8   ;;  %s10343_s10 = smov 128  }
 0x1ce   : > { %7069 = dma.hbm_to_vmem [thread:$0]  (!%p9012_p12), %s9021_s20, 1280, %s9024_s13, %s10247_s25, %s10343_s10, %s10343_s10, %s10342_s19  }
 0x1cf   : > { %s10344_s24 = sld [smem:[#allocation88_spill]]  ;;  %p10345_p1 = scmp.ne.s32.totalorder %s10304_s14, 0 }
 0x1d5   : > { %s7787_s4 = scalar_lea.hbm %s10344_s24, 512 }
 0x1d6   : > { %p7788_p3 = scmp.ne.s32.totalorder %s10344_s24, %s7787_s4  ;;  %p7794_p10 = scmp.lt.u32.totalorder %s7787_s4, %s10344_s24 }
 0x1d8   : > { %p7790_p5 = pnand %p7788_p3, %p10345_p1 }
 0x1da   : > { %p7791_p9 = pneg %p7790_p5 }
 0x1dc   : > { %p7796_p4 = pnand %p7794_p10, %p7791_p9 }
 0x1de   : > { %7799 = shalt.err (!%p7796_p4)
}
 0x1df   : > { %s7800_s30 = scalar_lea.vmem %s749_s8, 512  ;;  %p7808_p11 = scmp.lt.s32.totalorder %s749_s8, %s749_s8 }
 0x1e0   : > { %p7801_p2 = scmp.ne.s32.totalorder %s749_s8, %s7800_s30  ;;  %p7809_p8 = scmp.lt.s32.totalorder %s7800_s30, %s7800_s30 }
 0x1e2   : > { %p7803_p13 = pnand %p7801_p2, %p10345_p1  ;;  %p7810_p6 = por %p7809_p8, %p7808_p11 }
 0x1e4   : > { %p7804_p7 = pneg %p7803_p13 }
 0x1e6   : > { %p7811_p12 = pnand %p7810_p6, %p7804_p7 }
 0x1e8   : > { %7814 = shalt.err (!%p7811_p12)
}
 0x1e9   : > { %p10346_p3 = scmp.ne.s32.totalorder %s10302_s27, 0  ;;  %s8391_s23 = smov [#allocation20]  }
 0x1ea   : > { %s772_s20 = sshll.u32 %s8391_s23, 4  ;;  %s8392_s13 = smov [#allocation23]   ;;  %s773_s20 = int_to_ptr.vmem [resolvable:$true] %s772_s20 }
 0x1eb   : > { %7002 = dma.hbm_to_vmem [thread:$0]  (!%p10346_p3), %s10344_s24, 512, %s749_s8, [#allocation16], %s10343_s10, %s10343_s10, %s10342_s19  }
 0x1ec   : > { %s797_s18 = sshll.u32 %s8392_s13, 4  ;;  %s10347_s4 = sld [smem:[#allocation90_spill]]  ;;  %s798_s18 = int_to_ptr.vmem [resolvable:$true] %s797_s18 }
 0x1f2   : > { %s10348_s11 = smov %s10347_s4  ;;  %s7815_s25 = scalar_lea.hbm %s10347_s4, 512 }
 0x1f3   : > { %p7816_p12 = scmp.ne.s32.totalorder %s10348_s11, %s7815_s25  ;;  %p7822_p9 = scmp.lt.u32.totalorder %s7815_s25, %s10348_s11 }
 0x1f5   : > { %p7818_p6 = pnand %p7816_p12, %p10345_p1 }
 0x1f7   : > { %p7819_p5 = pneg %p7818_p6 }
 0x1f9   : > { %p7824_p10 = pnand %p7822_p9, %p7819_p5 }
 0x1fb   : > { %7827 = shalt.err (!%p7824_p10)
}
 0x1fc   : > { %s7828_s8 = scalar_lea.vmem %s773_s20, 512  ;;  %p7836_p7 = scmp.lt.s32.totalorder %s773_s20, %s773_s20 }
 0x1fd   : > { %p7829_p4 = scmp.ne.s32.totalorder %s773_s20, %s7828_s8  ;;  %p7837_p11 = scmp.lt.s32.totalorder %s7828_s8, %s7828_s8 }
 0x1ff   : > { %p7831_p2 = pnand %p7829_p4, %p10345_p1  ;;  %p7838_p8 = por %p7837_p11, %p7836_p7 }
 0x201   : > { %p7832_p13 = pneg %p7831_p2 }
 0x203   : > { %p7839_p0 = pnand %p7838_p8, %p7832_p13 }
 0x205   : > { %7842 = shalt.err (!%p7839_p0)
}
 0x206   : > { %7008 = dma.hbm_to_vmem [thread:$0]  (!%p10346_p3), %s10348_s11, 512, %s773_s20, [#allocation19], %s10343_s10, %s10343_s10, %s10342_s19  }
 0x207   : > { %s10349_s16 = sld [smem:[#allocation92_spill]] }
 0x20d   : > { %s7843_s23 = scalar_lea.hbm %s10349_s16, 16 }
 0x20e   : > { %p7844_p12 = scmp.ne.s32.totalorder %s10349_s16, %s7843_s23  ;;  %p7850_p5 = scmp.lt.u32.totalorder %s7843_s23, %s10349_s16 }
 0x210   : > { %p7846_p0 = pnand %p7844_p12, %p10345_p1 }
 0x212   : > { %p7847_p6 = pneg %p7846_p0 }
 0x214   : > { %p7852_p9 = pnand %p7850_p5, %p7847_p6 }
 0x216   : > { %7855 = shalt.err (!%p7852_p9)
}
 0x217   : > { %s7856_s28 = scalar_lea.vmem %s798_s18, 16  ;;  %s7863_s20 = scalar_lea.vmem %s798_s18, 32 }
 0x218   : > { %p7857_p10 = scmp.ne.s32.totalorder %s798_s18, %s7856_s28  ;;  %p7864_p13 = scmp.lt.s32.totalorder %s798_s18, %s798_s18 }
 0x219   : > { %p7865_p7 = scmp.lt.s32.totalorder %s7863_s20, %s7856_s28 }
 0x21a   : > { %p7859_p4 = pnand %p7857_p10, %p10345_p1 }
 0x21b   : > { %p7866_p11 = por %p7865_p7, %p7864_p13 }
 0x21c   : > { %p7860_p2 = pneg %p7859_p4 }
 0x21e   : > { %p7867_p8 = pnand %p7866_p11, %p7860_p2 }
 0x220   : > { %7870 = shalt.err (!%p7867_p8)
}
 0x221   : > { %7014 = dma.hbm_to_vmem [thread:$0]  (!%p10346_p3), %s10349_s16, 16, %s798_s18, [#allocation22]  }
 0x222   : > { %s8393_s6 = smov [#allocation26]   ;;  %s8394_s25 = smov [#allocation29]  }
 0x223   : > { %s818_s3 = sshll.u32 %s8393_s6, 4  ;;  %s842_s23 = sshll.u32 %s8394_s25, 4  ;;  %s819_s3 = int_to_ptr.vmem [resolvable:$true] %s818_s3  ;;  %s843_s23 = int_to_ptr.vmem [resolvable:$true] %s842_s23 }
 0x224   : > { %s10350_s30 = sld [smem:[#allocation94_spill]] }
 0x22a   : > { %s10351_s11 = smov %s10350_s30  ;;  %s7871_s4 = scalar_lea.hbm %s10350_s30, 512 }
 0x22b   : > { %p7872_p12 = scmp.ne.s32.totalorder %s10351_s11, %s7871_s4  ;;  %p7878_p5 = scmp.lt.u32.totalorder %s7871_s4, %s10351_s11 }
 0x22d   : > { %p7874_p0 = pnand %p7872_p12, %p10345_p1 }
 0x22f   : > { %p7875_p6 = pneg %p7874_p0 }
 0x231   : > { %p7880_p9 = pnand %p7878_p5, %p7875_p6 }
 0x233   : > { %7883 = shalt.err (!%p7880_p9)
}
 0x234   : > { %s7884_s18 = scalar_lea.vmem %s819_s3, 512  ;;  %p7892_p13 = scmp.lt.s32.totalorder %s819_s3, %s819_s3 }
 0x235   : > { %p7885_p10 = scmp.ne.s32.totalorder %s819_s3, %s7884_s18  ;;  %p7893_p7 = scmp.lt.s32.totalorder %s7884_s18, %s7884_s18 }
 0x237   : > { %p7887_p4 = pnand %p7885_p10, %p10345_p1  ;;  %p7894_p11 = por %p7893_p7, %p7892_p13 }
 0x239   : > { %p7888_p2 = pneg %p7887_p4 }
 0x23b   : > { %p7895_p8 = pnand %p7894_p11, %p7888_p2 }
 0x23d   : > { %7898 = shalt.err (!%p7895_p8)
}
 0x23e   : > { %7020 = dma.hbm_to_vmem [thread:$0]  (!%p10346_p3), %s10351_s11, 512, %s819_s3, [#allocation25], %s10343_s10, %s10343_s10, %s10342_s19  }
 0x23f   : > { %s10352_s13 = sld [smem:[#allocation96_spill]] }
 0x245   : > { %s7899_s7 = scalar_lea.hbm %s10352_s13, 1024 }
 0x246   : > { %p7900_p12 = scmp.ne.s32.totalorder %s10352_s13, %s7899_s7  ;;  %p7906_p5 = scmp.lt.u32.totalorder %s7899_s7, %s10352_s13 }
 0x248   : > { %p7902_p0 = pnand %p7900_p12, %p10345_p1 }
 0x24a   : > { %p7903_p6 = pneg %p7902_p0 }
 0x24c   : > { %p7908_p9 = pnand %p7906_p5, %p7903_p6 }
 0x24e   : > { %7911 = shalt.err (!%p7908_p9)
}
 0x24f   : > { %s7912_s8 = scalar_lea.vmem %s843_s23, 1024  ;;  %p7920_p13 = scmp.lt.s32.totalorder %s843_s23, %s843_s23 }
 0x250   : > { %p7913_p10 = scmp.ne.s32.totalorder %s843_s23, %s7912_s8  ;;  %p7921_p7 = scmp.lt.s32.totalorder %s7912_s8, %s7912_s8 }
 0x252   : > { %p7915_p4 = pnand %p7913_p10, %p10345_p1  ;;  %p7922_p11 = por %p7921_p7, %p7920_p13 }
 0x254   : > { %p7916_p2 = pneg %p7915_p4 }
 0x256   : > { %p7923_p8 = pnand %p7922_p11, %p7916_p2 }
 0x258   : > { %7926 = shalt.err (!%p7923_p8)
}
 0x259   : > { %7026 = dma.hbm_to_vmem [thread:$0]  (!%p10346_p3), %s10352_s13, 1024, %s843_s23, [#allocation28], %s10343_s10, %s10343_s10, %s10342_s19  }
 0x25a   : > { %s8395_s24 = smov [#allocation32]   ;;  %s8396_s6 = smov [#allocation35]  }
 0x25b   : > { %s866_s1 = sshll.u32 %s8395_s24, 4  ;;  %s891_s25 = sshll.u32 %s8396_s6, 4  ;;  %s867_s1 = int_to_ptr.vmem [resolvable:$true] %s866_s1  ;;  %s892_s25 = int_to_ptr.vmem [resolvable:$true] %s891_s25 }
 0x25c   : > { %s10353_s4 = sld [smem:[#allocation98_spill]] }
 0x262   : > { %s10354_s20 = smov %s10353_s4  ;;  %s7927_s28 = scalar_lea.hbm %s10353_s4, 256 }
 0x263   : > { %p7928_p12 = scmp.ne.s32.totalorder %s10354_s20, %s7927_s28  ;;  %p7934_p5 = scmp.lt.u32.totalorder %s7927_s28, %s10354_s20 }
 0x265   : > { %p7930_p0 = pnand %p7928_p12, %p10345_p1 }
 0x267   : > { %p7931_p6 = pneg %p7930_p0 }
 0x269   : > { %p7936_p9 = pnand %p7934_p5, %p7931_p6 }
 0x26b   : > { %7939 = shalt.err (!%p7936_p9)
}
 0x26c   : > { %s7940_s23 = scalar_lea.vmem %s867_s1, 256  ;;  %p7948_p13 = scmp.lt.s32.totalorder %s867_s1, %s867_s1 }
 0x26d   : > { %p7941_p10 = scmp.ne.s32.totalorder %s867_s1, %s7940_s23  ;;  %p7949_p7 = scmp.lt.s32.totalorder %s7940_s23, %s7940_s23 }
 0x26f   : > { %p7943_p4 = pnand %p7941_p10, %p10345_p1  ;;  %p7950_p11 = por %p7949_p7, %p7948_p13 }
 0x271   : > { %p7944_p2 = pneg %p7943_p4 }
 0x273   : > { %p7951_p8 = pnand %p7950_p11, %p7944_p2 }
 0x275   : > { %7954 = shalt.err (!%p7951_p8)
}
 0x276   : > { %7032 = dma.hbm_to_vmem [thread:$0]  (!%p10346_p3), %s10354_s20, 256, %s867_s1, [#allocation31], %s10343_s10, %s10343_s10, %s10342_s19  }
 0x277   : > { %s10355_s6 = sld [smem:[#allocation100_spill]] }
 0x27d   : > { %s7955_s7 = scalar_lea.hbm %s10355_s6, 16 }
 0x27e   : > { %p7956_p12 = scmp.ne.s32.totalorder %s10355_s6, %s7955_s7  ;;  %p7962_p5 = scmp.lt.u32.totalorder %s7955_s7, %s10355_s6 }
 0x280   : > { %p7958_p0 = pnand %p7956_p12, %p10345_p1 }
 0x282   : > { %p7959_p6 = pneg %p7958_p0 }
 0x284   : > { %p7964_p9 = pnand %p7962_p5, %p7959_p6 }
 0x286   : > { %7967 = shalt.err (!%p7964_p9)
}
 0x287   : > { %s7968_s3 = scalar_lea.vmem %s892_s25, 16  ;;  %s7975_s1 = scalar_lea.vmem %s892_s25, 32 }
 0x288   : > { %p7969_p10 = scmp.ne.s32.totalorder %s892_s25, %s7968_s3  ;;  %p7976_p13 = scmp.lt.s32.totalorder %s892_s25, %s892_s25 }
 0x289   : > { %p7977_p7 = scmp.lt.s32.totalorder %s7975_s1, %s7968_s3 }
 0x28a   : > { %p7971_p4 = pnand %p7969_p10, %p10345_p1 }
 0x28b   : > { %p7978_p11 = por %p7977_p7, %p7976_p13 }
 0x28c   : > { %p7972_p2 = pneg %p7971_p4 }
 0x28e   : > { %p7979_p8 = pnand %p7978_p11, %p7972_p2 }
 0x290   : > { %7982 = shalt.err (!%p7979_p8)
}
 0x291   : > { %7038 = dma.hbm_to_vmem [thread:$0]  (!%p10346_p3), %s10355_s6, 16, %s892_s25, [#allocation34]  }
 0x292   : > { %s8397_s16 = smov [#allocation38]   ;;  %s8398_s24 = smov [#allocation41]  }
 0x293   : > { %s913_s18 = sshll.u32 %s8397_s16, 4  ;;  %s935_s7 = sshll.u32 %s8398_s24, 4  ;;  %s914_s18 = int_to_ptr.vmem [resolvable:$true] %s913_s18  ;;  %s936_s7 = int_to_ptr.vmem [resolvable:$true] %s935_s7 }
 0x294   : > { %s10356_s28 = sld [smem:[#allocation102_spill]] }
 0x29a   : > { %s10357_s13 = smov %s10356_s28  ;;  %s7983_s8 = scalar_lea.hbm %s10356_s28, 128 }
 0x29b   : > { %p7984_p12 = scmp.ne.s32.totalorder %s10357_s13, %s7983_s8  ;;  %p7990_p5 = scmp.lt.u32.totalorder %s7983_s8, %s10357_s13 }
 0x29d   : > { %p7986_p0 = pnand %p7984_p12, %p10345_p1 }
 0x29f   : > { %p7987_p6 = pneg %p7986_p0 }
 0x2a1   : > { %p7992_p9 = pnand %p7990_p5, %p7987_p6 }
 0x2a3   : > { %7995 = shalt.err (!%p7992_p9)
}
 0x2a4   : > { %s7996_s25 = scalar_lea.vmem %s914_s18, 128  ;;  %p8004_p13 = scmp.lt.s32.totalorder %s914_s18, %s914_s18 }
 0x2a5   : > { %p7997_p10 = scmp.ne.s32.totalorder %s914_s18, %s7996_s25  ;;  %p8005_p7 = scmp.lt.s32.totalorder %s7996_s25, %s7996_s25 }
 0x2a7   : > { %p7999_p4 = pnand %p7997_p10, %p10345_p1  ;;  %p8006_p11 = por %p8005_p7, %p8004_p13 }
 0x2a9   : > { %p8000_p2 = pneg %p7999_p4 }
 0x2ab   : > { %p8007_p8 = pnand %p8006_p11, %p8000_p2 }
 0x2ad   : > { %8010 = shalt.err (!%p8007_p8)
}
 0x2ae   : > { %7044 = dma.hbm_to_vmem [thread:$0]  (!%p10346_p3), %s10357_s13, 128, %s914_s18, [#allocation37]  }
 0x2af   : > { %s10358_s30 = sld [smem:[#allocation104_spill]] }
 0x2b5   : > { %s10359_s3 = smov %s10358_s30  ;;  %s8011_s4 = scalar_lea.hbm %s10358_s30, 16 }
 0x2b6   : > { %p8012_p12 = scmp.ne.s32.totalorder %s10359_s3, %s8011_s4  ;;  %p8018_p5 = scmp.lt.u32.totalorder %s8011_s4, %s10359_s3 }
 0x2b8   : > { %p8014_p0 = pnand %p8012_p12, %p10345_p1 }
 0x2ba   : > { %p8015_p6 = pneg %p8014_p0 }
 0x2bc   : > { %p8020_p9 = pnand %p8018_p5, %p8015_p6 }
 0x2be   : > { %8023 = shalt.err (!%p8020_p9)
}
 0x2bf   : > { %s8024_s25 = scalar_lea.vmem %s936_s7, 16  ;;  %s8031_s18 = scalar_lea.vmem %s936_s7, 32 }
 0x2c0   : > { %p8025_p10 = scmp.ne.s32.totalorder %s936_s7, %s8024_s25  ;;  %p8032_p13 = scmp.lt.s32.totalorder %s936_s7, %s936_s7 }
 0x2c1   : > { %p8033_p7 = scmp.lt.s32.totalorder %s8031_s18, %s8024_s25 }
 0x2c2   : > { %p8027_p4 = pnand %p8025_p10, %p10345_p1 }
 0x2c3   : > { %p8034_p11 = por %p8033_p7, %p8032_p13 }
 0x2c4   : > { %p8028_p2 = pneg %p8027_p4 }
 0x2c6   : > { %p8035_p8 = pnand %p8034_p11, %p8028_p2 }
 0x2c8   : > { %8038 = shalt.err (!%p8035_p8)
}
 0x2c9   : > { %7050 = dma.hbm_to_vmem [thread:$0]  (!%p10346_p3), %s10359_s3, 16, %s936_s7, [#allocation40]  }
 0x2ca   : > { %s8399_s20 = smov [#allocation44]   ;;  %s10360_s28 = sld [smem:[#allocation106_spill]] }
 0x2cb   : > { %s957_s24 = sshll.u32 %s8399_s20, 4  ;;  %s958_s24 = int_to_ptr.vmem [resolvable:$true] %s957_s24 }
 0x2d0   : > { %s10361_s23 = smov %s10360_s28  ;;  %s8039_s8 = scalar_lea.hbm %s10360_s28, 64 }
 0x2d1   : > { %p8040_p12 = scmp.ne.s32.totalorder %s10361_s23, %s8039_s8  ;;  %p8046_p5 = scmp.lt.u32.totalorder %s8039_s8, %s10361_s23 }
 0x2d3   : > { %p8042_p0 = pnand %p8040_p12, %p10345_p1 }
 0x2d5   : > { %p8043_p6 = pneg %p8042_p0 }
 0x2d7   : > { %p8048_p9 = pnand %p8046_p5, %p8043_p6 }
 0x2d9   : > { %8051 = shalt.err (!%p8048_p9)
}
 0x2da   : > { %s8052_s7 = scalar_lea.vmem %s958_s24, 64  ;;  %p8060_p13 = scmp.lt.s32.totalorder %s958_s24, %s958_s24 }
 0x2db   : > { %p8053_p10 = scmp.ne.s32.totalorder %s958_s24, %s8052_s7  ;;  %p8061_p7 = scmp.lt.s32.totalorder %s8052_s7, %s8052_s7 }
 0x2dd   : > { %p8055_p4 = pnand %p8053_p10, %p10345_p1  ;;  %p8062_p11 = por %p8061_p7, %p8060_p13 }
 0x2df   : > { %p8056_p2 = pneg %p8055_p4 }
 0x2e1   : > { %p8063_p8 = pnand %p8062_p11, %p8056_p2 }
 0x2e3   : > { %8066 = shalt.err (!%p8063_p8)
}
 0x2e4   : > { %7056 = dma.hbm_to_vmem [thread:$0]  (!%p10346_p3), %s10361_s23, 64, %s958_s24, [#allocation43]  }
 0x2e5   : > { %s10362_s14 = sld [smem:[#allocation80_spill]]  ;;  %s972_s4 = scalar_lea.vmem [#allocation3], %s8933_s12 }
 0x2e6   : > { %s981_s28 = sshll.u32 %s972_s4, 4  ;;  %s10363_s27 = sand.u32 1, %s8353_s5   ;;  %s982_s28 = int_to_ptr.vmem [resolvable:$true] %s981_s28 }
 0x2e7   : > { %s969_s8 = scalar_lea.sflag [#allocation4], %s10363_s27  ;;  %p10364_p12 = scmp.ne.s32.totalorder %s10328_s21, 0 }
 0x2eb   : > { %s9259_s30 = scalar_lea.hbm %s10362_s14, %s8936_s15  ;;  %s8072_s18 = scalar_lea.hbm %s10362_s14, 512 }
 0x2ec   : > { %s8067_s1 = scalar_lea.hbm %s9259_s30, 128  ;;  %p8073_p3 = scmp.lt.u32.totalorder %s9259_s30, %s10362_s14 }
 0x2ed   : > { %p8068_p1 = scmp.ne.s32.totalorder %s9259_s30, %s8067_s1  ;;  %p8074_p5 = scmp.lt.u32.totalorder %s8072_s18, %s8067_s1 }
 0x2ee   : > { %p8076_p10 = scmp.lt.u32.totalorder %s8067_s1, %s9259_s30 }
 0x2ef   : > { %p8070_p0 = pnand %p8068_p1, %p10364_p12  ;;  %p8075_p9 = por %p8074_p5, %p8073_p3 }
 0x2f1   : > { %p8071_p6 = pneg %p8070_p0  ;;  %p8077_p4 = por %p8076_p10, %p8075_p9 }
 0x2f3   : > { %p8078_p2 = pnand %p8077_p4, %p8071_p6 }
 0x2f5   : > { %8081 = shalt.err (!%p8078_p2)
}
 0x2f6   : > { %s8082_s11 = scalar_lea.vmem %s982_s28, 128  ;;  %s8400_s16 = smov [#allocation3]  }
 0x2f7   : > { %p8083_p13 = scmp.ne.s32.totalorder %s982_s28, %s8082_s11  ;;  %s8087_s20 = sshll.u32 %s8400_s16, 4  ;;  %s8088_s20 = int_to_ptr.vmem [resolvable:$false] %s8087_s20 }
 0x2f8   : > { %s8089_s4 = scalar_lea.vmem %s8088_s20, 256  ;;  %p8090_p8 = scmp.lt.s32.totalorder %s982_s28, %s8088_s20 }
 0x2f9   : > { %p8085_p7 = pnand %p8083_p13, %p10364_p12  ;;  %p8091_p1 = scmp.lt.s32.totalorder %s8089_s4, %s8082_s11 }
 0x2fb   : > { %p8086_p11 = pneg %p8085_p7  ;;  %p8092_p0 = por %p8091_p1, %p8090_p8 }
 0x2fd   : > { %p8093_p3 = pnand %p8092_p0, %p8086_p11 }
 0x2ff   : > { %8096 = shalt.err (!%p8093_p3)
}
 0x300   : > { %p10365_p5 = scmp.ne.s32.totalorder %s10326_s17, 0  ;;  %s10366_s27 = smul.u32 1280, %s8369_s29 }
 0x301   : > { %s10367_s25 = sld [smem:[#allocation82_spill]]  ;;  %s1012_s7 = scalar_lea.vmem [#allocation8], %s9008_s0 }
 0x302   : > { %7060 = dma.hbm_to_vmem [thread:$0]  (!%p10365_p5), %s9259_s30, 128, %s982_s28, %s969_s8  }
 0x303   : > { %s1019_s6 = sshll.u32 %s1012_s7, 4  ;;  %p10368_p9 = scmp.ne.s32.totalorder %s10340_s26, 0  ;;  %s9289_s6 = int_to_ptr.vmem [resolvable:$true] %s1019_s6 }
 0x305   : > { %p10369_p10 = pneg %p10368_p9 }
 0x307   : > { %s9286_s18 = scalar_lea.hbm %s10367_s25, %s10366_s27  ;;  %s8102_s8 = scalar_lea.hbm %s10367_s25, 2560 }
 0x308   : > { %s8097_s11 = scalar_lea.hbm %s9286_s18, 1280  ;;  %p8103_p13 = scmp.lt.u32.totalorder %s9286_s18, %s10367_s25 }
 0x309   : > { %p8098_p6 = scmp.ne.s32.totalorder %s9286_s18, %s8097_s11  ;;  %p8104_p7 = scmp.lt.u32.totalorder %s8102_s8, %s8097_s11 }
 0x30a   : > { %p8106_p8 = scmp.lt.u32.totalorder %s8097_s11, %s9286_s18 }
 0x30b   : > { %p8100_p4 = pnand %p8098_p6, %p10369_p10  ;;  %p8105_p11 = por %p8104_p7, %p8103_p13 }
 0x30d   : > { %p8101_p2 = pneg %p8100_p4  ;;  %p8107_p1 = por %p8106_p8, %p8105_p11 }
 0x30f   : > { %p8108_p0 = pnand %p8107_p1, %p8101_p2 }
 0x311   : > { %8111 = shalt.err (!%p8108_p0)
}
 0x312   : > { %s8112_s0 = scalar_lea.vmem %s9289_s6, 1280  ;;  %p10370_p6 = pmov %p10369_p10 }
 0x313   : > { %p8113_p3 = scmp.ne.s32.totalorder %s9289_s6, %s8112_s0  ;;  %s8401_s4 = smov [#allocation8]  }
 0x314   : > { %s8117_s27 = sshll.u32 %s8401_s4, 4  ;;  %s8118_s27 = int_to_ptr.vmem [resolvable:$false] %s8117_s27 }
 0x315   : > { %p8115_p10 = pnand %p8113_p3, %p10370_p6  ;;  %s8119_s1 = scalar_lea.vmem %s8118_s27, 2560 }
 0x316   : > { %p8120_p5 = scmp.lt.s32.totalorder %s9289_s6, %s8118_s27  ;;  %p8121_p13 = scmp.lt.s32.totalorder %s8119_s1, %s8112_s0 }
 0x317   : > { %p8116_p4 = pneg %p8115_p10 }
 0x318   : > { %p8122_p7 = por %p8121_p13, %p8120_p5 }
 0x31a   : > { %p8123_p11 = pnand %p8122_p7, %p8116_p4 }
 0x31c   : > { %8126 = shalt.err (!%p8123_p11)
}
 0x31d   : > { %s10371_s24 = scalar_lea.sflag [#allocation7], %s8947_s2  ;;  %s10372_s30 = sld [smem:[#allocation84_spill]] }
 0x31e   : > { %7066 = dma.hbm_to_vmem [thread:$0]  (!%p10368_p9), %s9286_s18, 1280, %s9289_s6, %s10371_s24, %s10343_s10, %s10343_s10, %s10342_s19  }
 0x31f   : > { %s1054_s26 = scalar_lea.vmem [#allocation11], %s8933_s12 }
 0x320   : > { %s1063_s8 = sshll.u32 %s1054_s26, 4  ;;  %s1064_s8 = int_to_ptr.vmem [resolvable:$true] %s1063_s8 }
 0x323   : > { %s10373_s16 = smov %s10372_s30  ;;  %s9323_s28 = scalar_lea.hbm %s10372_s30, %s8936_s15 }
 0x324   : > { %s8127_s20 = scalar_lea.hbm %s9323_s28, 128  ;;  %s8132_s19 = scalar_lea.hbm %s10373_s16, 512 }
 0x325   : > { %p8128_p5 = scmp.ne.s32.totalorder %s9323_s28, %s8127_s20  ;;  %p8133_p9 = scmp.lt.u32.totalorder %s9323_s28, %s10373_s16 }
 0x326   : > { %p8134_p1 = scmp.lt.u32.totalorder %s8132_s19, %s8127_s20  ;;  %p8136_p3 = scmp.lt.u32.totalorder %s8127_s20, %s9323_s28 }
 0x327   : > { %p8130_p2 = pnand %p8128_p5, %p10364_p12 }
 0x328   : > { %p8135_p0 = por %p8134_p1, %p8133_p9 }
 0x329   : > { %p8131_p8 = pneg %p8130_p2 }
 0x32a   : > { %p8137_p6 = por %p8136_p3, %p8135_p0 }
 0x32c   : > { %p8138_p10 = pnand %p8137_p6, %p8131_p8 }
 0x32e   : > { %8141 = shalt.err (!%p8138_p10)
}
 0x32f   : > { %s8142_s6 = scalar_lea.vmem %s1064_s8, 128  ;;  %s8402_s27 = smov [#allocation11]  }
 0x330   : > { %p8143_p4 = scmp.ne.s32.totalorder %s1064_s8, %s8142_s6  ;;  %s8147_s1 = sshll.u32 %s8402_s27, 4  ;;  %s8148_s1 = int_to_ptr.vmem [resolvable:$false] %s8147_s1 }
 0x331   : > { %s8149_s24 = scalar_lea.vmem %s8148_s1, 256  ;;  %p8150_p11 = scmp.lt.s32.totalorder %s1064_s8, %s8148_s1 }
 0x332   : > { %p8145_p13 = pnand %p8143_p4, %p10364_p12  ;;  %p8151_p5 = scmp.lt.s32.totalorder %s8149_s24, %s8142_s6 }
 0x334   : > { %p8146_p7 = pneg %p8145_p13  ;;  %p8152_p2 = por %p8151_p5, %p8150_p11 }
 0x336   : > { %p8153_p1 = pnand %p8152_p2, %p8146_p7 }
 0x338   : > { %8156 = shalt.err (!%p8153_p1)
}
 0x339   : > { %p10374_p9 = scmp.ne.s32.totalorder %s10326_s17, 0  ;;  %s10375_s7 = scalar_lea.sflag [#allocation10], %s8947_s2 }
 0x33a   : > { %s10376_s26 = sld [smem:[#allocation85_spill]]  ;;  %s1074_s0 = scalar_lea.vmem [#allocation12], %s8933_s12 }
 0x33b   : > { %7072 = dma.hbm_to_vmem [thread:$0]  (!%p10374_p9), %s9323_s28, 128, %s1064_s8, %s10375_s7  }
 0x33c   : > { %s1083_s4 = sshll.u32 %s1074_s0, 4  ;;  %s1071_s19 = scalar_lea.sflag [#allocation13], %s8947_s2  ;;  %s1084_s4 = int_to_ptr.vmem [resolvable:$true] %s1083_s4 }
 0x340   : > { %s9349_s20 = scalar_lea.hbm %s10376_s26, %s8936_s15  ;;  %s8162_s8 = scalar_lea.hbm %s10376_s26, 512 }
 0x341   : > { %s8157_s10 = scalar_lea.hbm %s9349_s20, 128  ;;  %p8163_p6 = scmp.lt.u32.totalorder %s9349_s20, %s10376_s26 }
 0x342   : > { %p8158_p8 = scmp.ne.s32.totalorder %s9349_s20, %s8157_s10  ;;  %p8164_p10 = scmp.lt.u32.totalorder %s8162_s8, %s8157_s10 }
 0x343   : > { %p8166_p13 = scmp.lt.u32.totalorder %s8157_s10, %s9349_s20 }
 0x344   : > { %p8160_p0 = pnand %p8158_p8, %p10364_p12  ;;  %p8165_p4 = por %p8164_p10, %p8163_p6 }
 0x346   : > { %p8161_p3 = pneg %p8160_p0  ;;  %p8167_p7 = por %p8166_p13, %p8165_p4 }
 0x348   : > { %p8168_p11 = pnand %p8167_p7, %p8161_p3 }
 0x34a   : > { %8171 = shalt.err (!%p8168_p11)
}
 0x34b   : > { %s8172_s12 = scalar_lea.vmem %s1084_s4, 128  ;;  %s8403_s2 = smov [#allocation12]  }
 0x34c   : > { %p8173_p5 = scmp.ne.s32.totalorder %s1084_s4, %s8172_s12  ;;  %s8177_s27 = sshll.u32 %s8403_s2, 4  ;;  %s8178_s27 = int_to_ptr.vmem [resolvable:$false] %s8177_s27 }
 0x34d   : > { %s8179_s1 = scalar_lea.vmem %s8178_s27, 256  ;;  %p8180_p8 = scmp.lt.s32.totalorder %s1084_s4, %s8178_s27 }
 0x34e   : > { %p8175_p2 = pnand %p8173_p5, %p10364_p12  ;;  %p8181_p0 = scmp.lt.s32.totalorder %s8179_s1, %s8172_s12 }
 0x350   : > { %p8176_p1 = pneg %p8175_p2  ;;  %p8182_p9 = por %p8181_p0, %p8180_p8 }
 0x352   : > { %p8183_p6 = pnand %p8182_p9, %p8176_p1 }
 0x354   : > { %8186 = shalt.err (!%p8183_p6)
}
 0x355   : > { %p10377_p10 = scmp.ne.s32.totalorder %s10326_s17, 0  ;;  %s10378_s24 = sld [smem:[#allocation73_spill]] }
 0x357   : > { %7075 = dma.hbm_to_vmem [thread:$0]  (!%p10377_p10), %s9349_s20, 128, %s1084_s4, %s1071_s19  }
 0x35b   : > { %p10379_p3 = scmp.ne.s32.totalorder %s10378_s24, 0 }
 0x35c   : > { %s9373_s21 = sand.u32 (!%p10379_p3), 1, %s8349_s9   ;;  %p10380_p12 = scmp.ne.s32.totalorder (!%p10379_p3), %s10320_s22, 0 }
 0x35d   : > { %1092 = sbr.rel (%p10379_p3) target bundleno = 4631 (0x1217), region = 128  ;;  %s9376_s7 = sshll.u32 (!%p10379_p3), %s9373_s21, 3 }
 0x35e   : > { %s1095_s11 = scalar_lea.sflag (!%p10379_p3), [#allocation4], %s9373_s21  ;;  %s1098_s30 = scalar_lea.vmem (!%p10379_p3), [#allocation3], %s9376_s7 }
 0x364   : > { %8260 = dma.done.wait (%p10380_p12), %s1095_s11, 128  }
 0x365   : > { %8262 = vsyncadd (%p10380_p12), %s1095_s11, 4294967168  ;;  %s10381_s17 = sld [smem:[#allocation72_spill]]  ;;  %s1107_s4 = scalar_lea.vmem [#allocation6], %s9376_s7 }
 0x36b   : > { %s1103_s20 = sand.u32 1, %s10381_s17  }
 0x36c   : > { %s1104_s0 = scalar_lea.sflag [#allocation7], %s1103_s20 }
 0x36d   : > { %8264 = dma.done.wait (%p10380_p12), %s1104_s0, 128  }
 0x36e   : > { %8266 = vsyncadd (%p10380_p12), %s1104_s0, 4294967168  ;;  %s10382_s19 = sld [smem:[#allocation65_spill]]  ;;  %s10383_s10 = sld [smem:[#allocation64_spill]] }
 0x374   : > { %s1114_s18 = sand.u32 1, %s10382_s19   ;;  %p10384_p9 = scmp.ne.s32.totalorder %s10383_s10, 0 }
 0x375   : > { %s6894_s28 = smul.u32 80, %s1114_s18 }
 0x377   : > { %s9391_s8 = scalar_lea.vmem [#allocation8], %s6894_s28 }
 0x378   : > { %8268 = dma.done.wait (%p10384_p9), %s1104_s0, 1280  }
 0x379   : > { %8270 = vsyncadd (%p10384_p9), %s1104_s0, 4294966016  ;;  %s1122_s6 = scalar_lea.sflag [#allocation10], %s1103_s20  ;;  %s9397_s15 = scalar_lea.vmem [#allocation9], %s6894_s28 }
 0x37a   : > { %8272 = dma.done.wait (%p10384_p9), %s1122_s6, 1280  }
 0x37b   : > { %8274 = vsyncadd (%p10384_p9), %s1122_s6, 4294966016  ;;  %s1134_s12 = scalar_lea.vmem [#allocation11], %s9376_s7 }
 0x37c   : > { %8276 = dma.done.wait (%p10380_p12), %s1122_s6, 128  }
 0x37d   : > { %8278 = vsyncadd (%p10380_p12), %s1122_s6, 4294967168  ;;  %s1140_s2 = scalar_lea.sflag [#allocation13], %s1103_s20  ;;  %s1143_s27 = scalar_lea.vmem [#allocation12], %s9376_s7 }
 0x37e   : > { %8280 = dma.done.wait (%p10380_p12), %s1140_s2, 128  }
 0x37f   : > { %8282 = vsyncadd (%p10380_p12), %s1140_s2, 4294967168  ;;  %p10385_p4 = scmp.eq.s32.totalorder %s10381_s17, 0 }
 0x381   : > { %8284 = dma.done.wait (%p10385_p4), [#allocation13], 512   ;;  %p10386_p13 = pmov %p10385_p4 }
 0x382   : > { %p10387_p7 = pmov %p10385_p4 }
 0x383   : > { %8286 = vsyncadd (%p10386_p13), [#allocation13], 4294966784 }
 0x384   : > { %8288 = dma.done.wait (%p10387_p7), [#allocation16], 528   ;;  %p10388_p11 = pmov %p10385_p4 }
 0x385   : > { %p10389_p5 = pmov %p10385_p4 }
 0x386   : > { %8290 = vsyncadd (%p10388_p11), [#allocation16], 4294966768 }
 0x387   : > { %8292 = dma.done.wait (%p10389_p5), [#allocation19], 528   ;;  %p10390_p2 = pmov %p10385_p4 }
 0x389   : > { %8294 = vsyncadd (%p10390_p2), [#allocation19], 4294966768  ;;  %p10391_p1 = pmov %p10390_p2 }
 0x38b   : > { %8296 = dma.done.wait (%p10391_p1), [#allocation22], 32   ;;  %p10392_p8 = pmov %p10391_p1 }
 0x38c   : > { %p10393_p0 = pmov %p10391_p1 }
 0x38d   : > { %8298 = vsyncadd (%p10392_p8), [#allocation22], 4294967264 }
 0x38e   : > { %8300 = dma.done.wait (%p10393_p0), [#allocation25], 528   ;;  %p10394_p6 = pmov %p10393_p0 }
 0x38f   : > { %p10395_p10 = pmov %p10393_p0 }
 0x390   : > { %8302 = vsyncadd (%p10394_p6), [#allocation25], 4294966768 }
 0x391   : > { %8304 = dma.done.wait (%p10395_p10), [#allocation28], 1040   ;;  %p10396_p3 = pmov %p10393_p0 }
 0x392   : > { %p10397_p12 = pmov %p10393_p0 }
 0x393   : > { %8306 = vsyncadd (%p10396_p3), [#allocation28], 4294966256 }
 0x394   : > { %8308 = dma.done.wait (%p10397_p12), [#allocation31], 272   ;;  %p10398_p9 = pmov %p10393_p0 }
 0x395   : > { %p10399_p4 = pmov %p10393_p0 }
 0x396   : > { %8310 = vsyncadd (%p10398_p9), [#allocation31], 4294967024 }
 0x397   : > { %8312 = dma.done.wait (%p10399_p4), [#allocation34], 32   ;;  %p10400_p13 = pmov %p10393_p0 }
 0x398   : > { %p10401_p7 = pmov %p10393_p0 }
 0x399   : > { %8314 = vsyncadd (%p10400_p13), [#allocation34], 4294967264 }
 0x39a   : > { %8316 = dma.done.wait (%p10401_p7), [#allocation37], 256   ;;  %p10402_p11 = pmov %p10393_p0 }
 0x39b   : > { %p10403_p5 = pmov %p10393_p0 }
 0x39c   : > { %8318 = vsyncadd (%p10402_p11), [#allocation37], 4294967040 }
 0x39d   : > { %8320 = dma.done.wait (%p10403_p5), [#allocation40], 32   ;;  %p10404_p2 = pmov %p10393_p0 }
 0x39e   : > { %p10405_p1 = pmov %p10393_p0 }
 0x39f   : > { %8322 = vsyncadd (%p10404_p2), [#allocation40], 4294967264 }
 0x3a0   : > { %8324 = dma.done.wait (%p10405_p1), [#allocation43], 128   ;;  %p10406_p8 = pmov %p10393_p0 }
 0x3a1   : > { %s1322_s22 = scalar_lea.vmem [#allocation45], %s9376_s7  ;;  %s10407_s1 = sld [smem:[#allocation68_spill]] }
 0x3a2   : > { %8326 = vsyncadd (%p10406_p8), [#allocation43], 4294967168 }
 0x3a7   : > { %p6179_p0 = scmp.ne.s32.totalorder %s10407_s1, 0 }
 0x3a8   : > { %v1357_v0 = vld [vmem:[#allocation14] sm:$0xff] (!%p6179_p0)  ;;  %v1358_v1 = vld [vmem:[#allocation14 + $0x8] sm:$0xff] (!%p6179_p0)  ;;  %v1359_v2 = vld [vmem:[#allocation14 + $0x10] sm:$0xff] (!%p6179_p0)  ;;  %vm1368_vm0 = vcmask (!%p6179_p0), 261120  }
 0x3a9   : > { %1326 = sbr.rel (%p6179_p0) target bundleno = 1171 (0x493), region = 240  ;;  %v6783_v3 = vpack.c.bf16 (!%p6179_p0), %v1358_v1, %v1357_v0  ;;  %v1360_v4 = vld [vmem:[#allocation14 + $0x18] sm:$0xff] (!%p6179_p0)  ;;  %v1327_v5 = vld [vmem:[%s9391_s8] sm:$0xff] (!%p6179_p0)  ;;  %v1333_v9 = vld [vmem:[%s9391_s8 + $0x30] sm:$0xff] (!%p6179_p0) }
 0x3aa   : > { %v1337_v6 = vld [vmem:[%s9397_s15] sm:$0xff] (!%p6179_p0)  ;;  %v6787_v7 = vpack.c.bf16 (!%p6179_p0), %v1360_v4, %v1359_v2  ;;  %v1328_v10 = vld [vmem:[%s9391_s8 + $0x8] sm:$0xff] (!%p6179_p0)  ;;  %v1343_v12 = vld [vmem:[%s9397_s15 + $0x30] sm:$0xff] (!%p6179_p0) }
 0x3ab   : > { %v1347_v8 = vadd.f32 (!%p6179_p0), %v1337_v6, %v1327_v5  ;;  %6784 = vmatprep.subr.bf16.mxu0 (!%p6179_p0), %v6783_v3  ;;  %6878 = vmatprep.subr.bf16.mxu1 (!%p6179_p0), %v6783_v3  ;;  %v1338_v11 = vld [vmem:[%s9397_s15 + $0x8] sm:$0xff] (!%p6179_p0)  ;;  %v1353_v13 = vadd.f32 (!%p6179_p0), %v1343_v12, %v1333_v9  ;;  %v1329_v14 = vld [vmem:[%s9391_s8 + $0x10] sm:$0xff] (!%p6179_p0)  ;;  %v1334_v15 = vld [vmem:[%s9391_s8 + $0x38] sm:$0xff] (!%p6179_p0) }
 0x3ac   : > { %6786 = vmatpush3.bf16.msra.mxu0 (!%p6179_p0), %v6783_v3  ;;  %6880 = vmatpush3.bf16.msra.mxu1 (!%p6179_p0), %v6783_v3  ;;  %v1344_v16 = vld [vmem:[%s9397_s15 + $0x38] sm:$0xff] (!%p6179_p0)  ;;  %v1339_v17 = vld [vmem:[%s9397_s15 + $0x10] sm:$0xff] (!%p6179_p0)  ;;  %v1335_v18 = vld [vmem:[%s9391_s8 + $0x40] sm:$0xff] (!%p6179_p0)  ;;  %v1348_v20 = vadd.f32 (!%p6179_p0), %v1338_v11, %v1328_v10 }
 0x3ad   : > { %6788 = vmatprep.subr.bf16.mxu0 (!%p6179_p0), %v6787_v7  ;;  %6879 = vmatprep.subr.bf16.mxu1 (!%p6179_p0), %v6787_v7  ;;  %v1345_v19 = vld [vmem:[%s9397_s15 + $0x40] sm:$0xff] (!%p6179_p0)  ;;  %v1354_v21 = vadd.f32 (!%p6179_p0), %v1344_v16, %v1334_v15  ;;  %v1330_v22 = vld [vmem:[%s9391_s8 + $0x18] sm:$0xff] (!%p6179_p0)  ;;  %v1349_v23 = vadd.f32 (!%p6179_p0), %v1339_v17, %v1329_v14  ;;  %v1336_v26 = vld [vmem:[%s9391_s8 + $0x48] sm:$0xff] (!%p6179_p0) }
 0x3ae   : > { %6436 = vmatprep.mubr.msk.f32.mxu0 (!%p6179_p0), %vm1368_vm0, %v1347_v8  ;;  %6445 = vmatprep.mubr.msk.f32.mxu1 (!%p6179_p0), %vm1368_vm0, %v1353_v13  ;;  %v1340_v24 = vld [vmem:[%s9397_s15 + $0x18] sm:$0xff] (!%p6179_p0)  ;;  %v1355_v25 = vadd.f32 (!%p6179_p0), %v1345_v19, %v1335_v18  ;;  %v1346_v27 = vld [vmem:[%s9397_s15 + $0x48] sm:$0xff] (!%p6179_p0)  ;;  %v1331_v28 = vld [vmem:[%s9391_s8 + $0x20] sm:$0xff] (!%p6179_p0) }
 0x3af   : > { %v1341_v29 = vld [vmem:[%s9397_s15 + $0x20] sm:$0xff] (!%p6179_p0)  ;;  %v1350_v30 = vadd.f32 (!%p6179_p0), %v1340_v24, %v1330_v22  ;;  %v1356_v31 = vadd.f32 (!%p6179_p0), %v1346_v27, %v1336_v26  ;;  %v1332_v33 = vld [vmem:[%s9391_s8 + $0x28] sm:$0xff] (!%p6179_p0) }
 0x3b0   : > { %6790 = vmatpush3.bf16.msra.mxu0 %v6787_v7  ;;  %6881 = vmatpush3.bf16.msra.mxu1 %v6787_v7  ;;  %v1351_v32 = vadd.f32 %v1341_v29, %v1331_v28  ;;  %v1342_v34 = vld [vmem:[%s9397_s15 + $0x28] sm:$0xff]  ;;  %v6180_v36 = vld [vmem:[#allocation15] ss:$0 sm:$0xff] }
 0x3b1   : > { %v1352_v35 = vadd.f32 %v1342_v34, %v1332_v33 }
 0x3b3   : > { %6437 = vmatmul.mubr.msk.f32.vlgmr.msra.gmra.mrb[0].mxu0 %vm1368_vm0, %v1348_v20  ;;  %6446 = vmatmul.mubr.msk.f32.vlgmr.msra.gmra.mrb[0].mxu1 %vm1368_vm0, %v1354_v21 }
 0x3b4   : > { %6439 = vmatprep.mubr.msk.f32.mxu0 %vm1368_vm0, %v1349_v23  ;;  %6448 = vmatprep.mubr.msk.f32.mxu1 %vm1368_vm0, %v1355_v25 }
 0x3b7   : > { %6440 = vmatmul.mubr.msk.f32.gmra.mrb[2].mxu0 %vm1368_vm0, %v1350_v30  ;;  %6449 = vmatmul.mubr.msk.f32.gmra.mrb[2].mxu1 %vm1368_vm0, %v1356_v31 }
 0x3b8   : > { %6442 = vmatprep.mubr.msk.f32.mxu0 %vm1368_vm0, %v1351_v32 }
 0x3bb   : > { %6443 = vmatmul.mubr.msk.f32.gmra.mrb[4].mxu0 %vm1368_vm0, %v1352_v35 }
 0x486   : > { %v6438_v37 = vpop.f32.mrb[0].mxu0  ;;  %v6447_v38 = vpop.f32.mrb[0].mxu1 }
 0x487   : > { %v1471_v39 = vadd.f32 %v6438_v37, %v6180_v36  ;;  %v1465_v40 = vpop.f32.mrb[1].mxu0  ;;  %v1501_v41 = vadd.f32 %v6447_v38, %v6180_v36  ;;  %v1495_v42 = vpop.f32.mrb[1].mxu1 }
 0x488   : > { %v1466_v43 = vadd.f32 %v6180_v36, %v1465_v40  ;;  %v1496_v44 = vadd.f32 %v6180_v36, %v1495_v42 }
 0x489   : > { %1515 = vst.msk [vmem:[#allocation2 + $0x8] sm:$0xff] %vm1368_vm0, %v1471_v39  ;;  %1521 = vst.msk [vmem:[#allocation2 + $0x38] sm:$0xff] %vm1368_vm0, %v1501_v41 }
 0x48a   : > { %1514 = vst.msk [vmem:[#allocation2] sm:$0xff] %vm1368_vm0, %v1466_v43  ;;  %v6441_v45 = vpop.f32.mrb[2].mxu0  ;;  %1520 = vst.msk [vmem:[#allocation2 + $0x30] sm:$0xff] %vm1368_vm0, %v1496_v44  ;;  %v6450_v46 = vpop.f32.mrb[2].mxu1 }
 0x48b   : > { %v1481_v47 = vadd.f32 %v6441_v45, %v6180_v36  ;;  %v1475_v48 = vpop.f32.mrb[3].mxu0  ;;  %v1511_v49 = vadd.f32 %v6450_v46, %v6180_v36  ;;  %v1505_v50 = vpop.f32.mrb[3].mxu1 }
 0x48c   : > { %v1476_v51 = vadd.f32 %v6180_v36, %v1475_v48  ;;  %v1506_v52 = vadd.f32 %v6180_v36, %v1505_v50 }
 0x48d   : > { %1517 = vst.msk [vmem:[#allocation2 + $0x18] sm:$0xff] %vm1368_vm0, %v1481_v47  ;;  %1523 = vst.msk [vmem:[#allocation2 + $0x48] sm:$0xff] %vm1368_vm0, %v1511_v49 }
 0x48e   : > { %1516 = vst.msk [vmem:[#allocation2 + $0x10] sm:$0xff] %vm1368_vm0, %v1476_v51  ;;  %v6444_v53 = vpop.f32.mrb[4].mxu0  ;;  %1522 = vst.msk [vmem:[#allocation2 + $0x40] sm:$0xff] %vm1368_vm0, %v1506_v52 }
 0x48f   : > { %v1491_v54 = vadd.f32 %v6444_v53, %v6180_v36  ;;  %v1485_v55 = vpop.f32.mrb[5].mxu0 }
 0x490   : > { %v1486_v56 = vadd.f32 %v6180_v36, %v1485_v55 }
 0x491   : > { %1519 = vst.msk [vmem:[#allocation2 + $0x28] sm:$0xff] %vm1368_vm0, %v1491_v54 }
 0x492   : > { %1518 = vst.msk [vmem:[#allocation2 + $0x20] sm:$0xff] %vm1368_vm0, %v1486_v56 }
 0x493 PF: > { %v1527_v57 = vld [vmem:[#allocation17] sm:$0xff]  ;;  %v1528_v58 = vld [vmem:[#allocation17 + $0x8] sm:$0xff]  ;;  %v1529_v59 = vld [vmem:[#allocation17 + $0x10] sm:$0xff]  ;;  %v8404_v60 = vmov 0.0|0.0   ;;  %vm8405_vm1 = vmmov 0   ;;  %v8406_v63 = vmov 0.0  }
 0x494   : > { %6791 = vmatprep.subr.bf16.mxu1 %v8404_v60  ;;  %v6792_v61 = vpack.c.bf16 %v1528_v58, %v1527_v57  ;;  %v1530_v62 = vld [vmem:[#allocation17 + $0x18] sm:$0xff]  ;;  %6459 = vmatprep.mubr.msk.f32.mxu1 %vm8405_vm1, %v8406_v63  ;;  %vm1538_vm2 = vcmask 261120   ;;  %v8407_v4 = vmov 0   ;;  %v6191_v5 = vld [vmem:[#allocation18] ss:$0 sm:$0xff]  ;;  %vm1612_vm3 = vcmask 392448  }
 0x495   : > { %6469 = vmatprep.subr.mxu0 %v8406_v63  ;;  %6471 = vmatprep.mubr.msk.f32.mxu0 %vm8405_vm1, %v8406_v63  ;;  %v6795_v0 = vpack.c.bf16 %v1530_v62, %v1529_v59  ;;  %v1524_v1 = vld [vmem:[%s1098_s30] sm:$0xff]  ;;  %v1525_v2 = vld [vmem:[%s1107_s4] sm:$0xff]  ;;  %v8408_v13 = vmov 1   ;;  %v8409_v14 = vmov 2   ;;  %s8410_s24 = smov 112   ;;  %v8411_v15 = vmov 33  }
 0x496   : > { %6793 = vmatpush3.bf16.msra.mxu1 %v6792_v61  ;;  %v1526_v3 = vadd.f32 %v1525_v2, %v1524_v1  ;;  %7274 = vset.pattern.permute.xlu1 %v8407_v4  ;;  %v1697_v7 = vld [vmem:[%s1134_s12] sm:$0xff]  ;;  %v1700_v18 = vld [vmem:[%s1143_s27] sm:$0xff]  ;;  %v8412_v24 = vmov 34   ;;  %v8413_v25 = vmov 32   ;;  %v8414_v27 = vmov 4   ;;  %s8418_s11 = smov 96  }
 0x497   : > { %6794 = vmatprep.subr.bf16.mxu1 %v8404_v60  ;;  %7282 = vset.pattern.permute.xlu0 %v8411_v15  ;;  %v9540_v26 = vld [vmem:[#allocation38] sm:$0xff]  ;;  %v8415_v28 = vmov 3   ;;  %v8416_v29 = vmov 5   ;;  %v1620_v31 = vld [vmem:[#allocation32 + $0x8] sm:$0xff]  ;;  %v8417_v33 = vmov 6   ;;  %v8419_v34 = vmov 35  }
 0x498   : > { %6470 = vmatpush3.msra.mxu0 %v9540_v26  ;;  %v1619_v30 = vld [vmem:[#allocation32] sm:$0xff]  ;;  %v9554_v36 = vld [vmem:[#allocation2 + $0x48] sm:$0xff]  ;;  %v8420_v37 = vmov 7   ;;  %v9562_v39 = vld [vmem:[#allocation2 + $0x10] sm:$0xff]  ;;  %s8421_s17 = smov 120   ;;  %v8422_v44 = vmov 8  }
 0x499   : > { %6474 = vmatprep.subr.mxu0 %v8406_v63  ;;  %v6798_v32 = vpack.c.bf16 %v1620_v31, %v1619_v30  ;;  %v9552_v35 = vld [vmem:[#allocation2 + $0x40] sm:$0xff]  ;;  %v9564_v40 = vld [vmem:[#allocation2 + $0x18] sm:$0xff]  ;;  %v9573_v42 = vld [vmem:[#allocation2 + $0x30] sm:$0xff]  ;;  %v8423_v46 = vmov 36   ;;  %v8424_v47 = vmov 10   ;;  %v8425_v48 = vmov 37  }
 0x49a   : > { %6796 = vmatpush3.bf16.msra.mxu1 %v6795_v0  ;;  %v9560_v38 = vpack.i.bf16 %v9554_v36, %v9552_v35  ;;  %v9570_v41 = vpack.i.bf16 %v9564_v40, %v9562_v39  ;;  %v9575_v43 = vld [vmem:[#allocation2 + $0x38] sm:$0xff]  ;;  %v8426_v49 = vmov 40   ;;  %v8427_v50 = vmov 11   ;;  %v9598_v53 = vld [vmem:[#allocation2] sm:$0xff]  ;;  %v9600_v54 = vld [vmem:[#allocation2 + $0x8] sm:$0xff]  ;;  %s8442_s20 = smov 104  }
 0x49b   : > { %6797 = vmatprep.subr.bf16.mxu1 %v8404_v60  ;;  %v9581_v45 = vpack.i.bf16 %v9575_v43, %v9573_v42  ;;  %v8428_v51 = vmov 38   ;;  %v8429_v52 = vmov 43   ;;  %v8430_v55 = vmov 39   ;;  %v9608_v57 = vld [vmem:[#allocation2 + $0x20] sm:$0xff]  ;;  %v9610_v58 = vld [vmem:[#allocation2 + $0x28] sm:$0xff]  ;;  %s10409_s0 = sld [smem:[#allocation68_spill]] }
 0x49c   : > { %v9605_v56 = vpack.i.bf16 %v9600_v54, %v9598_v53  ;;  %v9616_v59 = vpack.i.bf16 %v9610_v58, %v9608_v57  ;;  %v8431_v61 = vmov 9   ;;  %v9624_v2 = vld [vmem:[#allocation35] ss:$0 sm:$0xff]  ;;  %vm1746_vm4 = vcmask 64512   ;;  %s10410_s4 = sld [smem:[#allocation76_spill]]  ;;  %s5714_s28 = sshll.u32 %s1322_s22, 4  ;;  %s10095_s28 = int_to_ptr.vmem [resolvable:$true] %s5714_s28 }
 0x49d   : > { %6460 = vmatmul.mubr.msk.f32.vlgmr.msra.gmra.mrb[0].mxu1 %vm1538_vm2, %v1526_v3  ;;  %vm2113_vm5 = vcmask 1043456   ;;  %vm1624_vm6 = vcmask 130048   ;;  %vm2109_vm7 = vcmask 31744   ;;  %vm2509_vm8 = vcmask 523264   ;;  %s10411_s15 = sld [smem:[#allocation107_spill]]  ;;  %s5699_s2 = scalar_lea.sflag [#allocation5], %s9373_s21 }
 0x49e   : > { %6466 = vmatprep.mubr.msk.f32.mxu1 %vm8405_vm1, %v8406_v63  ;;  %6799 = vmatpush3.bf16.msra.mxu1 %v6798_v32  ;;  %s8187_s27 = scalar_lea.vmem %s10095_s28, 128  ;;  %s8443_s1 = smov [#allocation45]  }
 0x49f   : > { %6479 = vmatprep.subr.mxu1 %v8406_v63  ;;  %p8188_p6 = scmp.ne.s32.totalorder %s10095_s28, %s8187_s27 }
 0x4a2   : > { %p10412_p10 = scmp.ne.s32.totalorder %s10410_s4, 0 }
 0x4a4   : > { %p8189_p3 = pnand %p8188_p6, %p10412_p10 }
 0x4a6   : > { %p8190_p12 = pneg %p8189_p3 }
 0x570   : > { %v1608_v6 = vpop.f32.mrb[0].mxu1 }
 0x571   : > { %v1609_v8 = vadd.f32 %v6191_v5, %v1608_v6  ;;  %v6461_v9 = vpop.f32.mrb[1].mxu1  ;;  %v9627_v6 = vld [vmem:[#allocation33] ss:$0 sm:$0xff] }
 0x573   : > { %v1698_v10 = vadd.f32 %v1697_v7, %v1609_v8  ;;  %v1613_v11 = vsel %vm1612_vm3, %v1609_v8, -inf }
 0x574   : > { %1614 = vmax.xlane.f32.xlu0 %v1613_v11 }
 0x575   : > { %v9517_v12 = vadd.f32 -0.5, %v1698_v10 }
 0x577   : > { %1713 = vperm.xlu1 %7274, %v9517_v12  }
 0x57b   : > { %7275 = vset.pattern.permute.xlu1 %v8408_v13 }
 0x57c   : > { %1896 = vperm.xlu1 %7275, %v9517_v12  }
 0x580   : > { %7276 = vset.pattern.permute.xlu1 %v8409_v14 }
 0x581   : > { %2077 = vperm.xlu1 %7276, %v9517_v12  }
 0x585   : > { %7277 = vset.pattern.permute.xlu1 %v8407_v4 }
 0x58a   : > { %1702 = vrot.lane.b32.xlu0 %v1609_v8, %s8410_s24 }
 0x5f6   : > { %v1714_v62 = vpop.permute.xlu1 %1713 }
 0x5f7   : > { %v1722_v9 = vsub.f32 %v1714_v62, %v9627_v6 }
 0x5fb   : > { %v1897_v0 = vpop.permute.xlu1 %1896 }
 0x5fc   : > { %v1899_v15 = vsub.f32 %v1897_v0, %v9627_v6 }
 0x600   : > { %v2078_v1 = vpop.permute.xlu1 %2077 }
 0x601   : > { %v1615_v16 = vpop.xlane.xlu0 %1614 }
 0x602   : > { %v1616_v17 = vsub.f32 %v1609_v8, %v1615_v16 }
 0x604   : > { %v1617_v19 = vmul.f32 1.442695, %v1616_v17 }
 0x605   : > { %v1703_v20 = vpop.permute.xlu0 %1702 }
 0x606   : > { %7399 = vpow2.f32 %v1617_v19  ;;  %v1705_v21 = vadd.f32 %v1703_v20, %v1700_v18  ;;  %v1900_v20 = vand.u32 2147483647, %v1899_v15 }
 0x608   : > { %v9528_v22 = vadd.f32 -0.5, %v1705_v21 }
 0x60a   : > { %1728 = vperm.xlu1 %7277, %v9528_v22  }
 0x60e   : > { %7278 = vset.pattern.permute.xlu1 %v8408_v13 }
 0x60f   : > { %1904 = vperm.xlu1 %7278, %v9528_v22  }
 0x610   : > { %v9533_v23 = vpop.eup %7399 }
 0x611   : > { %1912 = vperm.xlu0 %7282, %v9533_v23  }
 0x613   : > { %7279 = vset.pattern.permute.xlu1 %v8409_v14 }
 0x614   : > { %2091 = vperm.xlu1 %7279, %v9528_v22  }
 0x615   : > { %7283 = vset.pattern.permute.xlu0 %v8412_v24  ;;  %v9635_v24 = vld [vmem:[#allocation41] ss:$0 sm:$0xff] }
 0x616   : > { %2105 = vperm.xlu0 %7283, %v9533_v23  }
 0x618   : > { %7280 = vset.pattern.permute.xlu1 %v8413_v25 }
 0x619   : > { %1742 = vperm.xlu1 %7280, %v9533_v23  }
 0x61a   : > { %7285 = vset.pattern.permute.xlu0 %v8414_v27 }
 0x61b   : > { %2600 = vperm.xlu0 %7285, %v9528_v22  }
 0x61d   : > { %7281 = vset.pattern.permute.xlu1 %v8415_v28 }
 0x61e   : > { %2274 = vperm.xlu1 %7281, %v9528_v22  }
 0x61f   : > { %7287 = vset.pattern.permute.xlu0 %v8416_v29 }
 0x620   : > { %2769 = vperm.xlu0 %7287, %v9528_v22  }
 0x622   : > { %2266 = vperm.xlu1 %7281, %v9517_v12  }
 0x624   : > { %7289 = vset.pattern.permute.xlu0 %v8417_v33 }
 0x625   : > { %2938 = vperm.xlu0 %7289, %v9528_v22  }
 0x626   : > { %1622 = vrot.lane.b32.xlu1 %v9533_v23, %s8418_s11 }
 0x627   : > { %7284 = vset.pattern.permute.xlu1 %v8419_v34 }
 0x629   : > { %7294 = vset.pattern.permute.xlu0 %v8420_v37 }
 0x62a   : > { %3099 = vperm.xlu0 %7294, %v9517_v12   ;;  %2282 = vperm.xlu1 %7284, %v9533_v23  }
 0x62e   : > { %7298 = vrot.lane.b32.xlu0 %v9560_v38, %s8421_s17  ;;  %7286 = vset.pattern.permute.xlu1 %v8414_v27  ;;  %v9637_v27 = vld [vmem:[#allocation36] sm:$0xff] }
 0x62f   : > { %2592 = vperm.xlu1 %7286, %v9517_v12   ;;  %7322 = vset.pattern.permute.xlu0 %v8422_v44 }
 0x632   : > { %7308 = vrot.lane.b32.xlu0 %v9570_v41, %s8421_s17 }
 0x633   : > { %7288 = vset.pattern.permute.xlu1 %v8416_v29 }
 0x634   : > { %2761 = vperm.xlu1 %7288, %v9517_v12  }
 0x636   : > { %7318 = vrot.lane.b32.xlu0 %v9581_v45, %s8421_s17 }
 0x638   : > { %7290 = vset.pattern.permute.xlu1 %v8423_v46 }
 0x639   : > { %2608 = vperm.xlu1 %7290, %v9533_v23  }
 0x63a   : > { %3614 = vperm.xlu0 %7322, %v9528_v22  }
 0x63d   : > { %7291 = vset.pattern.permute.xlu1 %v8417_v33  ;;  %v1901_v33 = vsub.f32 1.0, %v1900_v20 }
 0x63e   : > { %7325 = vset.pattern.permute.xlu0 %v8424_v47  ;;  %2930 = vperm.xlu1 %7291, %v9517_v12  }
 0x63f   : > { %3952 = vperm.xlu0 %7325, %v9528_v22  }
 0x642   : > { %7292 = vset.pattern.permute.xlu1 %v8425_v48  ;;  %v1902_v48 = vmax.f32 %v1901_v33, 0.0 }
 0x643   : > { %7326 = vset.pattern.permute.xlu0 %v8426_v49  ;;  %2777 = vperm.xlu1 %7292, %v9533_v23  }
 0x644   : > { %3622 = vperm.xlu0 %7326, %v9533_v23  }
 0x647   : > { %7293 = vset.pattern.permute.xlu1 %v8420_v37 }
 0x648   : > { %7331 = vset.pattern.permute.xlu0 %v8427_v50  ;;  %3107 = vperm.xlu1 %7293, %v9528_v22  }
 0x649   : > { %4121 = vperm.xlu0 %7331, %v9528_v22  }
 0x64c   : > { %7295 = vset.pattern.permute.xlu1 %v8428_v51 }
 0x64d   : > { %7334 = vset.pattern.permute.xlu0 %v8429_v52  ;;  %2946 = vperm.xlu1 %7295, %v9533_v23   ;;  %v9650_v52 = vld [vmem:[#allocation42] sm:$0xf] }
 0x64e   : > { %4129 = vperm.xlu0 %7334, %v9533_v23  }
 0x651   : > { %7296 = vset.pattern.permute.xlu1 %v8430_v55 }
 0x652   : > { %3115 = vperm.xlu1 %7296, %v9533_v23   ;;  %7362 = vset.pattern.permute.xlu0 %v8409_v14  ;;  %v1723_v14 = vand.u32 2147483647, %v1722_v9 }
 0x653   : > { %7346 = vrot.lane.b32.xlu0 %v9570_v41, %s8410_s24 }
 0x654   : > { %v1724_v19 = vsub.f32 1.0, %v1723_v14 }
 0x656   : > { %7303 = vrot.lane.b32.xlu1 %v9605_v56, %s8421_s17  ;;  %v1725_v32 = vmax.f32 %v1724_v19, 0.0 }
 0x657   : > { %7323 = vset.pattern.permute.xlu1 %v8422_v44  ;;  %7356 = vrot.lane.b32.xlu0 %v9581_v45, %s8410_s24 }
 0x65a   : > { %7313 = vrot.lane.b32.xlu1 %v9616_v59, %s8421_s17 }
 0x65e   : > { %3606 = vperm.xlu1 %7323, %v9517_v12  }
 0x662   : > { %7324 = vset.pattern.permute.xlu1 %v8431_v61 }
 0x663   : > { %3783 = vperm.xlu1 %7324, %v9528_v22  }
 0x667   : > { %3775 = vperm.xlu1 %7324, %v9517_v12  }
 0x66b   : > { %7327 = vset.pattern.permute.xlu1 %v8408_v13  ;;  %v9631_v13 = vld [vmem:[#allocation39] ss:$0 sm:$0xff] }
 0x66c   : > { %v2086_v21 = vsub.f32 %v2078_v1, %v9631_v13 }
 0x66e   : > { %v2087_v34 = vand.u32 2147483647, %v2086_v21 }
 0x670   : > { %v2088_v49 = vsub.f32 1.0, %v2087_v34 }
 0x689   : > { %v1729_v3 = vpop.permute.xlu1 %1728 }
 0x68a   : > { %v1737_v5 = vsub.f32 %v1729_v3, %v9624_v2 }
 0x68c   : > { %v1738_v8 = vand.u32 2147483647, %v1737_v5  ;;  %v2089_v5 = vmax.f32 %v2088_v49, 0.0 }
 0x68e   : > { %v1905_v7 = vpop.permute.xlu1 %1904  ;;  %v1739_v10 = vsub.f32 1.0, %v1738_v8 }
 0x68f   : > { %v1907_v17 = vsub.f32 %v1905_v7, %v9624_v2 }
 0x690   : > { %v1740_v16 = vmax.f32 %v1739_v10, 0.0  ;;  %v1913_v30 = vpop.permute.xlu0 %1912 }
 0x691   : > { %v1908_v29 = vand.u32 2147483647, %v1907_v17 }
 0x693   : > { %v2092_v11 = vpop.permute.xlu1 %2091  ;;  %v1909_v44 = vsub.f32 1.0, %v1908_v29 }
 0x694   : > { %v2100_v31 = vsub.f32 %v2092_v11, %v9635_v24 }
 0x695   : > { %v2106_v55 = vpop.permute.xlu0 %2105  ;;  %v1910_v0 = vmax.f32 %v1909_v44, 0.0 }
 0x696   : > { %v2101_v46 = vand.u32 2147483647, %v2100_v31 }
 0x697   : > { %v1915_v10 = vmul.f32 %v1913_v30, %v1910_v0 }
 0x698   : > { %v1743_v18 = vpop.permute.xlu1 %1742  ;;  %v2102_v1 = vsub.f32 1.0, %v2101_v46 }
 0x699   : > { %v1745_v25 = vmul.f32 %v1743_v18, %v1740_v16  ;;  %v9666_v16 = vld [vmem:[#allocation44] sm:$0xf] }
 0x69a   : > { %v2103_v11 = vmax.f32 %v2102_v1, 0.0  ;;  %v2601_v14 = vpop.permute.xlu0 %2600 }
 0x69b   : > { %6472 = vmatmul.mubr.msk.f32.vlgmr.msra.gmra.mrb[0].mxu0 %vm1746_vm4, %v1745_v25  ;;  %v2603_v19 = vsub.f32 %v2601_v14, %v9624_v2 }
 0x69c   : > { %6475 = vmatpush3.msra.mxu0 %v9637_v27  ;;  %6476 = vmatprep.mubr.msk.f32.mxu0 %vm8405_vm1, %v8406_v63  ;;  %v2108_v20 = vmul.f32 %v2106_v55, %v2103_v11 }
 0x69d   : > { %v2275_v37 = vpop.permute.xlu1 %2274  ;;  %6484 = vmatprep.subr.mxu0 %v8406_v63  ;;  %v2604_v29 = vand.u32 2147483647, %v2603_v19 }
 0x69e   : > { %v2277_v61 = vsub.f32 %v2275_v37, %v9635_v24 }
 0x69f   : > { %6477 = vmatmul.mubr.msk.f32.vlgmr.msra.gmra.mrb[2].mxu0 %vm1746_vm4, %v1725_v32  ;;  %v2770_v32 = vpop.permute.xlu0 %2769  ;;  %v2605_v33 = vsub.f32 1.0, %v2604_v29 }
 0x6a0   : > { %6485 = vmatpush3.msra.mxu0 %v9637_v27  ;;  %6486 = vmatprep.mubr.msk.f32.mxu0 %vm8405_vm1, %v8406_v63  ;;  %v2278_v8 = vand.u32 2147483647, %v2277_v61  ;;  %v2772_v37 = vsub.f32 %v2770_v32, %v9624_v2 }
 0x6a1   : > { %v2267_v51 = vpop.permute.xlu1 %2266  ;;  %6494 = vmatprep.subr.mxu0 %v8406_v63  ;;  %v2606_v46 = vmax.f32 %v2605_v33, 0.0 }
 0x6a2   : > { %v2269_v62 = vsub.f32 %v2267_v51, %v9631_v13  ;;  %v2279_v18 = vsub.f32 1.0, %v2278_v8  ;;  %v2773_v49 = vand.u32 2147483647, %v2772_v37 }
 0x6a3   : > { %6487 = vmatmul.mubr.msk.f32.vlgmr.msra.gmra.mrb[4].mxu0 %vm1746_vm4, %v1902_v48 }
 0x6a4   : > { %v2270_v3 = vand.u32 2147483647, %v2269_v62  ;;  %6495 = vmatpush3.msk.msra.mxu0 %vm2113_vm5, %v9650_v52  ;;  %6496 = vmatprep.mubr.msk.f32.mxu0 %vm8405_vm1, %v8406_v63  ;;  %v2280_v21 = vmax.f32 %v2279_v18, 0.0  ;;  %v2939_v62 = vpop.permute.xlu0 %2938  ;;  %v2774_v0 = vsub.f32 1.0, %v2773_v49 }
 0x6a5   : > { %v1623_v7 = vpop.permute.xlu1 %1622  ;;  %6504 = vmatprep.subr.mxu0 %v8406_v63 }
 0x6a6   : > { %v2271_v9 = vsub.f32 1.0, %v2270_v3  ;;  %6467 = vmatmul.mubr.msk.f32.vlgmr.msra.gmra.mrb[2].mxu1 %vm1624_vm6, %v1623_v7  ;;  %v2775_v8 = vmax.f32 %v2774_v0, 0.0 }
 0x6a7   : > { %6480 = vmatpush3.msra.mxu1 %v9540_v26  ;;  %6497 = vmatmul.mubr.msk.f32.vlgmr.msra.gmra.mrb[6].mxu0 %vm2109_vm7, %v2089_v5  ;;  %v2941_v5 = vsub.f32 %v2939_v62, %v9635_v24 }
 0x6a8   : > { %v2272_v15 = vmax.f32 %v2271_v9, 0.0  ;;  %6481 = vmatprep.mubr.msk.f32.mxu1 %vm8405_vm1, %v8406_v63  ;;  %6489 = vmatprep.subr.mxu1 %v8406_v63 }
 0x6a9   : > { %v2283_v17 = vpop.permute.xlu1 %2282  ;;  %6505 = vmatpush3.msk.msra.mxu0 %vm2113_vm5, %v9650_v52  ;;  %6506 = vmatprep.mubr.msk.f32.mxu0 %vm8405_vm1, %v8406_v63 }
 0x6aa   : > { %6482 = vmatmul.mubr.msk.f32.vlgmr.msra.gmra.mrb[4].mxu1 %vm1746_vm4, %v1915_v10  ;;  %6535 = vmatprep.subr.mxu0 %v8406_v63  ;;  %v2285_v30 = vmul.f32 %v2283_v17, %v2280_v21  ;;  %v2942_v10 = vand.u32 2147483647, %v2941_v5 }
 0x6ab   : > { %6490 = vmatpush3.msk.msra.mxu1 %vm2113_vm5, %v9666_v16  ;;  %6507 = vmatmul.mubr.msk.f32.vlgmr.msra.gmra.mrb[8].mxu0 %vm2109_vm7, %v2272_v15  ;;  %v9711_v15 = vpop.permute.xlu0 %3099 }
 0x6ac   : > { %6491 = vmatprep.mubr.msk.f32.mxu1 %vm8405_vm1, %v8406_v63  ;;  %6499 = vmatprep.subr.mxu1 %v8406_v63 }
 0x6ad   : > { %6536 = vmatpush3.msra.mxu0 %v9540_v26  ;;  %6537 = vmatprep.mubr.msk.f32.mxu0 %vm8405_vm1, %v8406_v63 }
 0x6ae   : > { %v2593_v25 = vpop.permute.xlu1 %2592  ;;  %6492 = vmatmul.mubr.msk.f32.vlgmr.msra.gmra.mrb[6].mxu1 %vm2109_vm7, %v2108_v20  ;;  %6540 = vmatprep.subr.mxu0 %v8406_v63 }
 0x6af   : > { %6500 = vmatpush3.msk.msra.mxu1 %vm2113_vm5, %v9666_v16  ;;  %6501 = vmatprep.mubr.msk.f32.mxu1 %vm8405_vm1, %v8406_v63  ;;  %v2595_v31 = vsub.f32 %v2593_v25, %v9627_v6  ;;  %v7299_v25 = vpop.permute.xlu0 %7298 }
 0x6b0   : > { %6800 = vmatprep.subr.bf16.mxu1 %v8404_v60  ;;  %v7300_v32 = vunpack.i.l.bf16 %v7299_v25 }
 0x6b1   : > { %v2596_v44 = vand.u32 2147483647, %v2595_v31  ;;  %v7301_v31 = vunpack.i.h.bf16 %v7299_v25 }
 0x6b2   : > { %6502 = vmatmul.mubr.msk.f32.vlgmr.msra.gmra.mrb[8].mxu1 %vm2109_vm7, %v2285_v30 }
 0x6b3   : > { %v2762_v34 = vpop.permute.xlu1 %2761  ;;  %6513 = vmatprep.mubr.msk.f32.mxu1 %vm8405_vm1, %v8406_v63  ;;  %v2597_v51 = vsub.f32 1.0, %v2596_v44  ;;  %v6816_v37 = vpack.c.bf16 %v7301_v31, %v7300_v32  ;;  %v6807_v31 = vpack.c.bf16 %v9564_v40, %v9562_v39  ;;  %v6810_v39 = vpack.c.bf16 %v9610_v58, %v9608_v57 }
 0x6b4   : > { %v2764_v61 = vsub.f32 %v2762_v34, %v9627_v6  ;;  %v3102_v57 = vsub.f32 %v9711_v15, %v9631_v13 }
 0x6b5   : > { %v2598_v1 = vmax.f32 %v2597_v51, 0.0 }
 0x6b6   : > { %v2765_v7 = vand.u32 2147483647, %v2764_v61 }
 0x6b8   : > { %v2609_v48 = vpop.permute.xlu1 %2608  ;;  %v2766_v11 = vsub.f32 1.0, %v2765_v7 }
 0x6b9   : > { %v2611_v55 = vmul.f32 %v2609_v48, %v2606_v46  ;;  %v6801_v48 = vpack.c.bf16 %v9554_v36, %v9552_v35 }
 0x6ba   : > { %v2767_v17 = vmax.f32 %v2766_v11, 0.0 }
 0x6bb   : > { %6538 = vmatmul.mubr.msk.f32.vlgmr.msra.gmra.mrb[10].mxu0 %vm1746_vm4, %v2611_v55  ;;  %6802 = vmatpush3.bf16.msra.mxu1 %v6801_v48 }
 0x6bc   : > { %6541 = vmatpush3.msra.mxu0 %v9637_v27  ;;  %6542 = vmatprep.mubr.msk.f32.mxu0 %vm8405_vm1, %v8406_v63 }
 0x6bd   : > { %v9701_v3 = vpop.permute.xlu1 %2930  ;;  %6545 = vmatprep.subr.mxu0 %v8406_v63  ;;  %6803 = vmatprep.subr.bf16.mxu1 %v8404_v60 }
 0x6be   : > { %v2933_v40 = vsub.f32 %v9701_v3, %v9631_v13 }
 0x6bf   : > { %6543 = vmatmul.mubr.msk.f32.vlgmr.msra.gmra.mrb[12].mxu0 %vm1746_vm4, %v2598_v1 }
 0x6c0   : > { %6546 = vmatpush3.msra.mxu0 %v9540_v26  ;;  %6547 = vmatprep.mubr.msk.f32.mxu0 %vm8405_vm1, %v8406_v63  ;;  %v2943_v26 = vsub.f32 1.0, %v2942_v10  ;;  %v2934_v58 = vand.u32 2147483647, %v2933_v40 }
 0x6c1   : > { %6550 = vmatprep.subr.mxu0 %v8406_v63 }
 0x6c2   : > { %v2778_v9 = vpop.permute.xlu1 %2777  ;;  %v2944_v21 = vmax.f32 %v2943_v26, 0.0  ;;  %v2935_v48 = vsub.f32 1.0, %v2934_v58 }
 0x6c3   : > { %v2780_v14 = vmul.f32 %v2778_v9, %v2775_v8 }
 0x6c4   : > { %v2936_v15 = vmax.f32 %v2935_v48, 0.0 }
 0x6c5   : > { %6548 = vmatmul.mubr.msk.f32.vlgmr.msra.gmra.mrb[14].mxu0 %vm1746_vm4, %v2780_v14 }
 0x6c6   : > { %6551 = vmatpush3.msra.mxu0 %v9637_v27  ;;  %6552 = vmatprep.mubr.msk.f32.mxu0 %vm8405_vm1, %v8406_v63 }
 0x6c7   : > { %v3108_v18 = vpop.permute.xlu1 %3107  ;;  %6555 = vmatprep.subr.mxu0 %v8406_v63 }
 0x6c8   : > { %v3110_v19 = vsub.f32 %v3108_v18, %v9635_v24 }
 0x6c9   : > { %6553 = vmatmul.mubr.msk.f32.vlgmr.msra.gmra.mrb[16].mxu0 %vm1746_vm4, %v2767_v17 }
 0x6ca   : > { %v3111_v20 = vand.u32 2147483647, %v3110_v19  ;;  %6556 = vmatpush3.msk.msra.mxu0 %vm2113_vm5, %v9666_v16  ;;  %6557 = vmatprep.mubr.msk.f32.mxu0 %vm8405_vm1, %v8406_v63 }
 0x6cb   : > { %6565 = vmatprep.subr.mxu0 %v8406_v63 }
 0x6cc   : > { %v3112_v29 = vsub.f32 1.0, %v3111_v20  ;;  %v2947_v30 = vpop.permute.xlu1 %2946 }
 0x6cd   : > { %v2949_v33 = vmul.f32 %v2947_v30, %v2944_v21  ;;  %v8432_v30 = vmov 13  }
 0x6ce   : > { %v3113_v34 = vmax.f32 %v3112_v29, 0.0  ;;  %v6804_v29 = vpack.c.bf16 %v9600_v54, %v9598_v53  ;;  %v8433_v54 = vmov 14  }
 0x6cf   : > { %6558 = vmatmul.mubr.msk.f32.vlgmr.msra.gmra.mrb[18].mxu0 %vm2109_vm7, %v2949_v33 }
 0x6d0   : > { %6566 = vmatpush3.msk.msra.mxu0 %vm2113_vm5, %v9666_v16  ;;  %6567 = vmatprep.mubr.msk.f32.mxu0 %vm8405_vm1, %v8406_v63 }
 0x6d1   : > { %v3116_v44 = vpop.permute.xlu1 %3115  ;;  %6815 = vmatprep.subr.bf16.mxu0 %v8404_v60 }
 0x6d2   : > { %v3118_v46 = vmul.f32 %v3116_v44, %v3113_v34  ;;  %v6813_v44 = vpack.c.bf16 %v9575_v43, %v9573_v42 }
 0x6d4   : > { %6568 = vmatmul.mubr.msk.f32.vlgmr.msra.gmra.mrb[20].mxu0 %vm2109_vm7, %v3118_v46  ;;  %v3103_v46 = vand.u32 2147483647, %v3102_v57 }
 0x6d5   : > { %6817 = vmatpush3.bf16.msra.mxu0 %v6816_v37  ;;  %6579 = vmatprep.mubr.msk.f32.mxu0 %vm8405_vm1, %v8406_v63  ;;  %v8434_v37 = vmov 15  }
 0x6d6   : > { %6818 = vmatprep.subr.bf16.mxu0 %v8404_v60  ;;  %v3104_v43 = vsub.f32 1.0, %v3103_v46 }
 0x76e   : > { %v1816_v49 = vpop.f32.mrb[0].mxu0 }
 0x76f   : > { %v6473_v51 = vpop.f32.mrb[1].mxu0 }
 0x772   : > { %v1889_v55 = vpop.f32.mrb[2].mxu0 }
 0x773   : > { %v1893_v61 = vmul.f32 %v1889_v55, %v1816_v49  ;;  %v6478_v62 = vpop.f32.mrb[3].mxu0 }
 0x774   : > { %v3105_v62 = vmax.f32 %v3104_v43, 0.0 }
 0x776   : > { %v2058_v0 = vpop.f32.mrb[4].mxu0 }
 0x777   : > { %v6488_v1 = vpop.f32.mrb[5].mxu0 }
 0x779   : > { %v1693_v5 = vpop.f32.mrb[2].mxu1 }
 0x77a   : > { %7401 = vrcp.f32 %v1693_v5  ;;  %v6468_v7 = vpop.f32.mrb[3].mxu1  ;;  %v2259_v41 = vpop.f32.mrb[6].mxu0  ;;  %v8437_v5 = vmov 12  }
 0x77b   : > { %v6498_v8 = vpop.f32.mrb[7].mxu0 }
 0x77c   : > { %v8439_v8 = vmov 45  }
 0x77d   : > { %v1985_v9 = vpop.f32.mrb[4].mxu1 }
 0x77e   : > { %v2062_v45 = vmul.f32 %v2058_v0, %v1985_v9  ;;  %v6483_v10 = vpop.f32.mrb[5].mxu1  ;;  %v2428_v11 = vpop.f32.mrb[8].mxu0  ;;  %v8440_v9 = vmov 46  }
 0x77f   : > { %v6508_v35 = vpop.f32.mrb[9].mxu0 }
 0x780   : > { %v2063_v36 = vadd.f32 %v2062_v45, %v1893_v61  ;;  %v8441_v45 = vmov 47  }
 0x781   : > { %v2183_v14 = vpop.f32.mrb[6].mxu1 }
 0x782   : > { %v2263_v26 = vmul.f32 %v2259_v41, %v2183_v14  ;;  %v6493_v17 = vpop.f32.mrb[7].mxu1 }
 0x784   : > { %v9741_v18 = vpop.eup %7401 }
 0x785   : > { %4458 = vperm.xlu0 %7362, %v9741_v18   ;;  %3454 = vperm.xlu1 %7327, %v9741_v18   ;;  %v2355_v19 = vpop.f32.mrb[8].mxu1 }
 0x786   : > { %v2432_v20 = vmul.f32 %v2428_v11, %v2355_v19  ;;  %v6503_v21 = vpop.f32.mrb[9].mxu1  ;;  %v7309_v11 = vpop.permute.xlu0 %7308 }
 0x788   : > { %v2433_v25 = vadd.f32 %v2432_v20, %v2263_v26 }
 0x789   : > { %7363 = vset.pattern.permute.xlu0 %v8432_v30  ;;  %7328 = vset.pattern.permute.xlu1 %v8407_v4 }
 0x78a   : > { %4715 = vperm.xlu0 %7363, %v9528_v22   ;;  %2586 = vperm.xlu1 %7328, %v9741_v18  }
 0x78b   : > { %6514 = vmatmul.mubr.msk.f32.vlgmr.msra.gmra.mrb[10].mxu1 %vm1624_vm6, %v2433_v25 }
 0x78c   : > { %6805 = vmatpush3.bf16.msra.mxu1 %v6804_v29  ;;  %6532 = vmatprep.mubr.msk.f32.mxu1 %vm8405_vm1, %v8406_v63 }
 0x78d   : > { %6806 = vmatprep.subr.bf16.mxu1 %v8404_v60 }
 0x78e   : > { %v2681_v53 = vpop.f32.mrb[10].mxu0  ;;  %7366 = vset.pattern.permute.xlu0 %v8433_v54  ;;  %7329 = vset.pattern.permute.xlu1 %v8424_v47  ;;  %v8435_v47 = vmov 41  }
 0x78f   : > { %v6539_v4 = vpop.f32.mrb[11].mxu0  ;;  %4884 = vperm.xlu0 %7366, %v9528_v22   ;;  %3944 = vperm.xlu1 %7329, %v9517_v12  }
 0x790   : > { %6808 = vmatpush3.bf16.msra.mxu1 %v6807_v31 }
 0x791   : > { %6809 = vmatprep.subr.bf16.mxu1 %v8404_v60 }
 0x792   : > { %v2754_v32 = vpop.f32.mrb[12].mxu0 }
 0x793   : > { %v2758_v33 = vmul.f32 %v2754_v32, %v2681_v53  ;;  %v6544_v34 = vpop.f32.mrb[13].mxu0  ;;  %7369 = vset.pattern.permute.xlu0 %v8434_v37  ;;  %7330 = vset.pattern.permute.xlu1 %v8435_v47 }
 0x794   : > { %6811 = vmatpush3.bf16.msra.mxu1 %v6810_v39  ;;  %5045 = vperm.xlu0 %7369, %v9517_v12  }
 0x795   : > { %3791 = vperm.xlu1 %7330, %v9533_v23   ;;  %6812 = vmatprep.subr.bf16.mxu1 %v8404_v60 }
 0x798   : > { %6814 = vmatpush3.bf16.msra.mxu1 %v6813_v44  ;;  %v2850_v3 = vpop.f32.mrb[14].mxu0  ;;  %7398 = vset.pattern.permute.xlu0 %v8415_v28 }
 0x799   : > { %7332 = vset.pattern.permute.xlu1 %v8427_v50  ;;  %v6549_v49 = vpop.f32.mrb[15].mxu0  ;;  %6560 = vmatprep.subr.mxu1 %v8406_v63  ;;  %v8436_v50 = vmov 42  }
 0x79a   : > { %4113 = vperm.xlu1 %7332, %v9517_v12  }
 0x79b   : > { %6533 = vmatmul.mubr.msk.f32.vlgmr.msra.gmra.mrb[10].mxu1 %vm2509_vm8, %v2063_v36  ;;  %v9826_v36 = vpop.permute.xlu0 %7318 }
 0x79c   : > { %6561 = vmatpush3.msk.msra.mxu1 %vm2113_vm5, %v9650_v52  ;;  %v2923_v42 = vpop.f32.mrb[16].mxu0  ;;  %6562 = vmatprep.mubr.msk.f32.mxu1 %vm8405_vm1, %v8406_v63 }
 0x79d   : > { %v2927_v51 = vmul.f32 %v2923_v42, %v2850_v3  ;;  %v6554_v55 = vpop.f32.mrb[17].mxu0  ;;  %6570 = vmatprep.subr.mxu1 %v8406_v63 }
 0x79e   : > { %7333 = vset.pattern.permute.xlu1 %v8436_v50 }
 0x79f   : > { %v9783_v61 = vadd.f32 %v2927_v51, %v2758_v33  ;;  %6563 = vmatmul.mubr.msk.f32.vlgmr.msra.gmra.mrb[12].mxu1 %vm2109_vm7, %v2936_v15  ;;  %3960 = vperm.xlu1 %7333, %v9533_v23   ;;  %v9830_v14 = vpop.permute.xlu0 %3614 }
 0x7a0   : > { %6571 = vmatpush3.msk.msra.mxu1 %vm2113_vm5, %v9650_v52  ;;  %6572 = vmatprep.mubr.msk.f32.mxu1 %vm8405_vm1, %v8406_v63 }
 0x7a1   : > { %6601 = vmatprep.subr.mxu1 %v8406_v63 }
 0x7a2   : > { %v9792_v0 = vpop.f32.mrb[18].mxu0 }
 0x7a3   : > { %6573 = vmatmul.mubr.msk.f32.vlgmr.msra.gmra.mrb[14].mxu1 %vm2109_vm7, %v3105_v62  ;;  %7336 = vrot.lane.b32.xlu1 %v9560_v38, %s8410_s24  ;;  %v6559_v1 = vpop.f32.mrb[19].mxu0  ;;  %v8438_v38 = vmov 44  }
 0x7a4   : > { %7360 = vset.pattern.permute.xlu1 %v8437_v5  ;;  %6603 = vmatprep.mubr.msk.f32.mxu1 %vm8405_vm1, %v8406_v63 }
 0x7a7   : > { %7341 = vrot.lane.b32.xlu1 %v9605_v56, %s8410_s24  ;;  %v9801_v7 = vpop.f32.mrb[20].mxu0 }
 0x7a8   : > { %v6569_v41 = vpop.f32.mrb[21].mxu0 }
 0x7ab   : > { %7351 = vrot.lane.b32.xlu1 %v9616_v59, %s8410_s24  ;;  %s8191_s24 = sshll.u32 %s8443_s1, 4  ;;  %s8192_s24 = int_to_ptr.vmem [resolvable:$false] %s8191_s24 }
 0x7ac   : > { %s8193_s11 = scalar_lea.vmem %s8192_s24, 256  ;;  %p8194_p9 = scmp.lt.s32.totalorder %s10095_s28, %s8192_s24 }
 0x7ad   : > { %p8195_p4 = scmp.lt.s32.totalorder %s8193_s11, %s8187_s27 }
 0x7af   : > { %4546 = vperm.xlu1 %7360, %v9528_v22   ;;  %p8196_p13 = por %p8195_p4, %p8194_p9 }
 0x7b1   : > { %p8197_p7 = pnand %p8196_p13, %p8190_p12 }
 0x7b3   : > { %4538 = vperm.xlu1 %7360, %v9517_v12  }
 0x7b7   : > { %7361 = vset.pattern.permute.xlu1 %v8438_v38 }
 0x7b8   : > { %4554 = vperm.xlu1 %7361, %v9533_v23  }
 0x7bc   : > { %7364 = vset.pattern.permute.xlu1 %v8432_v30 }
 0x7bd   : > { %4707 = vperm.xlu1 %7364, %v9517_v12  }
 0x7c1   : > { %7365 = vset.pattern.permute.xlu1 %v8439_v8 }
 0x7c2   : > { %4723 = vperm.xlu1 %7365, %v9533_v23  }
 0x7c6   : > { %7367 = vset.pattern.permute.xlu1 %v8433_v54 }
 0x7c7   : > { %4876 = vperm.xlu1 %7367, %v9517_v12   ;;  %v7304_v12 = vpop.permute.xlu1 %7303 }
 0x7cb   : > { %7368 = vset.pattern.permute.xlu1 %v8434_v37 }
 0x7cc   : > { %5053 = vperm.xlu1 %7368, %v9528_v22   ;;  %v9822_v22 = vpop.permute.xlu1 %7313 }
 0x7d0   : > { %7370 = vset.pattern.permute.xlu1 %v8440_v9  ;;  %v9824_v10 = vpop.permute.xlu1 %3606  ;;  %v7306_v9 = vunpack.i.h.bf16 %v7304_v12 }
 0x7d1   : > { %4892 = vperm.xlu1 %7370, %v9533_v23  }
 0x7d4   : > { %v3784_v35 = vpop.permute.xlu1 %3783 }
 0x7d5   : > { %7371 = vset.pattern.permute.xlu1 %v8441_v45  ;;  %v7305_v45 = vunpack.i.l.bf16 %v7304_v12 }
 0x7d6   : > { %5061 = vperm.xlu1 %7371, %v9533_v23  }
 0x7d8   : > { %v9828_v23 = vpop.permute.xlu1 %3775 }
 0x7da   : > { %7378 = vrot.lane.b32.xlu1 %v9605_v56, %s8442_s20 }
 0x7db   : > { %7397 = vset.pattern.permute.xlu1 %v8415_v28  ;;  %v3786_v28 = vsub.f32 %v3784_v35, %v9624_v2 }
 0x7dd   : > { %v3787_v17 = vand.u32 2147483647, %v3786_v28 }
 0x7de   : > { %7388 = vrot.lane.b32.xlu1 %v9616_v59, %s8442_s20  ;;  %v9835_v59 = vpop.permute.xlu0 %3952 }
 0x7df   : > { %v3788_v20 = vsub.f32 1.0, %v3787_v17 }
 0x7e1   : > { %v3789_v21 = vmax.f32 %v3788_v20, 0.0  ;;  %v7311_v20 = vunpack.i.h.bf16 %v7309_v11 }
 0x7e2   : > { %5390 = vperm.xlu1 %7397, %v9741_v18   ;;  %v9841_v19 = vpop.permute.xlu0 %3622 }
 0x7e6   : > { %v9843_v29 = vpop.permute.xlu0 %4121 }
 0x7ea   : > { %v9849_v53 = vpop.permute.xlu0 %4129 }
 0x7ee   : > { %v9853_v4 = vpop.permute.xlu0 %7346 }
 0x7f2   : > { %v9857_v40 = vpop.permute.xlu0 %7356 }
 0x804   : > { %v9832_v56 = vpop.permute.xlu1 %3454  ;;  %v9863_v34 = vpop.permute.xlu0 %4458 }
 0x809   : > { %v9837_v26 = vpop.permute.xlu1 %2586  ;;  %v4716_v44 = vpop.permute.xlu0 %4715 }
 0x80a   : > { %v4718_v46 = vsub.f32 %v4716_v44, %v9624_v2  ;;  %v7316_v44 = vunpack.i.h.bf16 %v9822_v22 }
 0x80c   : > { %v4719_v42 = vand.u32 2147483647, %v4718_v46 }
 0x80e   : > { %v9839_v18 = vpop.permute.xlu1 %3944  ;;  %v4720_v15 = vsub.f32 1.0, %v4719_v42 }
 0x80f   : > { %v3947_v46 = vsub.f32 %v9839_v18, %v9631_v13 }
 0x810   : > { %v4721_v55 = vmax.f32 %v4720_v15, 0.0  ;;  %v3458_v15 = vld [vmem:[#allocation20 + $0x8] sm:$0xff] }
 0x811   : > { %6602 = vmatpush3.msra.mxu1 %v3458_v15 }
 0x812   : > { %6606 = vmatprep.subr.mxu1 %v8406_v63 }
 0x814   : > { %v3792_v25 = vpop.permute.xlu1 %3791 }
 0x815   : > { %v9845_v30 = vmul.f32 %v3792_v25, %v3789_v21  ;;  %v7310_v21 = vunpack.i.l.bf16 %v7309_v11  ;;  %v6819_v25 = vpack.c.bf16 %v7306_v9, %v7305_v45  ;;  %v3778_v11 = vsub.f32 %v9828_v23, %v9627_v6 }
 0x819   : > { %v9847_v31 = vpop.permute.xlu1 %4113 }
 0x81e   : > { %v9851_v54 = vpop.permute.xlu1 %3960 }
 0x822   : > { %v9855_v39 = vpop.permute.xlu1 %7336 }
 0x826   : > { %v9859_v32 = vpop.permute.xlu1 %7341 }
 0x82a   : > { %v9861_v33 = vpop.permute.xlu1 %7351 }
 0x82e   : > { %v4547_v37 = vpop.permute.xlu1 %4546 }
 0x82f   : > { %v4549_v47 = vsub.f32 %v4547_v37, %v9624_v2 }
 0x831   : > { %v4550_v57 = vand.u32 2147483647, %v4549_v47  ;;  %v6822_v47 = vpack.c.bf16 %v7311_v20, %v7310_v21 }
 0x832   : > { %v9866_v58 = vpop.permute.xlu1 %4538 }
 0x833   : > { %v4551_v3 = vsub.f32 1.0, %v4550_v57  ;;  %v7315_v57 = vunpack.i.l.bf16 %v9822_v22  ;;  %v3779_v22 = vand.u32 2147483647, %v3778_v11 }
 0x835   : > { %v4552_v48 = vmax.f32 %v4551_v3, 0.0  ;;  %v6825_v12 = vpack.c.bf16 %v7316_v44, %v7315_v57  ;;  %v7339_v44 = vunpack.i.h.bf16 %v9855_v39  ;;  %v7338_v57 = vunpack.i.l.bf16 %v9855_v39 }
 0x837   : > { %v4555_v49 = vpop.permute.xlu1 %4554 }
 0x838   : > { %v9869_v43 = vmul.f32 %v4555_v49, %v4552_v48  ;;  %v3780_v48 = vsub.f32 1.0, %v3779_v22  ;;  %v3948_v49 = vand.u32 2147483647, %v3947_v46 }
 0x83a   : > { %v3781_v23 = vmax.f32 %v3780_v48, 0.0  ;;  %v3949_v18 = vsub.f32 1.0, %v3948_v49 }
 0x83c   : > { %v9871_v51 = vpop.permute.xlu1 %4707 }
 0x841   : > { %v4724_v50 = vpop.permute.xlu1 %4723 }
 0x842   : > { %v9873_v62 = vmul.f32 %v4724_v50, %v4721_v55  ;;  %v3617_v55 = vsub.f32 %v9830_v14, %v9624_v2 }
 0x844   : > { %v3618_v50 = vand.u32 2147483647, %v3617_v55  ;;  %v7344_v55 = vunpack.i.h.bf16 %v9859_v32 }
 0x846   : > { %v3619_v9 = vsub.f32 1.0, %v3618_v50  ;;  %v7343_v50 = vunpack.i.l.bf16 %v9859_v32  ;;  %v7359_v32 = vunpack.i.h.bf16 %v9857_v40 }
 0x86e   : > { %v9875_v1 = vpop.f32.mrb[10].mxu1 }
 0x86f   : > { %v6534_v5 = vpop.f32.mrb[11].mxu1  ;;  %v2589_v2 = vmul.f32 %v9837_v26, %v9875_v1  ;;  %v4124_v26 = vsub.f32 %v9843_v29, %v9635_v24 }
 0x870   : > { %v3609_v5 = vsub.f32 %v9824_v10, %v9627_v6  ;;  %v3620_v6 = vmax.f32 %v3619_v9, 0.0  ;;  %v3955_v10 = vsub.f32 %v9835_v59, %v9635_v24  ;;  %v6834_v9 = vpack.c.bf16 %v7344_v55, %v7343_v50 }
 0x872   : > { %v3092_v41 = vpop.f32.mrb[12].mxu1  ;;  %v3956_v59 = vand.u32 2147483647, %v3955_v10  ;;  %v7353_v10 = vunpack.i.l.bf16 %v9861_v33 }
 0x873   : > { %v3096_v38 = vmul.f32 %v3092_v41, %v9792_v0  ;;  %v6564_v8 = vpop.f32.mrb[13].mxu1  ;;  %v7321_v0 = vunpack.i.h.bf16 %v9826_v36 }
 0x874   : > { %v2590_v8 = vld [vmem:[#allocation20] sm:$0xff] }
 0x876   : > { %v3261_v35 = vpop.f32.mrb[14].mxu1 }
 0x877   : > { %v3265_v28 = vmul.f32 %v3261_v35, %v9801_v7  ;;  %v6574_v17 = vpop.f32.mrb[15].mxu1  ;;  %v7320_v7 = vunpack.i.l.bf16 %v9826_v36  ;;  %v4116_v36 = vsub.f32 %v9847_v31, %v9631_v13  ;;  %v3950_v13 = vmax.f32 %v3949_v18, 0.0 }
 0x878   : > { %v3610_v35 = vand.u32 2147483647, %v3609_v5  ;;  %v3625_v17 = vmul.f32 %v9841_v19, %v3620_v6  ;;  %v3957_v19 = vsub.f32 1.0, %v3956_v59  ;;  %v7354_v6 = vunpack.i.h.bf16 %v9861_v33 }
 0x879   : > { %v3266_v37 = vadd.f32 %v3265_v28, %v3096_v38  ;;  %v6828_v3 = vpack.c.bf16 %v7321_v0, %v7320_v7  ;;  %v4117_v42 = vand.u32 2147483647, %v4116_v36 }
 0x87a   : > { %v3611_v1 = vsub.f32 1.0, %v3610_v35 }
 0x87b   : > { %6580 = vmatmul.mubr.msk.f32.vlgmr.msra.gmra.mrb[22].mxu0 %vm1624_vm6, %v3266_v37 }
 0x87c   : > { %6820 = vmatpush3.bf16.msra.mxu0 %v6819_v25  ;;  %6598 = vmatprep.mubr.msk.f32.mxu0 %vm8405_vm1, %v8406_v63  ;;  %v4125_v25 = vand.u32 2147483647, %v4124_v26  ;;  %v3612_v37 = vmax.f32 %v3611_v1, 0.0 }
 0x87d   : > { %6821 = vmatprep.subr.bf16.mxu0 %v8404_v60 }
 0x87e   : > { %v4126_v29 = vsub.f32 1.0, %v4125_v25 }
 0x880   : > { %6823 = vmatpush3.bf16.msra.mxu0 %v6822_v47  ;;  %v4127_v0 = vmax.f32 %v4126_v29, 0.0 }
 0x881   : > { %6824 = vmatprep.subr.bf16.mxu0 %v8404_v60 }
 0x884   : > { %6826 = vmatpush3.bf16.msra.mxu0 %v6825_v12  ;;  %v6831_v12 = vpack.c.bf16 %v7339_v44, %v7338_v57  ;;  %v7408_v44 = vld [vmem:[#allocation2 + $0x40] sm:$0xff]  ;;  %v7409_v57 = vld [vmem:[#allocation2 + $0x48] sm:$0xff] }
 0x885   : > { %6827 = vmatprep.subr.bf16.mxu0 %v8404_v60 }
 0x888   : > { %6829 = vmatpush3.bf16.msra.mxu0 %v6828_v3 }
 0x889   : > { %6626 = vmatprep.subr.mxu0 %v8406_v63 }
 0x88b   : > { %6599 = vmatmul.mubr.msk.f32.vlgmr.msra.gmra.mrb[22].mxu0 %vm2509_vm8, %v9783_v61  ;;  %v4118_v61 = vsub.f32 1.0, %v4117_v42 }
 0x88c   : > { %6627 = vmatpush3.msra.mxu0 %v9637_v27  ;;  %6628 = vmatprep.mubr.msk.f32.mxu0 %vm8405_vm1, %v8406_v63 }
 0x88d   : > { %6636 = vmatprep.subr.mxu0 %v8406_v63  ;;  %v4119_v31 = vmax.f32 %v4118_v61, 0.0 }
 0x88f   : > { %6629 = vmatmul.mubr.msk.f32.vlgmr.msra.gmra.mrb[24].mxu0 %vm1746_vm4, %v3781_v23 }
 0x890   : > { %6637 = vmatpush3.msk.msra.mxu0 %vm2113_vm5, %v9650_v52  ;;  %6638 = vmatprep.mubr.msk.f32.mxu0 %vm8405_vm1, %v8406_v63 }
 0x891   : > { %6646 = vmatprep.subr.mxu0 %v8406_v63 }
 0x893   : > { %6639 = vmatmul.mubr.msk.f32.vlgmr.msra.gmra.mrb[26].mxu0 %vm2109_vm7, %v3950_v13 }
 0x894   : > { %6647 = vmatpush3.msk.msra.mxu0 %vm2113_vm5, %v9650_v52  ;;  %6648 = vmatprep.mubr.msk.f32.mxu0 %vm8405_vm1, %v8406_v63 }
 0x895   : > { %6677 = vmatprep.subr.mxu0 %v8406_v63 }
 0x897   : > { %6649 = vmatmul.mubr.msk.f32.vlgmr.msra.gmra.mrb[28].mxu0 %vm2109_vm7, %v4119_v31 }
 0x898   : > { %6679 = vmatprep.mubr.msk.f32.mxu0 %vm8405_vm1, %v8406_v63 }
 0x95e   : > { %v3449_v52 = vpop.f32.mrb[22].mxu0 }
 0x95f   : > { %v3457_v41 = vmul.f32 %v9832_v56, %v3449_v52  ;;  %v6600_v38 = vpop.f32.mrb[23].mxu0  ;;  %v9934_v56 = vld [vmem:[#allocation38] sm:$0xff] }
 0x960   : > { %v7349_v38 = vunpack.i.h.bf16 %v9853_v4 }
 0x961   : > { %6604 = vmatmul.mubr.msk.f32.vlgmr.msra.gmra.mrb[16].mxu1 %vm1746_vm4, %v3457_v41 }
 0x962   : > { %6607 = vmatpush3.msra.mxu1 %v2590_v8  ;;  %v9924_v45 = vpop.f32.mrb[24].mxu0  ;;  %6608 = vmatprep.mubr.msk.f32.mxu1 %vm8405_vm1, %v8406_v63  ;;  %v7348_v8 = vunpack.i.l.bf16 %v9853_v4 }
 0x963   : > { %v6630_v14 = vpop.f32.mrb[25].mxu0  ;;  %6611 = vmatprep.subr.mxu1 %v8406_v63 }
 0x964   : > { %v4885_v14 = vpop.permute.xlu0 %4884 }
 0x965   : > { %6609 = vmatmul.mubr.msk.f32.vlgmr.msra.gmra.mrb[18].mxu1 %vm1746_vm4, %v2589_v2  ;;  %v9981_v2 = vpop.permute.xlu1 %4876  ;;  %v4887_v4 = vsub.f32 %v4885_v14, %v9635_v24 }
 0x966   : > { %6612 = vmatpush3.msra.mxu1 %v9934_v56  ;;  %v4106_v28 = vpop.f32.mrb[26].mxu0  ;;  %6613 = vmatprep.mubr.msk.f32.mxu1 %vm8405_vm1, %v8406_v63 }
 0x967   : > { %v6640_v20 = vpop.f32.mrb[27].mxu0  ;;  %6616 = vmatprep.subr.mxu1 %v8406_v63  ;;  %v4888_v1 = vand.u32 2147483647, %v4887_v4 }
 0x969   : > { %6614 = vmatmul.mubr.msk.f32.vlgmr.msra.gmra.mrb[20].mxu1 %vm1746_vm4, %v3625_v17  ;;  %v6840_v17 = vpack.c.bf16 %v7354_v6, %v7353_v10  ;;  %v5054_v26 = vpop.permute.xlu1 %5053  ;;  %v4889_v59 = vsub.f32 1.0, %v4888_v1 }
 0x96a   : > { %6617 = vmatpush3.msra.mxu1 %v9637_v27  ;;  %v4275_v21 = vpop.f32.mrb[28].mxu0  ;;  %6618 = vmatprep.mubr.msk.f32.mxu1 %vm8405_vm1, %v8406_v63  ;;  %v3958_v27 = vmax.f32 %v3957_v19, 0.0  ;;  %v5056_v33 = vsub.f32 %v5054_v26, %v9635_v24 }
 0x96b   : > { %v6650_v47 = vpop.f32.mrb[29].mxu0  ;;  %6621 = vmatprep.subr.mxu1 %v8406_v63 }
 0x96c   : > { %v3963_v7 = vmul.f32 %v9851_v54, %v3958_v27  ;;  %v4462_v27 = vld [vmem:[#allocation20 + $0x10] sm:$0xff] }
 0x96d   : > { %6619 = vmatmul.mubr.msk.f32.vlgmr.msra.gmra.mrb[22].mxu1 %vm1746_vm4, %v3612_v37  ;;  %v4893_v25 = vpop.permute.xlu1 %4892  ;;  %v4890_v37 = vmax.f32 %v4889_v59, 0.0  ;;  %6678 = vmatpush3.msra.mxu0 %v4462_v27 }
 0x96e   : > { %6622 = vmatpush3.msra.mxu1 %v9934_v56  ;;  %6623 = vmatprep.mubr.msk.f32.mxu1 %vm8405_vm1, %v8406_v63 }
 0x96f   : > { %6631 = vmatprep.subr.mxu1 %v8406_v63  ;;  %v4895_v24 = vmul.f32 %v4893_v25, %v4890_v37  ;;  %6682 = vmatprep.subr.mxu0 %v8406_v63 }
 0x971   : > { %6624 = vmatmul.mubr.msk.f32.vlgmr.msra.gmra.mrb[24].mxu1 %vm1746_vm4, %v9845_v30  ;;  %v4132_v30 = vmul.f32 %v9849_v53, %v4127_v0  ;;  %v5062_v47 = vpop.permute.xlu1 %5061  ;;  %v7372_v0 = vpack.i.bf16 %v7409_v57, %v7408_v44 }
 0x972   : > { %6632 = vmatpush3.msk.msra.mxu1 %vm2113_vm5, %v9666_v16  ;;  %6633 = vmatprep.mubr.msk.f32.mxu1 %vm8405_vm1, %v8406_v63 }
 0x973   : > { %6641 = vmatprep.subr.mxu1 %v8406_v63  ;;  %7373 = vrot.lane.b32.xlu0 %v7372_v0, %s8442_s20 }
 0x975   : > { %6634 = vmatmul.mubr.msk.f32.vlgmr.msra.gmra.mrb[26].mxu1 %vm2109_vm7, %v3963_v7  ;;  %v7411_v7 = vld [vmem:[#allocation2 + $0x18] sm:$0xff] }
 0x976   : > { %6642 = vmatpush3.msk.msra.mxu1 %vm2113_vm5, %v9666_v16  ;;  %6643 = vmatprep.mubr.msk.f32.mxu1 %vm8405_vm1, %v8406_v63 }
 0x977   : > { %6830 = vmatprep.subr.bf16.mxu1 %v8404_v60 }
 0x979   : > { %6644 = vmatmul.mubr.msk.f32.vlgmr.msra.gmra.mrb[28].mxu1 %vm2109_vm7, %v4132_v30  ;;  %v7412_v30 = vld [vmem:[#allocation2 + $0x30] sm:$0xff] }
 0x97a   : > { %6832 = vmatpush3.bf16.msra.mxu1 %v6831_v12  ;;  %6655 = vmatprep.mubr.msk.f32.mxu1 %vm8405_vm1, %v8406_v63 }
 0x97b   : > { %6833 = vmatprep.subr.bf16.mxu1 %v8404_v60 }
 0xa34   : > { %v3528_v54 = vpop.f32.mrb[16].mxu1 }
 0xa35   : > { %v6605_v39 = vpop.f32.mrb[17].mxu1 }
 0xa38   : > { %v3601_v11 = vpop.f32.mrb[18].mxu1 }
 0xa39   : > { %v9974_v3 = vadd.f32 %v3601_v11, %v3528_v54  ;;  %v6610_v22 = vpop.f32.mrb[19].mxu1  ;;  %v7413_v54 = vld [vmem:[#allocation2 + $0x38] sm:$0xff]  ;;  %v7414_v11 = vld [vmem:[#allocation33] ss:$0 sm:$0xff] }
 0xa3a   : > { %v7392_v39 = vpack.i.bf16 %v7413_v54, %v7412_v30  ;;  %v4541_v22 = vsub.f32 %v9866_v58, %v7414_v11 }
 0xa3c   : > { %v3695_v46 = vpop.f32.mrb[20].mxu1 }
 0xa3d   : > { %v6615_v48 = vpop.f32.mrb[21].mxu1 }
 0xa3e   : > { %v4542_v48 = vand.u32 2147483647, %v4541_v22 }
 0xa40   : > { %v3768_v49 = vpop.f32.mrb[22].mxu1 }
 0xa41   : > { %v3772_v53 = vmul.f32 %v3768_v49, %v3695_v46  ;;  %v6620_v36 = vpop.f32.mrb[23].mxu1 }
 0xa44   : > { %v3864_v23 = vpop.f32.mrb[24].mxu1 }
 0xa45   : > { %v3941_v18 = vmul.f32 %v9924_v45, %v3864_v23  ;;  %v6625_v42 = vpop.f32.mrb[25].mxu1  ;;  %v6837_v45 = vpack.c.bf16 %v7349_v38, %v7348_v8  ;;  %v4543_v23 = vsub.f32 1.0, %v4542_v48 }
 0xa47   : > { %v3942_v13 = vadd.f32 %v3941_v18, %v3772_v53  ;;  %v4710_v18 = vsub.f32 %v9871_v51, %v7414_v11  ;;  %v5046_v51 = vpop.permute.xlu0 %5045 }
 0xa48   : > { %v4033_v61 = vpop.f32.mrb[26].mxu1 }
 0xa49   : > { %v4110_v31 = vmul.f32 %v4106_v28, %v4033_v61  ;;  %v6635_v15 = vpop.f32.mrb[27].mxu1  ;;  %v7358_v28 = vunpack.i.l.bf16 %v9857_v40  ;;  %v4711_v61 = vand.u32 2147483647, %v4710_v18 }
 0xa4b   : > { %v6843_v20 = vpack.c.bf16 %v7359_v32, %v7358_v28  ;;  %v4712_v50 = vsub.f32 1.0, %v4711_v61  ;;  %v6260_v61 = vld [vmem:[#allocation21] ss:$0 sm:$0xff] }
 0xa4c   : > { %v4202_v52 = vpop.f32.mrb[28].mxu1 }
 0xa4d   : > { %v4279_v5 = vmul.f32 %v4275_v21, %v4202_v52  ;;  %v6645_v41 = vpop.f32.mrb[29].mxu1  ;;  %v5057_v21 = vand.u32 2147483647, %v5056_v33 }
 0xa4e   : > { %v4713_v41 = vmax.f32 %v4712_v50, 0.0 }
 0xa4f   : > { %v4280_v35 = vadd.f32 %v4279_v5, %v4110_v31  ;;  %v5058_v40 = vsub.f32 1.0, %v5057_v21  ;;  %v7416_v31 = vld [vmem:[#allocation39] ss:$0 sm:$0xff] }
 0xa50   : > { %v4879_v15 = vsub.f32 %v9981_v2, %v7416_v31 }
 0xa51   : > { %6656 = vmatmul.mubr.msk.f32.vlgmr.msra.gmra.mrb[30].mxu1 %vm1624_vm6, %v4280_v35  ;;  %v5059_v19 = vmax.f32 %v5058_v40, 0.0  ;;  %v7374_v35 = vpop.permute.xlu0 %7373 }
 0xa52   : > { %6835 = vmatpush3.bf16.msra.mxu1 %v6834_v9  ;;  %6674 = vmatprep.mubr.msk.f32.mxu1 %vm8405_vm1, %v8406_v63  ;;  %v4880_v52 = vand.u32 2147483647, %v4879_v15  ;;  %v7376_v2 = vunpack.i.h.bf16 %v7374_v35 }
 0xa53   : > { %6836 = vmatprep.subr.bf16.mxu1 %v8404_v60  ;;  %v5064_v29 = vmul.f32 %v5062_v47, %v5059_v19 }
 0xa54   : > { %v4881_v38 = vsub.f32 1.0, %v4880_v52 }
 0xa56   : > { %6838 = vmatpush3.bf16.msra.mxu1 %v6837_v45  ;;  %v4882_v9 = vmax.f32 %v4881_v38, 0.0  ;;  %v7375_v45 = vunpack.i.l.bf16 %v7374_v35  ;;  %v5510_v35 = vld [vmem:[#allocation26 + $0x10] sm:$0xff] }
 0xa57   : > { %6839 = vmatprep.subr.bf16.mxu1 %v8404_v60 }
 0xa58   : > { %v6846_v14 = vpack.c.bf16 %v7376_v2, %v7375_v45  ;;  %v5511_v2 = vld [vmem:[#allocation26 + $0x18] sm:$0xff] }
 0xa59   : > { %v6864_v45 = vpack.c.bf16 %v5511_v2, %v5510_v35 }
 0xa5a   : > { %6841 = vmatpush3.bf16.msra.mxu1 %v6840_v17 }
 0xa5b   : > { %6842 = vmatprep.subr.bf16.mxu1 %v8404_v60 }
 0xa5e   : > { %6844 = vmatpush3.bf16.msra.mxu1 %v6843_v20 }
 0xa5f   : > { %6702 = vmatprep.subr.mxu1 %v8406_v63 }
 0xa61   : > { %6675 = vmatmul.mubr.msk.f32.vlgmr.msra.gmra.mrb[30].mxu1 %vm2509_vm8, %v3942_v13  ;;  %v4544_v13 = vmax.f32 %v4543_v23, 0.0  ;;  %v5394_v23 = vld [vmem:[#allocation20 + $0x18] sm:$0xff] }
 0xa62   : > { %6703 = vmatpush3.msk.msra.mxu1 %vm2113_vm5, %v9666_v16  ;;  %6704 = vmatprep.mubr.msk.f32.mxu1 %vm8405_vm1, %v8406_v63 }
 0xa63   : > { %6712 = vmatprep.subr.mxu1 %v8406_v63 }
 0xa65   : > { %6705 = vmatmul.mubr.msk.f32.vlgmr.msra.gmra.mrb[32].mxu1 %vm2109_vm7, %v4895_v24  ;;  %v7379_v24 = vpop.permute.xlu1 %7378 }
 0xa66   : > { %6713 = vmatpush3.msk.msra.mxu1 %vm2113_vm5, %v9666_v16  ;;  %6714 = vmatprep.mubr.msk.f32.mxu1 %vm8405_vm1, %v8406_v63  ;;  %v7410_v16 = vld [vmem:[#allocation2 + $0x10] sm:$0xff]  ;;  %v7380_v27 = vunpack.i.l.bf16 %v7379_v24 }
 0xa67   : > { %6845 = vmatprep.subr.bf16.mxu1 %v8404_v60  ;;  %v7382_v12 = vpack.i.bf16 %v7411_v7, %v7410_v16 }
 0xa69   : > { %6715 = vmatmul.mubr.msk.f32.vlgmr.msra.gmra.mrb[34].mxu1 %vm2109_vm7, %v5064_v29  ;;  %7383 = vrot.lane.b32.xlu0 %v7382_v12, %s8442_s20  ;;  %v7381_v29 = vunpack.i.h.bf16 %v7379_v24  ;;  %v7389_v54 = vpop.permute.xlu1 %7388  ;;  %v5598_v24 = vld [vmem:[#allocation29 + $0x28] sm:$0xff] }
 0xa6a   : > { %6726 = vmatprep.mubr.msk.f32.mxu1 %vm8405_vm1, %v8406_v63  ;;  %6847 = vmatpush3.bf16.msra.mxu1 %v6846_v14  ;;  %v7390_v11 = vunpack.i.l.bf16 %v7389_v54 }
 0xa6b   : > { %6848 = vmatprep.subr.bf16.mxu1 %v8404_v60  ;;  %v6849_v16 = vpack.c.bf16 %v7381_v29, %v7380_v27  ;;  %v5600_v29 = vld [vmem:[#allocation29 + $0x38] sm:$0xff] }
 0xa6d   : > { %7393 = vrot.lane.b32.xlu0 %v7392_v39, %s8442_s20  ;;  %v7391_v39 = vunpack.i.h.bf16 %v7389_v54  ;;  %v5391_v18 = vpop.permute.xlu1 %5390 }
 0xa6f   : > { %v6855_v48 = vpack.c.bf16 %v7391_v39, %v7390_v11 }
 0xb34   : > { %v4453_v46 = vpop.f32.mrb[30].mxu1 }
 0xb35   : > { %v4461_v49 = vmul.f32 %v9863_v34, %v4453_v46  ;;  %v6676_v53 = vpop.f32.mrb[31].mxu1  ;;  %v7415_v34 = vld [vmem:[#allocation36] sm:$0xff] }
 0xb37   : > { %6680 = vmatmul.mubr.msk.f32.vlgmr.msra.gmra.mrb[30].mxu0 %vm1746_vm4, %v4461_v49 }
 0xb38   : > { %6683 = vmatpush3.msra.mxu0 %v9934_v56  ;;  %v10019_v36 = vpop.f32.mrb[32].mxu1  ;;  %6684 = vmatprep.mubr.msk.f32.mxu0 %vm8405_vm1, %v8406_v63 }
 0xb39   : > { %v6706_v42 = vpop.f32.mrb[33].mxu1  ;;  %6687 = vmatprep.subr.mxu0 %v8406_v63 }
 0xb3b   : > { %6685 = vmatmul.mubr.msk.f32.vlgmr.msra.gmra.mrb[32].mxu0 %vm1746_vm4, %v9869_v43  ;;  %v5048_v43 = vsub.f32 %v5046_v51, %v7416_v31  ;;  %v7418_v51 = vld [vmem:[%s1098_s30] sm:$0xff]  ;;  %s10408_s30 = sld [smem:[#allocation69_spill]] }
 0xb3c   : > { %6688 = vmatpush3.msra.mxu0 %v7415_v34  ;;  %v10027_v58 = vpop.f32.mrb[34].mxu1  ;;  %6689 = vmatprep.mubr.msk.f32.mxu0 %vm8405_vm1, %v8406_v63 }
 0xb3d   : > { %v6716_v55 = vpop.f32.mrb[35].mxu1  ;;  %6692 = vmatprep.subr.mxu0 %v8406_v63  ;;  %v5049_v5 = vand.u32 2147483647, %v5048_v43 }
 0xb3f   : > { %6690 = vmatmul.mubr.msk.f32.vlgmr.msra.gmra.mrb[34].mxu0 %vm1746_vm4, %v4544_v13  ;;  %v5050_v8 = vsub.f32 1.0, %v5049_v5 }
 0xb40   : > { %6693 = vmatpush3.msra.mxu0 %v9934_v56  ;;  %6694 = vmatprep.mubr.msk.f32.mxu0 %vm8405_vm1, %v8406_v63  ;;  %v7417_v56 = vld [vmem:[#allocation42] sm:$0xf] }
 0xb41   : > { %6697 = vmatprep.subr.mxu0 %v8406_v63  ;;  %s6268_s19 = sshll.u32 %s10408_s30, 1 }
 0xb42   : > { %s5710_s10 = sadd.s32 %s10409_s0, %s6268_s19 }
 0xb43   : > { %6695 = vmatmul.mubr.msk.f32.vlgmr.msra.gmra.mrb[36].mxu0 %vm1746_vm4, %v9873_v62  ;;  %v5051_v62 = vmax.f32 %v5050_v8, 0.0  ;;  %v5508_v8 = vld [vmem:[#allocation26] sm:$0xff]  ;;  %s6269_s18 = sshll.u32 %s5710_s10, 7 }
 0xb44   : > { %6698 = vmatpush3.msra.mxu0 %v7415_v34  ;;  %6699 = vmatprep.mubr.msk.f32.mxu0 %vm8405_vm1, %v8406_v63  ;;  %s10093_s12 = scalar_lea.hbm %s10411_s15, %s6269_s18 }
 0xb45   : > { %6707 = vmatprep.subr.mxu0 %v8406_v63 }
 0xb47   : > { %6700 = vmatmul.mubr.msk.f32.vlgmr.msra.gmra.mrb[38].mxu0 %vm1746_vm4, %v4713_v41 }
 0xb48   : > { %6708 = vmatpush3.msk.msra.mxu0 %vm2113_vm5, %v7417_v56  ;;  %6709 = vmatprep.mubr.msk.f32.mxu0 %vm8405_vm1, %v8406_v63 }
 0xb49   : > { %6717 = vmatprep.subr.mxu0 %v8406_v63 }
 0xb4b   : > { %6710 = vmatmul.mubr.msk.f32.vlgmr.msra.gmra.mrb[40].mxu0 %vm2109_vm7, %v4882_v9  ;;  %v5509_v9 = vld [vmem:[#allocation26 + $0x8] sm:$0xff] }
 0xb4c   : > { %6718 = vmatpush3.msk.msra.mxu0 %vm2113_vm5, %v7417_v56  ;;  %6719 = vmatprep.mubr.msk.f32.mxu0 %vm8405_vm1, %v8406_v63 }
 0xb4d   : > { %6748 = vmatprep.subr.mxu0 %v8406_v63 }
 0xb4f   : > { %6720 = vmatmul.mubr.msk.f32.vlgmr.msra.gmra.mrb[42].mxu0 %vm2109_vm7, %v5051_v62  ;;  %v6861_v62 = vpack.c.bf16 %v5509_v9, %v5508_v8 }
 0xb50   : > { %6750 = vmatprep.mubr.msk.f32.mxu0 %vm8405_vm1, %v8406_v63  ;;  %6749 = vmatpush3.msra.mxu0 %v5394_v23 }
 0xb51   : > { %6860 = vmatprep.subr.bf16.mxu0 %v8404_v60 }
 0xc0a   : > { %v4532_v6 = vpop.f32.mrb[30].mxu0 }
 0xc0b   : > { %v4536_v10 = vadd.f32 %v4532_v6, %v9974_v3  ;;  %v6681_v4 = vpop.f32.mrb[31].mxu0  ;;  %v7384_v3 = vpop.permute.xlu0 %7383 }
 0xc0c   : > { %v7386_v7 = vunpack.i.h.bf16 %v7384_v3  ;;  %v7385_v12 = vunpack.i.l.bf16 %v7384_v3  ;;  %v6263_v3 = vld [vmem:[#allocation27] ss:$0 sm:$0xff] }
 0xc0e   : > { %v4627_v32 = vpop.f32.mrb[32].mxu0  ;;  %v6852_v22 = vpack.c.bf16 %v7386_v7, %v7385_v12 }
 0xc0f   : > { %v6686_v28 = vpop.f32.mrb[33].mxu0  ;;  %v7394_v46 = vpop.permute.xlu0 %7393 }
 0xc10   : > { %v7396_v49 = vunpack.i.h.bf16 %v7394_v46  ;;  %v7395_v53 = vunpack.i.l.bf16 %v7394_v46 }
 0xc12   : > { %v4700_v17 = vpop.f32.mrb[34].mxu0 }
 0xc13   : > { %v4704_v26 = vmul.f32 %v4700_v17, %v4627_v32  ;;  %v6691_v1 = vpop.f32.mrb[35].mxu0  ;;  %v6261_v32 = vld [vmem:[#allocation23] ss:$0 sm:$0xff]  ;;  %v5593_v17 = vld [vmem:[#allocation29] sm:$0xff] }
 0xc14   : > { %v6262_v1 = vld [vmem:[#allocation24] ss:$0 sm:$0xff] }
 0xc16   : > { %v4796_v33 = vpop.f32.mrb[36].mxu0 }
 0xc17   : > { %v6696_v20 = vpop.f32.mrb[37].mxu0 }
 0xc1a   : > { %v4869_v59 = vpop.f32.mrb[38].mxu0 }
 0xc1b   : > { %v4873_v21 = vmul.f32 %v4869_v59, %v4796_v33  ;;  %v6701_v25 = vpop.f32.mrb[39].mxu0 }
 0xc1c   : > { %v5596_v25 = vld [vmem:[#allocation29 + $0x18] sm:$0xff] }
 0xc1d   : > { %v4874_v37 = vadd.f32 %v4873_v21, %v4704_v26  ;;  %v5594_v26 = vld [vmem:[#allocation29 + $0x8] sm:$0xff]  ;;  %v5595_v21 = vld [vmem:[#allocation29 + $0x10] sm:$0xff] }
 0xc1e   : > { %v5038_v40 = vpop.f32.mrb[40].mxu0  ;;  %v6867_v20 = vpack.c.bf16 %v5594_v26, %v5593_v17 }
 0xc1f   : > { %v5042_v47 = vmul.f32 %v5038_v40, %v10019_v36  ;;  %v6711_v19 = vpop.f32.mrb[41].mxu0  ;;  %v6858_v36 = vpack.c.bf16 %v7396_v49, %v7395_v53  ;;  %v5597_v40 = vld [vmem:[#allocation29 + $0x20] sm:$0xff] }
 0xc20   : > { %v5599_v19 = vld [vmem:[#allocation29 + $0x30] sm:$0xff] }
 0xc21   : > { %v6876_v27 = vpack.c.bf16 %v5600_v29, %v5599_v19 }
 0xc22   : > { %v5207_v44 = vpop.f32.mrb[42].mxu0 }
 0xc23   : > { %v5211_v57 = vmul.f32 %v5207_v44, %v10027_v58  ;;  %v6721_v0 = vpop.f32.mrb[43].mxu0 }
 0xc25   : > { %v5212_v30 = vadd.f32 %v5211_v57, %v5042_v47  ;;  %v6873_v47 = vpack.c.bf16 %v5598_v24, %v5597_v40 }
 0xc27   : > { %6727 = vmatmul.mubr.msk.f32.vlgmr.msra.gmra.mrb[36].mxu1 %vm1624_vm6, %v5212_v30 }
 0xc28   : > { %6850 = vmatpush3.bf16.msra.mxu1 %v6849_v16  ;;  %6745 = vmatprep.mubr.msk.f32.mxu1 %vm8405_vm1, %v8406_v63  ;;  %v6265_v16 = vld [vmem:[#allocation30] ss:$0 sm:$0xff] }
 0xc29   : > { %6851 = vmatprep.subr.bf16.mxu1 %v8404_v60 }
 0xc2c   : > { %6853 = vmatpush3.bf16.msra.mxu1 %v6852_v22 }
 0xc2d   : > { %6854 = vmatprep.subr.bf16.mxu1 %v8404_v60 }
 0xc30   : > { %6856 = vmatpush3.bf16.msra.mxu1 %v6855_v48 }
 0xc31   : > { %6857 = vmatprep.subr.bf16.mxu1 %v8404_v60 }
 0xc34   : > { %6859 = vmatpush3.bf16.msra.mxu1 %v6858_v36 }
 0xc37   : > { %6746 = vmatmul.mubr.msk.f32.vlgmr.msra.gmra.mrb[36].mxu1 %vm2509_vm8, %v4874_v37  ;;  %v6870_v37 = vpack.c.bf16 %v5596_v25, %v5595_v21 }
 0xd0a   : > { %v5385_v42 = vpop.f32.mrb[36].mxu1 }
 0xd0b   : > { %v5393_v34 = vmul.f32 %v5391_v18, %v5385_v42  ;;  %v6747_v58 = vpop.f32.mrb[37].mxu1 }
 0xd0d   : > { %6751 = vmatmul.mubr.msk.f32.vlgmr.msra.gmra.mrb[44].mxu0 %vm1746_vm4, %v5393_v34 }
 0xd0e   : > { %6761 = vmatprep.mubr.msk.f32.mxu0 %vm8405_vm1, %v8406_v63  ;;  %6862 = vmatpush3.bf16.msra.mxu0 %v6861_v62 }
 0xd0f   : > { %6863 = vmatprep.subr.bf16.mxu0 %v8404_v60 }
 0xd12   : > { %6865 = vmatpush3.bf16.msra.mxu0 %v6864_v45 }
 0xd13   : > { %6866 = vmatprep.subr.bf16.mxu0 %v8404_v60 }
 0xde0   : > { %v5464_v13 = vpop.f32.mrb[44].mxu0 }
 0xde1   : > { %v5468_v31 = vadd.f32 %v5464_v13, %v4536_v10  ;;  %v6752_v15 = vpop.f32.mrb[45].mxu0 }
 0xde3   : > { %v5476_v55 = vadd.f32 %v6260_v61, %v5468_v31 }
 0xde5   : > { %v5479_v43 = vadd.f32 %v7418_v51, %v5476_v55 }
 0xde7   : > { %v5480_v50 = vsel %vm1538_vm2, %v5479_v43, 0.0 }
 0xde8   : > { %5481 = vadd.xlane.f32.xlu0 %v5480_v50 }
 0xe75   : > { %v5482_v52 = vpop.xlane.xlu0 %5481 }
 0xe76   : > { %v5484_v5 = vmul.f32 0.03125, %v5482_v52 }
 0xe78   : > { %v5485_v41 = vsub.f32 %v5479_v43, %v5484_v5 }
 0xe7a   : > { %v5486_v38 = vmul.f32 %v5485_v41, %v5485_v41 }
 0xe7c   : > { %v5487_v56 = vsel %vm1538_vm2, %v5486_v38, 0.0 }
 0xe7d   : > { %5488 = vadd.xlane.f32.xlu1 %v5487_v56 }
 0xf0a   : > { %v5489_v14 = vpop.xlane.xlu1 %5488 }
 0xf0b   : > { %v5490_v6 = vmul.f32 0.03125, %v5489_v14 }
 0xf0d   : > { %v5491_v10 = vadd.f32 1e-05, %v5490_v6 }
 0xf0f   : > { %7403 = vrsqrt.f32 %v5491_v10 }
 0xf19   : > { %v7404_v4 = vpop.eup %7403 }
 0xf1a   : > { %v5493_v28 = vmul.f32 %v7404_v4, %v5485_v41 }
 0xf1c   : > { %v5500_v33 = vmul.f32 %v6261_v32, %v5493_v28 }
 0xf1e   : > { %v5507_v59 = vadd.f32 %v6262_v1, %v5500_v33 }
 0xf20   : > { %6762 = vmatmul.mubr.msk.f32.vlgmr.msra.gmra.mrb[46].mxu0 %vm1538_vm2, %v5507_v59 }
 0xf21   : > { %6868 = vmatpush3.bf16.msra.mxu0 %v6867_v20  ;;  %6780 = vmatprep.mubr.msk.f32.mxu0 %vm8405_vm1, %v8406_v63 }
 0xf22   : > { %6869 = vmatprep.subr.bf16.mxu0 %v8404_v60 }
 0xf25   : > { %6871 = vmatpush3.bf16.msra.mxu0 %v6870_v37 }
 0xf26   : > { %6872 = vmatprep.subr.bf16.mxu0 %v8404_v60 }
 0xf29   : > { %6874 = vmatpush3.bf16.msra.mxu0 %v6873_v47 }
 0xf2a   : > { %6875 = vmatprep.subr.bf16.mxu0 %v8404_v60 }
 0xf2d   : > { %6877 = vmatpush3.bf16.msra.mxu0 %v6876_v27 }
 0xff3   : > { %v5588_v44 = vpop.f32.mrb[46].mxu0 }
 0xff4   : > { %v5589_v57 = vadd.f32 %v6263_v3, %v5588_v44  ;;  %v6763_v0 = vpop.f32.mrb[47].mxu0 }
 0xff6   : > { %v5592_v63 = vmax.f32 %v5589_v57, 0.0 }
 0xff8   : > { %6781 = vmatmul.mubr.msk.f32.vlgmr.msra.gmra.mrb[48].mxu0 %vm2509_vm8, %v5592_v63 }
0x10cb   : > { %v5677_v7 = vpop.f32.mrb[48].mxu0 }
0x10cc   : > { %v5678_v12 = vadd.f32 %v6265_v16, %v5677_v7  ;;  %v6782_v30 = vpop.f32.mrb[49].mxu0 }
0x10ce   : > { %v5681_v54 = vadd.f32 %v5678_v12, %v5507_v59 }
0x10d0   : > { %v5682_v60 = vsel %vm1538_vm2, %v5681_v54, 0.0 }
0x10d1   : > { %5683 = vadd.xlane.f32.xlu0 %v5682_v60 }
0x115e   : > { %v5684_v39 = vpop.xlane.xlu0 %5683 }
0x115f   : > { %v5685_v11 = vmul.f32 0.03125, %v5684_v39 }
0x1161   : > { %v5686_v22 = vsub.f32 %v5681_v54, %v5685_v11 }
0x1163   : > { %v5687_v46 = vmul.f32 %v5686_v22, %v5686_v22 }
0x1165   : > { %v5688_v48 = vsel %vm1538_vm2, %v5687_v46, 0.0 }
0x1166   : > { %5689 = vadd.xlane.f32.xlu0 %v5688_v48 }
0x11f3   : > { %v5690_v49 = vpop.xlane.xlu0 %5689 }
0x11f4   : > { %v5691_v53 = vmul.f32 0.03125, %v5690_v49 }
0x11f6   : > { %v5692_v36 = vadd.f32 1e-05, %v5691_v53 }
0x11f8   : > { %7405 = vrsqrt.f32 %v5692_v36 }
0x1202   : > { %v7406_v23 = vpop.eup %7405 }
0x1203   : > { %v5694_v18 = vmul.f32 %v7406_v23, %v5686_v22 }
0x1205   : > { %v5695_v42 = vmul.f32 %v6261_v32, %v5694_v18 }
0x1207   : > { %v5696_v34 = vadd.f32 %v6262_v1, %v5695_v42 }
0x1209   : > { %5697 = vst.msk [vmem:[%s1322_s22] sm:$0xff] %vm1538_vm2, %v5696_v34 }
0x120a   : > { %8200 = shalt.err (!%p8197_p7)
}
0x120b   : > { %s8201_s21 = scalar_lea.hbm %s10093_s12, 128  ;;  %s8205_s17 = scalar_lea.hbm %s10411_s15, 512 }
0x120c   : > { %p8202_p11 = scmp.ne.s32.totalorder %s10093_s12, %s8201_s21  ;;  %p8206_p1 = scmp.lt.u32.totalorder %s10093_s12, %s10411_s15 }
0x120d   : > { %p8207_p8 = scmp.lt.u32.totalorder %s8205_s17, %s8201_s21  ;;  %p8209_p6 = scmp.lt.u32.totalorder %s8201_s21, %s10093_s12 }
0x120e   : > { %p8203_p5 = pnand %p8202_p11, %p10412_p10 }
0x120f   : > { %p8208_p0 = por %p8207_p8, %p8206_p1 }
0x1210   : > { %p8204_p2 = pneg %p8203_p5 }
0x1211   : > { %p8210_p3 = por %p8209_p6, %p8208_p0 }
0x1213   : > { %p8211_p12 = pnand %p8210_p3, %p8204_p2 }
0x1215   : > { %8214 = shalt.err (!%p8211_p12)
}
0x1216   : > { %6991 = dma.vmem_to_hbm [thread:$0]  (%p10412_p10), %s10095_s28, 128, %s10093_s12, %s5699_s2  }
0x1217 PF: > { %s10413_s0 = sld [smem:[#allocation71_spill]]  ;;  %s10414_s19 = sld [smem:[#allocation67_spill]] }
0x1218   : > { %s10415_s10 = sld [smem:[#allocation77_spill]] }
0x121d   : > { %p7123_p9 = scmp.ge.s32.totalorder %s10413_s0, 2  ;;  %s5726_s18 = sand.u32 1, %s10414_s19  }
0x121e   : > { %p10416_p4 = scmp.ne.s32.totalorder %s10415_s10, 0  ;;  %s5727_s8 = scalar_lea.sflag [#allocation5], %s5726_s18 }
0x1220   : > { %p7077_p13 = pnand %p7123_p9, %p10416_p4 }
0x1222   : > { %8328 = dma.done.wait (!%p7077_p13), %s5727_s8, 128  }
0x1223   : > { %8330 = vsyncadd (!%p7077_p13), %s5727_s8, 4294967168  ;;  %s62_s1 = sadd.s32 1, %s10413_s0   ;;  %s10417_s7 = sld [smem:[#allocation65_spill]] }
0x1224   : > { %p59_p7 = scmp.ge.s32.totalorder %s62_s1, 6   ;;  %s10418_s4 = sld [smem:[#allocation66_spill]] }
0x1225   : > { %s10419_s8 = sld [smem:[#allocation79_spill]]  ;;  %s10420_s28 = sld [smem:[#allocation78_spill]] }
0x1226   : > { %s10421_s6 = sld [smem:[#allocation70_spill]]  ;;  %s10422_s10 = sld [smem:[#allocation74_spill]] }
0x1227   : > { %s10423_s12 = sld [smem:[#allocation75_spill]]  ;;  %s10424_s30 = smov %s8349_s9 }
0x1228   : > { %s10425_s9 = smov %s8353_s5  ;;  %s10428_s0 = smov %s8369_s29 }
0x1229   :  { %61 = sbr.rel (!%p59_p7) target bundleno = 54 (0x36), region = 322 }
0x122b   : > { %s10426_s5 = smov %s10420_s28 }
0x122c   : > { %s10427_s28 = smov %s10421_s6 }
0x122d   : > { %s10429_s29 = smov %s10423_s12 }
0x1230   :  { %5732 = vsyncpa [#allocation4], 1 }
0x1231   :  { %5734 = vsyncpa [#allocation4 + $0x1], 1 }
0x1232   :  { %5735 = vsyncpa [#allocation7], 1 }
0x1233   :  { %5737 = vsyncpa [#allocation7 + $0x1], 1 }
0x1234   :  { %5738 = vsyncpa [#allocation10], 1 }
0x1235   :  { %5740 = vsyncpa [#allocation10 + $0x1], 1 }
0x1236   :  { %5741 = vsyncpa [#allocation13], 1 }
0x1237   :  { %5743 = vsyncpa [#allocation13 + $0x1], 1 }
0x1238   :  { %5744 = vsyncpa [#allocation16], 1 }
0x1239   :  { %5745 = vsyncpa [#allocation19], 1 }
0x123a   :  { %5746 = vsyncpa [#allocation22], 1 }
0x123b   :  { %5747 = vsyncpa [#allocation25], 1 }
0x123c   :  { %5748 = vsyncpa [#allocation28], 1 }
0x123d   :  { %5749 = vsyncpa [#allocation31], 1 }
0x123e   :  { %5750 = vsyncpa [#allocation34], 1 }
0x123f   :  { %5751 = vsyncpa [#allocation37], 1 }
0x1240   :  { %5752 = vsyncpa [#allocation40], 1 }
0x1241   :  { %5753 = vsyncpa [#allocation43], 1 }
0x1242   :  { %5754 = vsyncpa [#allocation5], 1 }
0x1243   :  { %5756 = vsyncpa [#allocation5 + $0x1], 1 }

</bundles_post_ra>
